<compile_context>
chip_gen: v7x
topology: tpu7x:2x2x1
jax: 0.10.0
libtpu: 0.0.40
codegen_flags: <defaults>
</compile_context>

<pallas_src>
import jax
import jax.numpy as jnp
import numpy as np
from jax.experimental import pallas as pl
from jax.experimental.pallas import tpu as pltpu


# ---------------------------------------------------------------------------
# Fused kernel: whole forward pass in one pallas_call
# ---------------------------------------------------------------------------
def _fused_forward_kernel(x_ref, cn_ref, cw_ref, o_ref,
                          pad1, a23, rows23, v5pad, a4):
    f32 = jnp.float32

    # ---- unpack the two packed constant buffers (static, aligned slices) ---
    w23s  = cn_ref[0:56, 0:72]       # (56,72)  conv2|3 merged, tap-major, ci padded 5->8
    b23   = cn_ref[0:56, 72:73]      # (56,1)
    w1p   = cn_ref[56:64, 0:2]       # (8,2)    conv1 weights (rows 5..7 are zero)
    b1p   = cn_ref[56:64, 2:3]       # (8,1)
    s13   = cn_ref[64:88, 0:13]      # (24,13)  one-hot stride-2 col-select -> padded-13 row
    g4    = cn_ref[88:229, 0:36]     # (141,36) tiny one-hot stride-2 gather for conv4 output
    w4s   = cw_ref[0:28, 0:504]      # (28,504) conv4, tap-major stacked
    b4    = cw_ref[0:28, 504:505]    # (28,1)
    pmask = cw_ref[28:29, 0:526]     # (1,526)  zeroes the 2 wrap-around cols per 24-wide row

    # ---- conv1 (1x1, 2 -> 5 padded to 8 rows): pure VPU on the flat map ----
    v1 = (w1p[:, 0:1] * x_ref[0:1, :]
          + w1p[:, 1:2] * x_ref[1:2, :]
          + b1p)                                            # (8, 576), rows 5..7 = 0

    # ---- separable MaxPool 3x3 stride 1 (4 shifted maxima instead of 8) ----
    hmax = jnp.maximum(jnp.maximum(v1[:, 0:574], v1[:, 1:575]), v1[:, 2:576])   # (8, 574)
    pool = jnp.maximum(jnp.maximum(hmax[:, 0:526], hmax[:, 24:550]),
                       hmax[:, 48:574])                                          # (8, 526)
    pool = pool * pmask                      # kill wrap-around columns (w = 22, 23)

    # ---- zero-padded (pad=1) pooled map, flat with row stride 24 ------------
    pad1[...] = jnp.zeros_like(pad1)
    pad1[:, 25:551] = pool                   # offset 25 = minimum keeping tap starts >= 0

    # ---- conv2 | conv3 merged (5 -> 56), 3x3, stride 2, pad 1 ---------------
    # Stack the 9 shifted tap slices on the sublane axis (aligned 8-row blocks)
    # and do ONE deep-K matmul (K=72) instead of 9 chained K=5 dot+adds.
    for kh in range(3):
        for kw in range(3):
            t = 3 * kh + kw
            a23[8 * t:8 * t + 8, :] = pad1[:, 24 * kh + kw:24 * kh + kw + 504]
    pre23 = jnp.dot(w23s, a23[...], preferred_element_type=f32) + b23   # (56, 504)

    # Stride-2 gather of the 11x11 outputs straight into the zero-padded 13x13
    # layout conv4 needs: per-output-row (24 -> 13) one-hot column-select,
    # batched as a single (616,24)@(24,13) matmul (replaces the old 339 KB /
    # 4.7 MMAC (501,169) gather).
    for oh in range(11):
        rows23[56 * oh:56 * oh + 56, :] = pre23[:, 48 * oh:48 * oh + 24]
    v5rows = jnp.dot(rows23[...], s13, preferred_element_type=f32)      # (616, 13)
    v5pad[...] = jnp.zeros_like(v5pad)
    for oh in range(11):
        v5pad[:, 13 * (oh + 1):13 * (oh + 1) + 13] = v5rows[56 * oh:56 * oh + 56, :]

    # ---- conv4 (56 -> 28), 3x3, stride 2, pad 1: one stacked-K matmul -------
    for kh in range(3):
        for kw in range(3):
            t = 3 * kh + kw
            a4[56 * t:56 * t + 56, :] = v5pad[:, 13 * kh + kw:13 * kh + kw + 141]
    pre4 = jnp.dot(w4s, a4[...], preferred_element_type=f32) + b4       # (28, 141)

    # tiny one-hot stride-2 gather (141 -> 36) -> final (28, 36), channel-major
    o_ref[...] = jnp.dot(pre4, g4, preferred_element_type=f32)


def fused_forward(x2d, cn, cw):
    vmem = pltpu.MemorySpace.VMEM
    return pl.pallas_call(
        _fused_forward_kernel,
        out_shape=jax.ShapeDtypeStruct((28, 36), jnp.float32),
        in_specs=[pl.BlockSpec(memory_space=vmem)] * 3,
        out_specs=pl.BlockSpec(memory_space=vmem),
        scratch_shapes=[
            pltpu.VMEM((8, 576), jnp.float32),     # padded pooled map
            pltpu.VMEM((72, 504), jnp.float32),    # stacked conv2|3 operand (9 taps x 8 ch)
            pltpu.VMEM((616, 24), jnp.float32),    # per-output-row gather operand
            pltpu.VMEM((56, 169), jnp.float32),    # padded v5 map (conv4 input)
            pltpu.VMEM((504, 141), jnp.float32),   # stacked conv4 operand (9 taps x 56 ch)
        ],
    )(x2d, cn, cw)


# ---------------------------------------------------------------------------
# One-time parameter / constant preparation (kept OUT of the per-call jit)
# ---------------------------------------------------------------------------
def _conv_params(key, cout, cin, k):
    # Deterministic PyTorch-style default init: U(-1/sqrt(fan_in), 1/sqrt(fan_in))
    fan_in = cin * k * k
    bound = 1.0 / float(fan_in) ** 0.5
    kw, kb = jax.random.split(key)
    w = jax.random.uniform(kw, (cout, cin, k, k), jnp.float32, -bound, bound)
    b = jax.random.uniform(kb, (cout,), jnp.float32, -bound, bound)
    return w, b


def prepare_params(params):
    (w1, b1), (w2, b2), (w3, b3), (w4, b4) = params
    w1, b1 = np.asarray(w1), np.asarray(b1)
    w2, b2 = np.asarray(w2), np.asarray(b2)
    w3, b3 = np.asarray(w3), np.asarray(b3)
    w4, b4 = np.asarray(w4), np.asarray(b4)

    # ---- "narrow" constant buffer: (232, 80) --------------------------------
    cn = np.zeros((232, 80), np.float32)

    # conv2 and conv3 merged along the output-channel axis; tap-major, input
    # channels padded 5 -> 8 so the stacked operand rows are sublane-aligned.
    w23 = np.concatenate([w2, w3], axis=0)                    # (56,5,3,3)
    w23t = np.transpose(w23, (0, 2, 3, 1)).reshape(56, 9, 5)  # (co, tap, ci)
    w23p = np.zeros((56, 9, 8), np.float32)
    w23p[:, :, :5] = w23t
    cn[0:56, 0:72] = w23p.reshape(56, 72)
    cn[0:56, 72] = np.concatenate([b2, b3], axis=0)

    # conv1 (1x1) weights / bias, rows 61..63 stay zero (dummy channels 5..7)
    cn[56:61, 0:2] = w1.reshape(5, 2)
    cn[56:61, 2] = b1

    # S13: per-output-row stride-2 column select (24 -> padded-13 row);
    # columns 0 and 12 stay all-zero -> exact zero padding for conv4's input.
    for ow in range(11):
        cn[64 + 2 * ow, ow + 1] = 1.0

    # G4: final stride-2 spatial gather, flat padded-13 index -> (6,6) output.
    for oh in range(6):
        for ow in range(6):
            cn[88 + 26 * oh + 2 * ow, 6 * oh + ow] = 1.0

    # ---- "wide" constant buffer: (29, 526) ----------------------------------
    cw = np.zeros((29, 526), np.float32)
    cw[0:28, 0:504] = np.transpose(w4, (0, 2, 3, 1)).reshape(28, 504)  # tap-major
    cw[0:28, 504] = b4
    # pooled-map column mask: 1 for w in 0..21, 0 for the 2 wrap-around columns
    m = np.zeros((526,), np.float32)
    for p in range(526):
        if p % 24 < 22:
            m[p] = 1.0
    cw[28, 0:526] = m

    return jnp.asarray(cn), jnp.asarray(cw)


# ---------------------------------------------------------------------------
# Jitted forward: only free reshapes + the single fused pallas_call
# ---------------------------------------------------------------------------
@jax.jit
def model_forward(x_nchw, cn, cw):
    x2d = x_nchw.reshape(2, 24 * 24)          # NCHW (1,2,24,24) -> (2,576): zero-copy
    out = fused_forward(x2d, cn, cw)          # (28, 36)
    return out.reshape(1, 28, 6, 6)           # same row-major layout: zero-copy


if __name__ == "__main__":
    key = jax.random.PRNGKey(0)
    k_x, k1, k2, k3, k4 = jax.random.split(key, 5)
    x1 = jax.random.normal(k_x, (1, 2, 24, 24), jnp.float32)

    params = (
        _conv_params(k1, 5, 2, 1),    # self.conv : Conv2d(2, 5, 1)
        _conv_params(k2, 28, 5, 3),   # self.conv2: Conv2d(5, 28, 3, s2, p1)
        _conv_params(k3, 28, 5, 3),   # self.conv3: Conv2d(5, 28, 3, s2, p1)
        # TODO(synk): the reference declares conv4 = Conv2d(13, 28, 3, s2, p1) but
        # feeds it 56 channels (cat of two 28-ch maps) -- PyTorch would raise at
        # runtime; keep in_channels=56 so the forward is executable (same
        # deliberate, documented deviation as the previous version).
        _conv_params(k4, 28, 56, 3),  # self.conv4
    )
    cn, cw = prepare_params(params)

    out = model_forward(x1, cn, cw)
    jax.block_until_ready(out)
    assert out.shape == (1, 28, 6, 6), out.shape
    assert out.dtype == jnp.float32
    assert bool(jnp.all(jnp.isfinite(out)))
    print("KERNEL_OK")
</pallas_src>

<mosaic_0001>
module attributes {stable_mosaic.version = 11 : i64} {
  func.func @_fused_forward_kernel(%arg0: memref<2x576xf32, #tpu.memory_space<vmem>>, %arg1: memref<232x80xf32, #tpu.memory_space<vmem>>, %arg2: memref<29x526xf32, #tpu.memory_space<vmem>>, %arg3: memref<28x36xf32, #tpu.memory_space<vmem>>, %arg4: memref<8x576xf32, #tpu.memory_space<vmem>>, %arg5: memref<72x504xf32, #tpu.memory_space<vmem>>, %arg6: memref<616x24xf32, #tpu.memory_space<vmem>>, %arg7: memref<56x169xf32, #tpu.memory_space<vmem>>, %arg8: memref<504x141xf32, #tpu.memory_space<vmem>>) attributes {dimension_semantics = [], scalar_prefetch = 0 : i64, scratch_operands = 5 : i64, tpu.core_type = #tpu.core_type<tc>} {
    %c0 = arith.constant 0 : index
    %c0_0 = arith.constant 0 : index
    %0 = vector.load %arg1[%c0, %c0_0] : memref<232x80xf32, #tpu.memory_space<vmem>>, vector<56x72xf32>
    %c0_1 = arith.constant 0 : index
    %c72 = arith.constant 72 : index
    %1 = vector.load %arg1[%c0_1, %c72] : memref<232x80xf32, #tpu.memory_space<vmem>>, vector<56x1xf32>
    %c56 = arith.constant 56 : index
    %c0_2 = arith.constant 0 : index
    %2 = vector.load %arg1[%c56, %c0_2] : memref<232x80xf32, #tpu.memory_space<vmem>>, vector<8x2xf32>
    %c56_3 = arith.constant 56 : index
    %c2 = arith.constant 2 : index
    %3 = vector.load %arg1[%c56_3, %c2] : memref<232x80xf32, #tpu.memory_space<vmem>>, vector<8x1xf32>
    %c64 = arith.constant 64 : index
    %c0_4 = arith.constant 0 : index
    %4 = vector.load %arg1[%c64, %c0_4] : memref<232x80xf32, #tpu.memory_space<vmem>>, vector<24x13xf32>
    %c88 = arith.constant 88 : index
    %c0_5 = arith.constant 0 : index
    %5 = vector.load %arg1[%c88, %c0_5] : memref<232x80xf32, #tpu.memory_space<vmem>>, vector<141x36xf32>
    %c0_6 = arith.constant 0 : index
    %c0_7 = arith.constant 0 : index
    %6 = vector.load %arg2[%c0_6, %c0_7] : memref<29x526xf32, #tpu.memory_space<vmem>>, vector<28x504xf32>
    %c0_8 = arith.constant 0 : index
    %c504 = arith.constant 504 : index
    %7 = vector.load %arg2[%c0_8, %c504] : memref<29x526xf32, #tpu.memory_space<vmem>>, vector<28x1xf32>
    %c28 = arith.constant 28 : index
    %c0_9 = arith.constant 0 : index
    %8 = vector.load %arg2[%c28, %c0_9] : memref<29x526xf32, #tpu.memory_space<vmem>>, vector<1x526xf32>
    %9 = vector.extract_strided_slice %2 {offsets = [0, 0], sizes = [8, 1], strides = [1, 1]} : vector<8x2xf32> to vector<8x1xf32>
    %c0_10 = arith.constant 0 : index
    %c0_11 = arith.constant 0 : index
    %10 = vector.load %arg0[%c0_10, %c0_11] : memref<2x576xf32, #tpu.memory_space<vmem>>, vector<1x576xf32>
    %11 = vector.broadcast %9 : vector<8x1xf32> to vector<8x576xf32>
    %12 = vector.broadcast %10 : vector<1x576xf32> to vector<8x576xf32>
    %13 = arith.mulf %11, %12 : vector<8x576xf32>
    %14 = vector.extract_strided_slice %2 {offsets = [0, 1], sizes = [8, 1], strides = [1, 1]} : vector<8x2xf32> to vector<8x1xf32>
    %c1 = arith.constant 1 : index
    %c0_12 = arith.constant 0 : index
    %15 = vector.load %arg0[%c1, %c0_12] : memref<2x576xf32, #tpu.memory_space<vmem>>, vector<1x576xf32>
    %16 = vector.broadcast %14 : vector<8x1xf32> to vector<8x576xf32>
    %17 = vector.broadcast %15 : vector<1x576xf32> to vector<8x576xf32>
    %18 = arith.mulf %16, %17 : vector<8x576xf32>
    %19 = arith.addf %13, %18 : vector<8x576xf32>
    %20 = vector.broadcast %3 : vector<8x1xf32> to vector<8x576xf32>
    %21 = arith.addf %19, %20 : vector<8x576xf32>
    %22 = vector.extract_strided_slice %21 {offsets = [0, 0], sizes = [8, 574], strides = [1, 1]} : vector<8x576xf32> to vector<8x574xf32>
    %23 = vector.extract_strided_slice %21 {offsets = [0, 1], sizes = [8, 574], strides = [1, 1]} : vector<8x576xf32> to vector<8x574xf32>
    %24 = arith.maximumf %22, %23 : vector<8x574xf32>
    %25 = vector.extract_strided_slice %21 {offsets = [0, 2], sizes = [8, 574], strides = [1, 1]} : vector<8x576xf32> to vector<8x574xf32>
    %26 = arith.maximumf %24, %25 : vector<8x574xf32>
    %27 = vector.extract_strided_slice %26 {offsets = [0, 0], sizes = [8, 526], strides = [1, 1]} : vector<8x574xf32> to vector<8x526xf32>
    %28 = vector.extract_strided_slice %26 {offsets = [0, 24], sizes = [8, 526], strides = [1, 1]} : vector<8x574xf32> to vector<8x526xf32>
    %29 = arith.maximumf %27, %28 : vector<8x526xf32>
    %30 = vector.extract_strided_slice %26 {offsets = [0, 48], sizes = [8, 526], strides = [1, 1]} : vector<8x574xf32> to vector<8x526xf32>
    %31 = arith.maximumf %29, %30 : vector<8x526xf32>
    %32 = vector.broadcast %8 : vector<1x526xf32> to vector<8x526xf32>
    %33 = arith.mulf %31, %32 : vector<8x526xf32>
    %cst = arith.constant 0.000000e+00 : f32
    %34 = vector.broadcast %cst : f32 to vector<8x576xf32>
    %c0_13 = arith.constant 0 : index
    %c0_14 = arith.constant 0 : index
    %35 = vector.load %arg4[%c0_13, %c0_14] : memref<8x576xf32, #tpu.memory_space<vmem>>, vector<8x576xf32>
    tpu.vector_store %arg4[%c0_13, %c0_14], %34 {strides = array<i32>} : memref<8x576xf32, #tpu.memory_space<vmem>>, vector<8x576xf32>,
    %c0_15 = arith.constant 0 : index
    %c25 = arith.constant 25 : index
    %36 = vector.load %arg4[%c0_15, %c25] : memref<8x576xf32, #tpu.memory_space<vmem>>, vector<8x526xf32>
    tpu.vector_store %arg4[%c0_15, %c25], %33 {strides = array<i32>} : memref<8x576xf32, #tpu.memory_space<vmem>>, vector<8x526xf32>,
    %c0_16 = arith.constant 0 : index
    %c0_17 = arith.constant 0 : index
    %37 = vector.load %arg4[%c0_16, %c0_17] : memref<8x576xf32, #tpu.memory_space<vmem>>, vector<8x504xf32>
    %c0_18 = arith.constant 0 : index
    %c0_19 = arith.constant 0 : index
    %38 = vector.load %arg5[%c0_18, %c0_19] : memref<72x504xf32, #tpu.memory_space<vmem>>, vector<8x504xf32>
    tpu.vector_store %arg5[%c0_18, %c0_19], %37 {strides = array<i32>} : memref<72x504xf32, #tpu.memory_space<vmem>>, vector<8x504xf32>,
    %c0_20 = arith.constant 0 : index
    %c1_21 = arith.constant 1 : index
    %39 = vector.load %arg4[%c0_20, %c1_21] : memref<8x576xf32, #tpu.memory_space<vmem>>, vector<8x504xf32>
    %c8 = arith.constant 8 : index
    %c0_22 = arith.constant 0 : index
    %40 = vector.load %arg5[%c8, %c0_22] : memref<72x504xf32, #tpu.memory_space<vmem>>, vector<8x504xf32>
    tpu.vector_store %arg5[%c8, %c0_22], %39 {strides = array<i32>} : memref<72x504xf32, #tpu.memory_space<vmem>>, vector<8x504xf32>,
    %c0_23 = arith.constant 0 : index
    %c2_24 = arith.constant 2 : index
    %41 = vector.load %arg4[%c0_23, %c2_24] : memref<8x576xf32, #tpu.memory_space<vmem>>, vector<8x504xf32>
    %c16 = arith.constant 16 : index
    %c0_25 = arith.constant 0 : index
    %42 = vector.load %arg5[%c16, %c0_25] : memref<72x504xf32, #tpu.memory_space<vmem>>, vector<8x504xf32>
    tpu.vector_store %arg5[%c16, %c0_25], %41 {strides = array<i32>} : memref<72x504xf32, #tpu.memory_space<vmem>>, vector<8x504xf32>,
    %c0_26 = arith.constant 0 : index
    %c24 = arith.constant 24 : index
    %43 = vector.load %arg4[%c0_26, %c24] : memref<8x576xf32, #tpu.memory_space<vmem>>, vector<8x504xf32>
    %c24_27 = arith.constant 24 : index
    %c0_28 = arith.constant 0 : index
    %44 = vector.load %arg5[%c24_27, %c0_28] : memref<72x504xf32, #tpu.memory_space<vmem>>, vector<8x504xf32>
    tpu.vector_store %arg5[%c24_27, %c0_28], %43 {strides = array<i32>} : memref<72x504xf32, #tpu.memory_space<vmem>>, vector<8x504xf32>,
    %c0_29 = arith.constant 0 : index
    %c25_30 = arith.constant 25 : index
    %45 = vector.load %arg4[%c0_29, %c25_30] : memref<8x576xf32, #tpu.memory_space<vmem>>, vector<8x504xf32>
    %c32 = arith.constant 32 : index
    %c0_31 = arith.constant 0 : index
    %46 = vector.load %arg5[%c32, %c0_31] : memref<72x504xf32, #tpu.memory_space<vmem>>, vector<8x504xf32>
    tpu.vector_store %arg5[%c32, %c0_31], %45 {strides = array<i32>} : memref<72x504xf32, #tpu.memory_space<vmem>>, vector<8x504xf32>,
    %c0_32 = arith.constant 0 : index
    %c26 = arith.constant 26 : index
    %47 = vector.load %arg4[%c0_32, %c26] : memref<8x576xf32, #tpu.memory_space<vmem>>, vector<8x504xf32>
    %c40 = arith.constant 40 : index
    %c0_33 = arith.constant 0 : index
    %48 = vector.load %arg5[%c40, %c0_33] : memref<72x504xf32, #tpu.memory_space<vmem>>, vector<8x504xf32>
    tpu.vector_store %arg5[%c40, %c0_33], %47 {strides = array<i32>} : memref<72x504xf32, #tpu.memory_space<vmem>>, vector<8x504xf32>,
    %c0_34 = arith.constant 0 : index
    %c48 = arith.constant 48 : index
    %49 = vector.load %arg4[%c0_34, %c48] : memref<8x576xf32, #tpu.memory_space<vmem>>, vector<8x504xf32>
    %c48_35 = arith.constant 48 : index
    %c0_36 = arith.constant 0 : index
    %50 = vector.load %arg5[%c48_35, %c0_36] : memref<72x504xf32, #tpu.memory_space<vmem>>, vector<8x504xf32>
    tpu.vector_store %arg5[%c48_35, %c0_36], %49 {strides = array<i32>} : memref<72x504xf32, #tpu.memory_space<vmem>>, vector<8x504xf32>,
    %c0_37 = arith.constant 0 : index
    %c49 = arith.constant 49 : index
    %51 = vector.load %arg4[%c0_37, %c49] : memref<8x576xf32, #tpu.memory_space<vmem>>, vector<8x504xf32>
    %c56_38 = arith.constant 56 : index
    %c0_39 = arith.constant 0 : index
    %52 = vector.load %arg5[%c56_38, %c0_39] : memref<72x504xf32, #tpu.memory_space<vmem>>, vector<8x504xf32>
    tpu.vector_store %arg5[%c56_38, %c0_39], %51 {strides = array<i32>} : memref<72x504xf32, #tpu.memory_space<vmem>>, vector<8x504xf32>,
    %c0_40 = arith.constant 0 : index
    %c50 = arith.constant 50 : index
    %53 = vector.load %arg4[%c0_40, %c50] : memref<8x576xf32, #tpu.memory_space<vmem>>, vector<8x504xf32>
    %c64_41 = arith.constant 64 : index
    %c0_42 = arith.constant 0 : index
    %54 = vector.load %arg5[%c64_41, %c0_42] : memref<72x504xf32, #tpu.memory_space<vmem>>, vector<8x504xf32>
    tpu.vector_store %arg5[%c64_41, %c0_42], %53 {strides = array<i32>} : memref<72x504xf32, #tpu.memory_space<vmem>>, vector<8x504xf32>,
    %c0_43 = arith.constant 0 : index
    %c0_44 = arith.constant 0 : index
    %55 = vector.load %arg5[%c0_43, %c0_44] : memref<72x504xf32, #tpu.memory_space<vmem>>, vector<72x504xf32>
    %cst_45 = arith.constant dense<0.000000e+00> : vector<56x504xf32>
    %56 = tpu.matmul %0, %55, %cst_45 {dimension_numbers = #tpu.dot_dimension_numbers<[1], [0], [0], [1], [0, 0, 1, 1], [], []>} : vector<56x72xf32>, vector<72x504xf32>, vector<56x504xf32> -> vector<56x504xf32>
    %57 = vector.broadcast %1 : vector<56x1xf32> to vector<56x504xf32>
    %58 = arith.addf %56, %57 : vector<56x504xf32>
    %59 = vector.extract_strided_slice %58 {offsets = [0, 0], sizes = [56, 24], strides = [1, 1]} : vector<56x504xf32> to vector<56x24xf32>
    %c0_46 = arith.constant 0 : index
    %c0_47 = arith.constant 0 : index
    %60 = vector.load %arg6[%c0_46, %c0_47] : memref<616x24xf32, #tpu.memory_space<vmem>>, vector<56x24xf32>
    tpu.vector_store %arg6[%c0_46, %c0_47], %59 {strides = array<i32>} : memref<616x24xf32, #tpu.memory_space<vmem>>, vector<56x24xf32>,
    %61 = vector.extract_strided_slice %58 {offsets = [0, 48], sizes = [56, 24], strides = [1, 1]} : vector<56x504xf32> to vector<56x24xf32>
    %c56_48 = arith.constant 56 : index
    %c0_49 = arith.constant 0 : index
    %62 = vector.load %arg6[%c56_48, %c0_49] : memref<616x24xf32, #tpu.memory_space<vmem>>, vector<56x24xf32>
    tpu.vector_store %arg6[%c56_48, %c0_49], %61 {strides = array<i32>} : memref<616x24xf32, #tpu.memory_space<vmem>>, vector<56x24xf32>,
    %63 = vector.extract_strided_slice %58 {offsets = [0, 96], sizes = [56, 24], strides = [1, 1]} : vector<56x504xf32> to vector<56x24xf32>
    %c112 = arith.constant 112 : index
    %c0_50 = arith.constant 0 : index
    %64 = vector.load %arg6[%c112, %c0_50] : memref<616x24xf32, #tpu.memory_space<vmem>>, vector<56x24xf32>
    tpu.vector_store %arg6[%c112, %c0_50], %63 {strides = array<i32>} : memref<616x24xf32, #tpu.memory_space<vmem>>, vector<56x24xf32>,
    %65 = vector.extract_strided_slice %58 {offsets = [0, 144], sizes = [56, 24], strides = [1, 1]} : vector<56x504xf32> to vector<56x24xf32>
    %c168 = arith.constant 168 : index
    %c0_51 = arith.constant 0 : index
    %66 = vector.load %arg6[%c168, %c0_51] : memref<616x24xf32, #tpu.memory_space<vmem>>, vector<56x24xf32>
    tpu.vector_store %arg6[%c168, %c0_51], %65 {strides = array<i32>} : memref<616x24xf32, #tpu.memory_space<vmem>>, vector<56x24xf32>,
    %67 = vector.extract_strided_slice %58 {offsets = [0, 192], sizes = [56, 24], strides = [1, 1]} : vector<56x504xf32> to vector<56x24xf32>
    %c224 = arith.constant 224 : index
    %c0_52 = arith.constant 0 : index
    %68 = vector.load %arg6[%c224, %c0_52] : memref<616x24xf32, #tpu.memory_space<vmem>>, vector<56x24xf32>
    tpu.vector_store %arg6[%c224, %c0_52], %67 {strides = array<i32>} : memref<616x24xf32, #tpu.memory_space<vmem>>, vector<56x24xf32>,
    %69 = vector.extract_strided_slice %58 {offsets = [0, 240], sizes = [56, 24], strides = [1, 1]} : vector<56x504xf32> to vector<56x24xf32>
    %c280 = arith.constant 280 : index
    %c0_53 = arith.constant 0 : index
    %70 = vector.load %arg6[%c280, %c0_53] : memref<616x24xf32, #tpu.memory_space<vmem>>, vector<56x24xf32>
    tpu.vector_store %arg6[%c280, %c0_53], %69 {strides = array<i32>} : memref<616x24xf32, #tpu.memory_space<vmem>>, vector<56x24xf32>,
    %71 = vector.extract_strided_slice %58 {offsets = [0, 288], sizes = [56, 24], strides = [1, 1]} : vector<56x504xf32> to vector<56x24xf32>
    %c336 = arith.constant 336 : index
    %c0_54 = arith.constant 0 : index
    %72 = vector.load %arg6[%c336, %c0_54] : memref<616x24xf32, #tpu.memory_space<vmem>>, vector<56x24xf32>
    tpu.vector_store %arg6[%c336, %c0_54], %71 {strides = array<i32>} : memref<616x24xf32, #tpu.memory_space<vmem>>, vector<56x24xf32>,
    %73 = vector.extract_strided_slice %58 {offsets = [0, 336], sizes = [56, 24], strides = [1, 1]} : vector<56x504xf32> to vector<56x24xf32>
    %c392 = arith.constant 392 : index
    %c0_55 = arith.constant 0 : index
    %74 = vector.load %arg6[%c392, %c0_55] : memref<616x24xf32, #tpu.memory_space<vmem>>, vector<56x24xf32>
    tpu.vector_store %arg6[%c392, %c0_55], %73 {strides = array<i32>} : memref<616x24xf32, #tpu.memory_space<vmem>>, vector<56x24xf32>,
    %75 = vector.extract_strided_slice %58 {offsets = [0, 384], sizes = [56, 24], strides = [1, 1]} : vector<56x504xf32> to vector<56x24xf32>
    %c448 = arith.constant 448 : index
    %c0_56 = arith.constant 0 : index
    %76 = vector.load %arg6[%c448, %c0_56] : memref<616x24xf32, #tpu.memory_space<vmem>>, vector<56x24xf32>
    tpu.vector_store %arg6[%c448, %c0_56], %75 {strides = array<i32>} : memref<616x24xf32, #tpu.memory_space<vmem>>, vector<56x24xf32>,
    %77 = vector.extract_strided_slice %58 {offsets = [0, 432], sizes = [56, 24], strides = [1, 1]} : vector<56x504xf32> to vector<56x24xf32>
    %c504_57 = arith.constant 504 : index
    %c0_58 = arith.constant 0 : index
    %78 = vector.load %arg6[%c504_57, %c0_58] : memref<616x24xf32, #tpu.memory_space<vmem>>, vector<56x24xf32>
    tpu.vector_store %arg6[%c504_57, %c0_58], %77 {strides = array<i32>} : memref<616x24xf32, #tpu.memory_space<vmem>>, vector<56x24xf32>,
    %79 = vector.extract_strided_slice %58 {offsets = [0, 480], sizes = [56, 24], strides = [1, 1]} : vector<56x504xf32> to vector<56x24xf32>
    %c560 = arith.constant 560 : index
    %c0_59 = arith.constant 0 : index
    %80 = vector.load %arg6[%c560, %c0_59] : memref<616x24xf32, #tpu.memory_space<vmem>>, vector<56x24xf32>
    tpu.vector_store %arg6[%c560, %c0_59], %79 {strides = array<i32>} : memref<616x24xf32, #tpu.memory_space<vmem>>, vector<56x24xf32>,
    %c0_60 = arith.constant 0 : index
    %c0_61 = arith.constant 0 : index
    %81 = vector.load %arg6[%c0_60, %c0_61] : memref<616x24xf32, #tpu.memory_space<vmem>>, vector<616x24xf32>
    %cst_62 = arith.constant dense<0.000000e+00> : vector<616x13xf32>
    %82 = tpu.matmul %81, %4, %cst_62 {dimension_numbers = #tpu.dot_dimension_numbers<[1], [0], [0], [1], [0, 0, 1, 1], [], []>} : vector<616x24xf32>, vector<24x13xf32>, vector<616x13xf32> -> vector<616x13xf32>
    %cst_63 = arith.constant 0.000000e+00 : f32
    %83 = vector.broadcast %cst_63 : f32 to vector<56x169xf32>
    %c0_64 = arith.constant 0 : index
    %c0_65 = arith.constant 0 : index
    %84 = vector.load %arg7[%c0_64, %c0_65] : memref<56x169xf32, #tpu.memory_space<vmem>>, vector<56x169xf32>
    tpu.vector_store %arg7[%c0_64, %c0_65], %83 {strides = array<i32>} : memref<56x169xf32, #tpu.memory_space<vmem>>, vector<56x169xf32>,
    %85 = vector.extract_strided_slice %82 {offsets = [0, 0], sizes = [56, 13], strides = [1, 1]} : vector<616x13xf32> to vector<56x13xf32>
    %c0_66 = arith.constant 0 : index
    %c13 = arith.constant 13 : index
    %86 = vector.load %arg7[%c0_66, %c13] : memref<56x169xf32, #tpu.memory_space<vmem>>, vector<56x13xf32>
    tpu.vector_store %arg7[%c0_66, %c13], %85 {strides = array<i32>} : memref<56x169xf32, #tpu.memory_space<vmem>>, vector<56x13xf32>,
    %87 = vector.extract_strided_slice %82 {offsets = [56, 0], sizes = [56, 13], strides = [1, 1]} : vector<616x13xf32> to vector<56x13xf32>
    %c0_67 = arith.constant 0 : index
    %c26_68 = arith.constant 26 : index
    %88 = vector.load %arg7[%c0_67, %c26_68] : memref<56x169xf32, #tpu.memory_space<vmem>>, vector<56x13xf32>
    tpu.vector_store %arg7[%c0_67, %c26_68], %87 {strides = array<i32>} : memref<56x169xf32, #tpu.memory_space<vmem>>, vector<56x13xf32>,
    %89 = vector.extract_strided_slice %82 {offsets = [112, 0], sizes = [56, 13], strides = [1, 1]} : vector<616x13xf32> to vector<56x13xf32>
    %c0_69 = arith.constant 0 : index
    %c39 = arith.constant 39 : index
    %90 = vector.load %arg7[%c0_69, %c39] : memref<56x169xf32, #tpu.memory_space<vmem>>, vector<56x13xf32>
    tpu.vector_store %arg7[%c0_69, %c39], %89 {strides = array<i32>} : memref<56x169xf32, #tpu.memory_space<vmem>>, vector<56x13xf32>,
    %91 = vector.extract_strided_slice %82 {offsets = [168, 0], sizes = [56, 13], strides = [1, 1]} : vector<616x13xf32> to vector<56x13xf32>
    %c0_70 = arith.constant 0 : index
    %c52 = arith.constant 52 : index
    %92 = vector.load %arg7[%c0_70, %c52] : memref<56x169xf32, #tpu.memory_space<vmem>>, vector<56x13xf32>
    tpu.vector_store %arg7[%c0_70, %c52], %91 {strides = array<i32>} : memref<56x169xf32, #tpu.memory_space<vmem>>, vector<56x13xf32>,
    %93 = vector.extract_strided_slice %82 {offsets = [224, 0], sizes = [56, 13], strides = [1, 1]} : vector<616x13xf32> to vector<56x13xf32>
    %c0_71 = arith.constant 0 : index
    %c65 = arith.constant 65 : index
    %94 = vector.load %arg7[%c0_71, %c65] : memref<56x169xf32, #tpu.memory_space<vmem>>, vector<56x13xf32>
    tpu.vector_store %arg7[%c0_71, %c65], %93 {strides = array<i32>} : memref<56x169xf32, #tpu.memory_space<vmem>>, vector<56x13xf32>,
    %95 = vector.extract_strided_slice %82 {offsets = [280, 0], sizes = [56, 13], strides = [1, 1]} : vector<616x13xf32> to vector<56x13xf32>
    %c0_72 = arith.constant 0 : index
    %c78 = arith.constant 78 : index
    %96 = vector.load %arg7[%c0_72, %c78] : memref<56x169xf32, #tpu.memory_space<vmem>>, vector<56x13xf32>
    tpu.vector_store %arg7[%c0_72, %c78], %95 {strides = array<i32>} : memref<56x169xf32, #tpu.memory_space<vmem>>, vector<56x13xf32>,
    %97 = vector.extract_strided_slice %82 {offsets = [336, 0], sizes = [56, 13], strides = [1, 1]} : vector<616x13xf32> to vector<56x13xf32>
    %c0_73 = arith.constant 0 : index
    %c91 = arith.constant 91 : index
    %98 = vector.load %arg7[%c0_73, %c91] : memref<56x169xf32, #tpu.memory_space<vmem>>, vector<56x13xf32>
    tpu.vector_store %arg7[%c0_73, %c91], %97 {strides = array<i32>} : memref<56x169xf32, #tpu.memory_space<vmem>>, vector<56x13xf32>,
    %99 = vector.extract_strided_slice %82 {offsets = [392, 0], sizes = [56, 13], strides = [1, 1]} : vector<616x13xf32> to vector<56x13xf32>
    %c0_74 = arith.constant 0 : index
    %c104 = arith.constant 104 : index
    %100 = vector.load %arg7[%c0_74, %c104] : memref<56x169xf32, #tpu.memory_space<vmem>>, vector<56x13xf32>
    tpu.vector_store %arg7[%c0_74, %c104], %99 {strides = array<i32>} : memref<56x169xf32, #tpu.memory_space<vmem>>, vector<56x13xf32>,
    %101 = vector.extract_strided_slice %82 {offsets = [448, 0], sizes = [56, 13], strides = [1, 1]} : vector<616x13xf32> to vector<56x13xf32>
    %c0_75 = arith.constant 0 : index
    %c117 = arith.constant 117 : index
    %102 = vector.load %arg7[%c0_75, %c117] : memref<56x169xf32, #tpu.memory_space<vmem>>, vector<56x13xf32>
    tpu.vector_store %arg7[%c0_75, %c117], %101 {strides = array<i32>} : memref<56x169xf32, #tpu.memory_space<vmem>>, vector<56x13xf32>,
    %103 = vector.extract_strided_slice %82 {offsets = [504, 0], sizes = [56, 13], strides = [1, 1]} : vector<616x13xf32> to vector<56x13xf32>
    %c0_76 = arith.constant 0 : index
    %c130 = arith.constant 130 : index
    %104 = vector.load %arg7[%c0_76, %c130] : memref<56x169xf32, #tpu.memory_space<vmem>>, vector<56x13xf32>
    tpu.vector_store %arg7[%c0_76, %c130], %103 {strides = array<i32>} : memref<56x169xf32, #tpu.memory_space<vmem>>, vector<56x13xf32>,
    %105 = vector.extract_strided_slice %82 {offsets = [560, 0], sizes = [56, 13], strides = [1, 1]} : vector<616x13xf32> to vector<56x13xf32>
    %c0_77 = arith.constant 0 : index
    %c143 = arith.constant 143 : index
    %106 = vector.load %arg7[%c0_77, %c143] : memref<56x169xf32, #tpu.memory_space<vmem>>, vector<56x13xf32>
    tpu.vector_store %arg7[%c0_77, %c143], %105 {strides = array<i32>} : memref<56x169xf32, #tpu.memory_space<vmem>>, vector<56x13xf32>,
    %c0_78 = arith.constant 0 : index
    %c0_79 = arith.constant 0 : index
    %107 = vector.load %arg7[%c0_78, %c0_79] : memref<56x169xf32, #tpu.memory_space<vmem>>, vector<56x141xf32>
    %c0_80 = arith.constant 0 : index
    %c0_81 = arith.constant 0 : index
    %108 = vector.load %arg8[%c0_80, %c0_81] : memref<504x141xf32, #tpu.memory_space<vmem>>, vector<56x141xf32>
    tpu.vector_store %arg8[%c0_80, %c0_81], %107 {strides = array<i32>} : memref<504x141xf32, #tpu.memory_space<vmem>>, vector<56x141xf32>,
    %c0_82 = arith.constant 0 : index
    %c1_83 = arith.constant 1 : index
    %109 = vector.load %arg7[%c0_82, %c1_83] : memref<56x169xf32, #tpu.memory_space<vmem>>, vector<56x141xf32>
    %c56_84 = arith.constant 56 : index
    %c0_85 = arith.constant 0 : index
    %110 = vector.load %arg8[%c56_84, %c0_85] : memref<504x141xf32, #tpu.memory_space<vmem>>, vector<56x141xf32>
    tpu.vector_store %arg8[%c56_84, %c0_85], %109 {strides = array<i32>} : memref<504x141xf32, #tpu.memory_space<vmem>>, vector<56x141xf32>,
    %c0_86 = arith.constant 0 : index
    %c2_87 = arith.constant 2 : index
    %111 = vector.load %arg7[%c0_86, %c2_87] : memref<56x169xf32, #tpu.memory_space<vmem>>, vector<56x141xf32>
    %c112_88 = arith.constant 112 : index
    %c0_89 = arith.constant 0 : index
    %112 = vector.load %arg8[%c112_88, %c0_89] : memref<504x141xf32, #tpu.memory_space<vmem>>, vector<56x141xf32>
    tpu.vector_store %arg8[%c112_88, %c0_89], %111 {strides = array<i32>} : memref<504x141xf32, #tpu.memory_space<vmem>>, vector<56x141xf32>,
    %c0_90 = arith.constant 0 : index
    %c13_91 = arith.constant 13 : index
    %113 = vector.load %arg7[%c0_90, %c13_91] : memref<56x169xf32, #tpu.memory_space<vmem>>, vector<56x141xf32>
    %c168_92 = arith.constant 168 : index
    %c0_93 = arith.constant 0 : index
    %114 = vector.load %arg8[%c168_92, %c0_93] : memref<504x141xf32, #tpu.memory_space<vmem>>, vector<56x141xf32>
    tpu.vector_store %arg8[%c168_92, %c0_93], %113 {strides = array<i32>} : memref<504x141xf32, #tpu.memory_space<vmem>>, vector<56x141xf32>,
    %c0_94 = arith.constant 0 : index
    %c14 = arith.constant 14 : index
    %115 = vector.load %arg7[%c0_94, %c14] : memref<56x169xf32, #tpu.memory_space<vmem>>, vector<56x141xf32>
    %c224_95 = arith.constant 224 : index
    %c0_96 = arith.constant 0 : index
    %116 = vector.load %arg8[%c224_95, %c0_96] : memref<504x141xf32, #tpu.memory_space<vmem>>, vector<56x141xf32>
    tpu.vector_store %arg8[%c224_95, %c0_96], %115 {strides = array<i32>} : memref<504x141xf32, #tpu.memory_space<vmem>>, vector<56x141xf32>,
    %c0_97 = arith.constant 0 : index
    %c15 = arith.constant 15 : index
    %117 = vector.load %arg7[%c0_97, %c15] : memref<56x169xf32, #tpu.memory_space<vmem>>, vector<56x141xf32>
    %c280_98 = arith.constant 280 : index
    %c0_99 = arith.constant 0 : index
    %118 = vector.load %arg8[%c280_98, %c0_99] : memref<504x141xf32, #tpu.memory_space<vmem>>, vector<56x141xf32>
    tpu.vector_store %arg8[%c280_98, %c0_99], %117 {strides = array<i32>} : memref<504x141xf32, #tpu.memory_space<vmem>>, vector<56x141xf32>,
    %c0_100 = arith.constant 0 : index
    %c26_101 = arith.constant 26 : index
    %119 = vector.load %arg7[%c0_100, %c26_101] : memref<56x169xf32, #tpu.memory_space<vmem>>, vector<56x141xf32>
    %c336_102 = arith.constant 336 : index
    %c0_103 = arith.constant 0 : index
    %120 = vector.load %arg8[%c336_102, %c0_103] : memref<504x141xf32, #tpu.memory_space<vmem>>, vector<56x141xf32>
    tpu.vector_store %arg8[%c336_102, %c0_103], %119 {strides = array<i32>} : memref<504x141xf32, #tpu.memory_space<vmem>>, vector<56x141xf32>,
    %c0_104 = arith.constant 0 : index
    %c27 = arith.constant 27 : index
    %121 = vector.load %arg7[%c0_104, %c27] : memref<56x169xf32, #tpu.memory_space<vmem>>, vector<56x141xf32>
    %c392_105 = arith.constant 392 : index
    %c0_106 = arith.constant 0 : index
    %122 = vector.load %arg8[%c392_105, %c0_106] : memref<504x141xf32, #tpu.memory_space<vmem>>, vector<56x141xf32>
    tpu.vector_store %arg8[%c392_105, %c0_106], %121 {strides = array<i32>} : memref<504x141xf32, #tpu.memory_space<vmem>>, vector<56x141xf32>,
    %c0_107 = arith.constant 0 : index
    %c28_108 = arith.constant 28 : index
    %123 = vector.load %arg7[%c0_107, %c28_108] : memref<56x169xf32, #tpu.memory_space<vmem>>, vector<56x141xf32>
    %c448_109 = arith.constant 448 : index
    %c0_110 = arith.constant 0 : index
    %124 = vector.load %arg8[%c448_109, %c0_110] : memref<504x141xf32, #tpu.memory_space<vmem>>, vector<56x141xf32>
    tpu.vector_store %arg8[%c448_109, %c0_110], %123 {strides = array<i32>} : memref<504x141xf32, #tpu.memory_space<vmem>>, vector<56x141xf32>,
    %c0_111 = arith.constant 0 : index
    %c0_112 = arith.constant 0 : index
    %125 = vector.load %arg8[%c0_111, %c0_112] : memref<504x141xf32, #tpu.memory_space<vmem>>, vector<504x141xf32>
    %cst_113 = arith.constant dense<0.000000e+00> : vector<28x141xf32>
    %126 = tpu.matmul %6, %125, %cst_113 {dimension_numbers = #tpu.dot_dimension_numbers<[1], [0], [0], [1], [0, 0, 1, 1], [], []>} : vector<28x504xf32>, vector<504x141xf32>, vector<28x141xf32> -> vector<28x141xf32>
    %127 = vector.broadcast %7 : vector<28x1xf32> to vector<28x141xf32>
    %128 = arith.addf %126, %127 : vector<28x141xf32>
    %cst_114 = arith.constant dense<0.000000e+00> : vector<28x36xf32>
    %129 = tpu.matmul %128, %5, %cst_114 {dimension_numbers = #tpu.dot_dimension_numbers<[1], [0], [0], [1], [0, 0, 1, 1], [], []>} : vector<28x141xf32>, vector<141x36xf32>, vector<28x36xf32> -> vector<28x36xf32>
    %c0_115 = arith.constant 0 : index
    %c0_116 = arith.constant 0 : index
    %130 = vector.load %arg3[%c0_115, %c0_116] : memref<28x36xf32, #tpu.memory_space<vmem>>, vector<28x36xf32>
    tpu.vector_store %arg3[%c0_115, %c0_116], %129 {strides = array<i32>} : memref<28x36xf32, #tpu.memory_space<vmem>>, vector<28x36xf32>,
    return
  }
}

</mosaic_0001>

<bundles_post_ra>
// kernel: model_forward.1
= control target key start
LH: loop header
LB: loop body
LE: loop exit
PB: predicated region body
PF: predicated region fallthrough
CT: control target
= control target key end

     0   :  { %v4261_v0 = vmov 0   ;;  %v4262_v2 = vmov 2   ;;  %v4263_v3 = vmov 1   ;;  %v70_v4 = vlaneseq  ;;  %s4265_s18 = smov 126   ;;  %s4266_s19 = smov 104   ;;  %s6307_s1 = inlined_call_operand.vmem [shape: f32[232,80], index: 1, kind: input, shape index: {}]   ;;  %s6308_s0 = inlined_call_operand.vmem [shape: f32[2,576], index: 0, kind: input, shape index: {}]   ;;  %s6309_s2 = inlined_call_operand.vmem [shape: f32[29,526], index: 2, kind: input, shape index: {}]   ;;  %s6310_s3 = inlined_call_operand.vmem [shape: f32[28,36], index: 3, kind: output, shape index: {}]  }
   0x1   :  { %4253 = vset.pattern.permute.xlu0 %v4261_v0  ;;  %v21_v1 = vld [vmem:[%s6307_s1 + $0x38] sm:$0xff]  ;;  %4255 = vset.pattern.permute.xlu1 %v4262_v2  ;;  %v63_v8 = vld [vmem:[%s6308_s0] ss:$2 sm:$0x1f]  ;;  %vm166_vm0 = vcmask 1039360   ;;  %vm191_vm1 = vcmask 1031168  }
   0x2   :  { %66 = vperm.xlu0 %4253, %v21_v1   ;;  %143 = vperm.xlu1 %4255, %v21_v1   ;;  %v71_v5 = vshrl.u32 %v70_v4, 7  ;;  %v3590_v9 = vld [vmem:[%s6308_s0 + $0x1] ss:$2 sm:$0x1f]  ;;  %s4264_s0 = smov 127   ;;  %s4267_s20 = smov 80  }
   0x3   :  { %vm221_vm2 = vcmask 850944   ;;  %vm246_vm3 = vcmask 654336   ;;  %s4269_s25 = smov 25   ;;  %vm323_vm4 = vcmask 1047752   ;;  %vm313_vm5 = vcmask 203776   ;;  %s4270_s26 = smov 102  }
   0x4   :  { %v4322_v6 = vsub.s32 2, %v71_v5  ;;  %v4324_v7 = vsub.s32 0, %v71_v5  ;;  %v4332_v11 = vsub.s32 4, %v71_v5  ;;  %v4334_v12 = vsub.s32 1, %v71_v5  ;;  %s4271_s27 = smov 103   ;;  %s4272_s28 = smov 79  }
   0x5   :  { %v4342_v19 = vsub.s32 3, %v71_v5  ;;  %vm296_vm6 = vcmask 523264   ;;  %s4273_s29 = smov 78   ;;  %vm337_vm7 = vcmask 982016   ;;  %vm445_vm8 = vcmask 842752   ;;  %s4279_s30 = smov 64  }
   0x6   :  { %4254 = vset.pattern.permute.xlu0 %v4263_v3  ;;  %v81_v13 = vrot.slane %v63_v8, %v4322_v6  ;;  %v73_v14 = vrot.slane %v63_v8, %v4324_v7  ;;  %v118_v15 = vrot.slane %v3590_v9, %v4322_v6  ;;  %v110_v16 = vrot.slane %v3590_v9, %v4324_v7  ;;  %s4280_s4 = smov 16   ;;  %s4281_s5 = smov 48  }
   0x7   :  { %103 = vperm.xlu0 %4254, %v21_v1   ;;  %v126_v17 = vrot.slane %v3590_v9, %v4332_v11  ;;  %v114_v18 = vrot.slane %v3590_v9, %v4334_v12  ;;  %v89_v20 = vrot.slane %v63_v8, %v4332_v11  ;;  %v77_v21 = vrot.slane %v63_v8, %v4334_v12  ;;  %s4282_s6 = smov 96   ;;  %s4283_s7 = smov 13  }
   0x8   :  { %v122_v25 = vrot.slane %v3590_v9, %v4342_v19  ;;  %v85_v31 = vrot.slane %v63_v8, %v4342_v19  ;;  %vm478_vm9 = vcmask 834560   ;;  %vm543_vm10 = vcmask 646144   ;;  %s4285_s8 = smov 117   ;;  %s4286_s9 = smov 39  }
   0x9   :  { %vm328_vm11 = vcmask 318464   ;;  %vm576_vm12 = vcmask 637952   ;;  %vm660_vm13 = vcmask 588800   ;;  %vm4276_vm14 = vmmov 0   ;;  %s4287_s10 = smov 2   ;;  %s4288_s11 = smov 52  }
   0xa   :  { %vm889_vm15 = vcmask 195584   ;;  %s4289_s12 = smov 15   ;;  %s4290_s13 = smov 65  }
   0xb   :  { %s4291_s14 = smov 91   ;;  %s4294_s15 = smov 113  }
   0xc   :  { %s4295_s16 = smov 101  }
  0x81   :  { %v67_v10 = vpop.permute.xlu0 %66  ;;  %v144_v30 = vpop.permute.xlu1 %143 }
  0x82   :  { %v97_v23 = vmul.f32 %v81_v13, %v67_v10  ;;  %v95_v24 = vmul.f32 %v73_v14, %v67_v10  ;;  %v99_v34 = vmul.f32 %v89_v20, %v67_v10  ;;  %v96_v35 = vmul.f32 %v77_v21, %v67_v10 }
  0x83   :  { %v98_v41 = vmul.f32 %v85_v31, %v67_v10  ;;  %v4268_v10 = vmov 0.0  }
  0x84   :  { %292 = vst [vmem:[#allocation2] sm:$0xff] %v4268_v10  ;;  %1964 = vst [vmem:[#allocation5] sm:$0xff] %v4268_v10  ;;  %739 = vmatprep.mubr.f32.mxu0 %v4268_v10  ;;  %846 = vmatprep.mubr.f32.mxu1 %v4268_v10 }
  0x85   :  { %1967 = vst [vmem:[#allocation5 + $0x10] sm:$0xff] %v4268_v10  ;;  %1969 = vst [vmem:[#allocation5 + $0x20] sm:$0xff] %v4268_v10 }
  0x86   :  { %v104_v22 = vpop.permute.xlu0 %103  ;;  %1971 = vst [vmem:[#allocation5 + $0x30] sm:$0xff] %v4268_v10  ;;  %1973 = vst [vmem:[#allocation5 + $0x40] sm:$0xff] %v4268_v10 }
  0x87   :  { %v134_v26 = vmul.f32 %v118_v15, %v104_v22  ;;  %v132_v27 = vmul.f32 %v110_v16, %v104_v22  ;;  %v136_v28 = vmul.f32 %v126_v17, %v104_v22  ;;  %v133_v29 = vmul.f32 %v114_v18, %v104_v22  ;;  %1975 = vst [vmem:[#allocation5 + $0x50] sm:$0xff] %v4268_v10  ;;  %v3588_v16 = vld [vmem:[%s6309_s2 + $0x7c] ss:$8 sm:$0xf] }
  0x88   :  { %v135_v36 = vmul.f32 %v122_v25, %v104_v22  ;;  %1977 = vst [vmem:[#allocation5 + $0x60] sm:$0xff] %v4268_v10  ;;  %v3589_v17 = vld [vmem:[%s6309_s2 + $0x7c] ss:$8 sm:$0x10]  ;;  %297 = vst.msk [vmem:[#allocation2 + $0x20] sm:$0xff] %vm296_vm6, %v4268_v10  ;;  %vm2297_vm6 = vcmask 15360  }
  0x89   :  { %v139_v32 = vadd.f32 %v134_v26, %v97_v23  ;;  %v137_v33 = vadd.f32 %v132_v27, %v95_v24  ;;  %v141_v39 = vadd.f32 %v136_v28, %v99_v34  ;;  %v138_v40 = vadd.f32 %v133_v29, %v96_v35 }
  0x8a   :  { %v140_v44 = vadd.f32 %v135_v36, %v98_v41  ;;  %v4401_v21 = vor.u32 %v3589_v17, %v3588_v16 }
  0x8b   :  { %v148_v37 = vadd.f32 %v144_v30, %v139_v32  ;;  %v146_v38 = vadd.f32 %v144_v30, %v137_v33  ;;  %v4350_v42 = vadd.f32 %v144_v30, %v141_v39  ;;  %v147_v43 = vadd.f32 %v144_v30, %v138_v40 }
  0x8c   :  { %v149_v45 = vadd.f32 %v144_v30, %v140_v44  ;;  %v269_v28 = vrot.slane %v4401_v21, %v4334_v12  ;;  %v265_v29 = vrot.slane %v4401_v21, %v4324_v7  ;;  %v273_v39 = vrot.slane %v4401_v21, %v4322_v6 }
  0x8d   :  { %160 = vrot.lane.b32.xlu0 %v148_v37, %s4264_s0  ;;  %156 = vrot.lane.b32.xlu1 %v146_v38, %s4264_s0 }
  0x91   :  { %164 = vrot.lane.b32.xlu0 %v4350_v42, %s4264_s0  ;;  %158 = vrot.lane.b32.xlu1 %v147_v43, %s4264_s0 }
  0x95   :  { %183 = vrot.lane.b32.xlu0 %v147_v43, %s4265_s18  ;;  %162 = vrot.lane.b32.xlu1 %v149_v45, %s4264_s0 }
  0x99   :  { %187 = vrot.lane.b32.xlu0 %v149_v45, %s4265_s18  ;;  %181 = vrot.lane.b32.xlu1 %v146_v38, %s4265_s18 }
  0x9d   :  { %185 = vrot.lane.b32.xlu1 %v148_v37, %s4265_s18 }
  0xa1   :  { %189 = vrot.lane.b32.xlu1 %v4350_v42, %s4265_s18 }
  0xff   :  { %v161_v46 = vpop.permute.xlu0 %160  ;;  %v157_v47 = vpop.permute.xlu1 %156 }
 0x103   :  { %v4362_v48 = vpop.permute.xlu0 %164  ;;  %v159_v49 = vpop.permute.xlu1 %158 }
 0x104   :  { %v167_v51 = vsel %vm166_vm0, %v157_v47, %v159_v49  ;;  %v168_v55 = vsel %vm166_vm0, %v159_v49, %v161_v46  ;;  %v180_v7 = vmax.f32 %v4350_v42, %v4362_v48 }
 0x105   :  { %v176_v53 = vmax.f32 %v146_v38, %v167_v51  ;;  %v177_v59 = vmax.f32 %v147_v43, %v168_v55 }
 0x107   :  { %v163_v50 = vpop.permute.xlu1 %162  ;;  %v184_v52 = vpop.permute.xlu0 %183 }
 0x108   :  { %v169_v56 = vsel %vm166_vm0, %v161_v46, %v163_v50  ;;  %v170_v63 = vsel %vm166_vm0, %v163_v50, %v4362_v48 }
 0x109   :  { %v178_v60 = vmax.f32 %v148_v37, %v169_v56  ;;  %v179_v4 = vmax.f32 %v149_v45, %v170_v63 }
 0x10b   :  { %v182_v54 = vpop.permute.xlu1 %181  ;;  %v188_v61 = vpop.permute.xlu0 %187 }
 0x10c   :  { %v192_v57 = vsel %vm191_vm1, %v182_v54, %v184_v52 }
 0x10d   :  { %v201_v58 = vmax.f32 %v176_v53, %v192_v57  ;;  %v281_v57 = vrot.slane %v4401_v21, %v4332_v11 }
 0x10f   :  { %211 = vrot.lane.b32.xlu0 %v201_v58, %s4266_s19  ;;  %v186_v62 = vpop.permute.xlu1 %185 }
 0x110   :  { %v193_v0 = vsel %vm191_vm1, %v184_v52, %v186_v62  ;;  %v194_v1 = vsel %vm191_vm1, %v186_v62, %v188_v61  ;;  %v277_v52 = vrot.slane %v4401_v21, %v4342_v19  ;;  %v4274_v62 = vmov 72  }
 0x111   :  { %v203_v2 = vmax.f32 %v178_v60, %v194_v1  ;;  %v202_v3 = vmax.f32 %v177_v59, %v193_v0  ;;  %4256 = vset.pattern.permute.xlu1 %v4274_v62  ;;  %4257 = vset.pattern.permute.xlu0 %v4274_v62 }
 0x113   :  { %215 = vrot.lane.b32.xlu0 %v203_v2, %s4266_s19  ;;  %213 = vrot.lane.b32.xlu1 %v202_v3, %s4266_s19  ;;  %v190_v5 = vpop.permute.xlu1 %189 }
 0x114   :  { %v195_v8 = vsel %vm191_vm1, %v188_v61, %v190_v5  ;;  %v205_v41 = vmax.f32 %v180_v7, %v190_v5 }
 0x115   :  { %v4376_v9 = vmax.f32 %v179_v4, %v195_v8 }
 0x117   :  { %236 = vrot.lane.b32.xlu0 %v201_v58, %s4267_s20  ;;  %217 = vrot.lane.b32.xlu1 %v4376_v9, %s4266_s19 }
 0x11b   :  { %240 = vrot.lane.b32.xlu0 %v203_v2, %s4267_s20  ;;  %238 = vrot.lane.b32.xlu1 %v202_v3, %s4267_s20 }
 0x11f   :  { %242 = vrot.lane.b32.xlu1 %v4376_v9, %s4267_s20 }
 0x181   :  { %v212_v13 = vpop.permute.xlu0 %211 }
 0x185   :  { %v216_v14 = vpop.permute.xlu0 %215  ;;  %v214_v15 = vpop.permute.xlu1 %213 }
 0x186   :  { %v222_v22 = vsel %vm221_vm2, %v212_v13, %v214_v15  ;;  %v223_v23 = vsel %vm221_vm2, %v214_v15, %v216_v14 }
 0x187   :  { %v231_v24 = vmax.f32 %v201_v58, %v222_v22  ;;  %v232_v25 = vmax.f32 %v202_v3, %v223_v23 }
 0x189   :  { %v237_v18 = vpop.permute.xlu0 %236  ;;  %v218_v20 = vpop.permute.xlu1 %217 }
 0x18a   :  { %v224_v30 = vsel %vm221_vm2, %v216_v14, %v218_v20 }
 0x18b   :  { %v233_v35 = vmax.f32 %v203_v2, %v224_v30 }
 0x18d   :  { %v241_v26 = vpop.permute.xlu0 %240  ;;  %v239_v27 = vpop.permute.xlu1 %238 }
 0x18e   :  { %v247_v31 = vsel %vm246_vm3, %v237_v18, %v239_v27  ;;  %v248_v32 = vsel %vm246_vm3, %v239_v27, %v241_v26 }
 0x18f   :  { %v256_v33 = vmax.f32 %v231_v24, %v247_v31  ;;  %v257_v34 = vmax.f32 %v232_v25, %v248_v32 }
 0x191   :  { %v243_v36 = vpop.permute.xlu1 %242  ;;  %v288_v37 = vmul.f32 %v269_v28, %v257_v34  ;;  %v287_v38 = vmul.f32 %v265_v29, %v256_v33 }
 0x192   :  { %v249_v12 = vsel %vm246_vm3, %v241_v26, %v243_v36 }
 0x193   :  { %v258_v40 = vmax.f32 %v233_v35, %v249_v12  ;;  %305 = vrot.lane.b32.xlu1 %v288_v37, %s4269_s25  ;;  %303 = vrot.lane.b32.xlu0 %v287_v38, %s4269_s25 }
 0x195   :  { %v289_v43 = vmul.f32 %v273_v39, %v258_v40 }
 0x197   :  { %219 = vrot.lane.b32.xlu1 %v205_v41, %s4266_s19  ;;  %307 = vrot.lane.b32.xlu0 %v289_v43, %s4269_s25 }
 0x19b   :  { %244 = vrot.lane.b32.xlu0 %v205_v41, %s4267_s20 }
 0x205   :  { %v304_v6 = vpop.permute.xlu0 %303  ;;  %v306_v44 = vpop.permute.xlu1 %305 }
 0x206   :  { %324 = vst.msk [vmem:[#allocation2] sm:$0xff] %vm323_vm4, %v304_v6  ;;  %v4423_v42 = vsel %vm313_vm5, %v304_v6, %v306_v44  ;;  %vm2043_vm4 = vcmask 318672  }
 0x209   :  { %v308_v45 = vpop.permute.xlu0 %307  ;;  %v220_v46 = vpop.permute.xlu1 %219 }
 0x20a   :  { %v4426_v47 = vsel %vm313_vm5, %v306_v44, %v308_v45  ;;  %v225_v48 = vsel %vm221_vm2, %v218_v20, %v220_v46  ;;  %v235_v19 = vmax.f32 %v205_v41, %v220_v46 }
 0x20b   :  { %v234_v49 = vmax.f32 %v4376_v9, %v225_v48 }
 0x20d   :  { %v245_v50 = vpop.permute.xlu0 %244  ;;  %v4430_v51 = vld [vmem:[#allocation2] sm:$0xff] }
 0x20e   :  { %v250_v53 = vsel %vm246_vm3, %v243_v36, %v245_v50  ;;  %347 = vrot.lane.b32.xlu1 %v4430_v51, %s4264_s0  ;;  %v260_v56 = vmax.f32 %v235_v19, %v245_v50  ;;  %v4588_v19 = vld [vmem:[%s6307_s1 + $0x20] sm:$0xff] }
 0x20f   :  { %v259_v54 = vmax.f32 %v234_v49, %v250_v53  ;;  %v4555_v53 = vld [vmem:[%s6307_s1 + $0x8] sm:$0xff] }
 0x210   :  { %v291_v58 = vmul.f32 %v281_v57, %v260_v56  ;;  %v4599_v56 = vld [vmem:[%s6307_s1 + $0x28] sm:$0xff]  ;;  %v4610_v57 = vld [vmem:[%s6307_s1 + $0x30] sm:$0xff] }
 0x211   :  { %v290_v55 = vmul.f32 %v277_v52, %v259_v54  ;;  %v4566_v54 = vld [vmem:[%s6307_s1 + $0x10] sm:$0xff] }
 0x212   :  { %403 = vrot.lane.b32.xlu1 %v4430_v51, %s4266_s19 }
 0x213   :  { %309 = vrot.lane.b32.xlu0 %v290_v55, %s4269_s25  ;;  %v4577_v55 = vld [vmem:[%s6307_s1 + $0x18] sm:$0xff] }
 0x216   :  { %468 = vrot.lane.b32.xlu1 %v4430_v51, %s4270_s26 }
 0x217   :  { %374 = vrot.lane.b32.xlu0 %v4430_v51, %s4265_s18 }
 0x21a   :  { %501 = vrot.lane.b32.xlu1 %v4430_v51, %s4267_s20 }
 0x21b   :  { %435 = vrot.lane.b32.xlu0 %v4430_v51, %s4271_s27 }
 0x21e   :  { %349 = vrot.lane.b32.xlu1 %v4423_v42, %s4264_s0 }
 0x21f   :  { %533 = vrot.lane.b32.xlu0 %v4430_v51, %s4272_s28 }
 0x222   :  { %378 = vrot.lane.b32.xlu1 %v4426_v47, %s4265_s18 }
 0x223   :  { %351 = vrot.lane.b32.xlu0 %v4426_v47, %s4264_s0 }
 0x226   :  { %407 = vrot.lane.b32.xlu1 %v4426_v47, %s4266_s19 }
 0x227   :  { %376 = vrot.lane.b32.xlu0 %v4423_v42, %s4265_s18 }
 0x22a   :  { %439 = vrot.lane.b32.xlu1 %v4426_v47, %s4271_s27 }
 0x22b   :  { %405 = vrot.lane.b32.xlu0 %v4423_v42, %s4266_s19 }
 0x22e   :  { %472 = vrot.lane.b32.xlu1 %v4426_v47, %s4270_s26 }
 0x22f   :  { %437 = vrot.lane.b32.xlu0 %v4423_v42, %s4271_s27 }
 0x232   :  { %503 = vrot.lane.b32.xlu1 %v4423_v42, %s4267_s20 }
 0x233   :  { %470 = vrot.lane.b32.xlu0 %v4423_v42, %s4270_s26 }
 0x236   :  { %535 = vrot.lane.b32.xlu1 %v4423_v42, %s4272_s28 }
 0x237   :  { %505 = vrot.lane.b32.xlu0 %v4426_v47, %s4267_s20 }
 0x23a   :  { %311 = vrot.lane.b32.xlu1 %v291_v58, %s4269_s25 }
 0x23b   :  { %537 = vrot.lane.b32.xlu0 %v4426_v47, %s4272_s28 }
 0x23e   :  { %570 = vrot.lane.b32.xlu1 %v4426_v47, %s4273_s29 }
 0x23f   :  { %568 = vrot.lane.b32.xlu0 %v4423_v42, %s4273_s29 }
 0x243   :  { %566 = vrot.lane.b32.xlu0 %v4430_v51, %s4273_s29 }
 0x280   :  { %v348_v11 = vpop.permute.xlu1 %347 }
 0x284   :  { %v404_v59 = vpop.permute.xlu1 %403 }
 0x285   :  { %v310_v60 = vpop.permute.xlu0 %309 }
 0x286   :  { %v4489_v61 = vsel %vm313_vm5, %v308_v45, %v310_v60 }
 0x287   :  { %409 = vrot.lane.b32.xlu0 %v4489_v61, %s4266_s19  ;;  %353 = vrot.lane.b32.xlu1 %v4489_v61, %s4264_s0  ;;  %338 = vst.msk [vmem:[#allocation3 + $0x18] sm:$0xff] %vm337_vm7, %v4489_v61 }
 0x288   :  { %v469_v63 = vpop.permute.xlu1 %468 }
 0x289   :  { %v375_v0 = vpop.permute.xlu0 %374 }
 0x28b   :  { %380 = vrot.lane.b32.xlu0 %v4489_v61, %s4265_s18 }
 0x28c   :  { %v502_v1 = vpop.permute.xlu1 %501 }
 0x28d   :  { %v436_v2 = vpop.permute.xlu0 %435 }
 0x290   :  { %v350_v3 = vpop.permute.xlu1 %349 }
 0x291   :  { %v355_v4 = vsel %vm166_vm0, %v348_v11, %v350_v3  ;;  %v534_v5 = vpop.permute.xlu0 %533 }
 0x292   :  { %v4010_v16 = vpack.c.bf16 %v355_v4, %v4430_v51  ;;  %v4544_v51 = vld [vmem:[%s6307_s1] sm:$0xff] }
 0x294   :  { %v4500_v8 = vpop.permute.xlu1 %378 }
 0x295   :  { %v4502_v9 = vpop.permute.xlu0 %351 }
 0x296   :  { %v356_v13 = vsel %vm166_vm0, %v350_v3, %v4502_v9 }
 0x297   :  { %v4008_v14 = vpack.c.bf16 %v356_v13, %v4423_v42 }
 0x298   :  { %v4507_v15 = vpop.permute.xlu1 %407 }
 0x299   :  { %v377_v17 = vpop.permute.xlu0 %376  ;;  %4009 = vmatprep.subr.bf16.mxu0 %v4008_v14 }
 0x29a   :  { %v382_v18 = vsel %vm191_vm1, %v375_v0, %v377_v17  ;;  %v383_v20 = vsel %vm191_vm1, %v377_v17, %v4500_v8  ;;  %4011 = vmatpush1.bf16.msra.mxu0 %v4010_v16 }
 0x29c   :  { %v4513_v21 = vpop.permute.xlu1 %439 }
 0x29d   :  { %v406_v22 = vpop.permute.xlu0 %405 }
 0x29e   :  { %v413_v23 = vsel %vm221_vm2, %v404_v59, %v406_v22  ;;  %v414_v24 = vsel %vm221_vm2, %v406_v22, %v4507_v15 }
 0x29f   :  { %v4012_v25 = vpack.c.bf16 %v414_v24, %v383_v20  ;;  %v4014_v26 = vpack.c.bf16 %v413_v23, %v382_v18 }
 0x2a0   :  { %v4518_v27 = vpop.permute.xlu1 %472 }
 0x2a1   :  { %v438_v28 = vpop.permute.xlu0 %437  ;;  %4013 = vmatprep.subr.bf16.mxu0 %v4012_v25 }
 0x2a2   :  { %v446_v29 = vsel %vm445_vm8, %v436_v2, %v438_v28  ;;  %v447_v30 = vsel %vm445_vm8, %v438_v28, %v4513_v21  ;;  %4015 = vmatpush1.bf16.msra.mxu0 %v4014_v26 }
 0x2a4   :  { %v504_v31 = vpop.permute.xlu1 %503 }
 0x2a5   :  { %v511_v32 = vsel %vm246_vm3, %v502_v1, %v504_v31  ;;  %v471_v33 = vpop.permute.xlu0 %470 }
 0x2a6   :  { %v479_v34 = vsel %vm478_vm9, %v469_v63, %v471_v33  ;;  %v480_v35 = vsel %vm478_vm9, %v471_v33, %v4518_v27  ;;  %v592_v63 = vld [vmem:[#allocation3 + $0x18] sm:$0xff] }
 0x2a7   :  { %v4016_v36 = vpack.c.bf16 %v480_v35, %v447_v30  ;;  %v4018_v37 = vpack.c.bf16 %v479_v34, %v446_v29 }
 0x2a8   :  { %v536_v38 = vpop.permute.xlu1 %535 }
 0x2a9   :  { %v544_v39 = vsel %vm543_vm10, %v534_v5, %v536_v38  ;;  %v4528_v12 = vpop.permute.xlu0 %505  ;;  %4017 = vmatprep.subr.bf16.mxu0 %v4016_v36 }
 0x2aa   :  { %v512_v7 = vsel %vm246_vm3, %v504_v31, %v4528_v12  ;;  %4019 = vmatpush1.bf16.msra.mxu0 %v4018_v37  ;;  %v4022_v45 = vpack.c.bf16 %v544_v39, %v511_v32 }
 0x2ac   :  { %v312_v40 = vpop.permute.xlu1 %311 }
 0x2ad   :  { %v317_v41 = vsel %vm313_vm5, %v310_v60, %v312_v40  ;;  %v4533_v43 = vpop.permute.xlu0 %537  ;;  %vm1965_vm5 = vcmask 334848  }
 0x2ae   :  { %329 = vst.msk [vmem:[#allocation2 + $0x20] sm:$0xff] %vm328_vm11, %v317_v41  ;;  %v545_v6 = vsel %vm543_vm10, %v536_v38, %v4533_v43  ;;  %v22_v41 = vld [vmem:[%s6307_s1 + $0x40] sm:$0xff]  ;;  %vm2115_vm11 = vcmask 531872  }
 0x2af   :  { %v4020_v44 = vpack.c.bf16 %v545_v6, %v512_v7  ;;  %v4275_v6 = vmov 0.0|0.0  }
 0x2b0   :  { %v4537_v42 = vpop.permute.xlu1 %570 }
 0x2b1   :  { %v569_v46 = vpop.permute.xlu0 %568  ;;  %4021 = vmatprep.subr.bf16.mxu0 %v4020_v44 }
 0x2b2   :  { %v578_v48 = vsel %vm576_vm12, %v569_v46, %v4537_v42  ;;  %4023 = vmatpush1.bf16.msra.mxu0 %v4022_v45 }
 0x2b3   :  { %691 = vmatprep.subr.mxu0 %v578_v48 }
 0x2b5   :  { %v567_v49 = vpop.permute.xlu0 %566  ;;  %v429_v50 = vld [vmem:[#allocation2 + $0x20] sm:$0xff] }
 0x2b6   :  { %v577_v52 = vsel %vm576_vm12, %v567_v49, %v569_v46  ;;  %443 = vrot.lane.b32.xlu0 %v429_v50, %s4271_s27  ;;  %411 = vrot.lane.b32.xlu1 %v429_v50, %s4266_s19 }
 0x2b7   :  { %692 = vmatpush1.msra.mxu0 %v577_v52 }
 0x2b8   :  { %3591 = vmatmul.mubr.msk.f32.vlgmr.msra.gmra.mrb[0].mxu0 %vm660_vm13, %v4544_v51  ;;  %4040 = vmatprep.subr.bf16.mxu0 %v4275_v6 }
 0x2b9   :  { %745 = vmatprep.mubr.f32.mxu0 %v4268_v10 }
 0x2ba   :  { %476 = vrot.lane.b32.xlu0 %v429_v50, %s4270_s26  ;;  %441 = vrot.lane.b32.xlu1 %v4489_v61, %s4271_s27  ;;  %s4277_s27 = smov 32  }
 0x2bc   :  { %3592 = vmatmul.mubr.msk.f32.gmra.mrb[2].mxu0 %vm660_vm13, %v4555_v53 }
 0x2bd   :  { %751 = vmatprep.mubr.f32.mxu0 %v4268_v10 }
 0x2be   :  { %509 = vrot.lane.b32.xlu0 %v429_v50, %s4267_s20  ;;  %474 = vrot.lane.b32.xlu1 %v4489_v61, %s4270_s26 }
 0x2c0   :  { %3593 = vmatmul.mubr.msk.f32.gmra.mrb[4].mxu0 %vm660_vm13, %v4566_v54 }
 0x2c1   :  { %757 = vmatprep.mubr.f32.mxu0 %v4268_v10 }
 0x2c2   :  { %541 = vrot.lane.b32.xlu0 %v429_v50, %s4272_s28  ;;  %507 = vrot.lane.b32.xlu1 %v4489_v61, %s4267_s20 }
 0x2c4   :  { %3594 = vmatmul.mubr.msk.f32.gmra.mrb[6].mxu0 %vm660_vm13, %v4577_v55 }
 0x2c5   :  { %763 = vmatprep.mubr.f32.mxu0 %v4268_v10 }
 0x2c6   :  { %574 = vrot.lane.b32.xlu0 %v429_v50, %s4273_s29  ;;  %539 = vrot.lane.b32.xlu1 %v4489_v61, %s4272_s28  ;;  %s4278_s28 = smov 112  }
 0x2c8   :  { %3595 = vmatmul.mubr.msk.f32.gmra.mrb[8].mxu0 %vm660_vm13, %v4588_v19 }
 0x2c9   :  { %769 = vmatprep.mubr.f32.mxu0 %v4268_v10 }
 0x2ca   :  { %572 = vrot.lane.b32.xlu1 %v4489_v61, %s4273_s29  ;;  %632 = vperm.xlu0 %4257, %v4555_v53  }
 0x2cc   :  { %3596 = vmatmul.mubr.msk.f32.gmra.mrb[10].mxu0 %vm660_vm13, %v4599_v56 }
 0x2cd   :  { %775 = vmatprep.mubr.f32.mxu0 %v4268_v10 }
 0x2ce   :  { %627 = vperm.xlu1 %4256, %v4544_v51   ;;  %647 = vperm.xlu0 %4257, %v4588_v19  }
 0x2d0   :  { %3597 = vmatmul.mubr.msk.f32.gmra.mrb[12].mxu0 %vm660_vm13, %v4610_v57 }
 0x2d1   :  { %3777 = vmatprep.mubr.msk.f32.mxu0 %vm4276_vm14, %v4268_v10 }
 0x2d2   :  { %637 = vperm.xlu1 %4256, %v4566_v54   ;;  %657 = vperm.xlu0 %4257, %v4610_v57  }
 0x2d6   :  { %642 = vperm.xlu1 %4256, %v4577_v55  }
 0x2da   :  { %652 = vperm.xlu1 %4256, %v4599_v56  }
 0x2f9   :  { %v410_v58 = vpop.permute.xlu0 %409  ;;  %v354_v11 = vpop.permute.xlu1 %353 }
 0x2fa   :  { %v415_v59 = vsel %vm221_vm2, %v4507_v15, %v410_v58  ;;  %v357_v60 = vsel %vm166_vm0, %v4502_v9, %v354_v11  ;;  %365 = vst.msk [vmem:[#allocation3 + $0x38] sm:$0xff] %vm337_vm7, %v354_v11 }
 0x2fb   :  { %v4026_v2 = vpack.c.bf16 %v357_v60, %v4426_v47 }
 0x2fd   :  { %v381_v61 = vpop.permute.xlu0 %380 }
 0x2fe   :  { %v384_v62 = vsel %vm191_vm1, %v4500_v8, %v381_v61  ;;  %392 = vst.msk [vmem:[#allocation3 + $0x58] sm:$0xff] %vm337_vm7, %v381_v61 }
 0x2ff   :  { %v4030_v23 = vpack.c.bf16 %v415_v59, %v384_v62 }
 0x301   :  { %v596_v0 = vld [vmem:[#allocation3 + $0x38] sm:$0xff] }
 0x302   :  { %v4024_v1 = vpack.c.bf16 %v596_v0, %v592_v63 }
 0x304   :  { %4025 = vmatprep.subr.bf16.mxu1 %v4024_v1 }
 0x305   :  { %4027 = vmatpush1.bf16.msra.mxu1 %v4026_v2  ;;  %v600_v18 = vld [vmem:[#allocation3 + $0x58] sm:$0xff] }
 0x328   :  { %v444_v3 = vpop.permute.xlu0 %443  ;;  %v412_v4 = vpop.permute.xlu1 %411 }
 0x329   :  { %v416_v5 = vsel %vm221_vm2, %v410_v58, %v412_v4  ;;  %vm1058_vm2 = vcmask 130048  }
 0x32a   :  { %424 = vst.msk [vmem:[#allocation3 + $0x78] sm:$0xff] %vm337_vm7, %v416_v5 }
 0x32c   :  { %v477_v9 = vpop.permute.xlu0 %476  ;;  %v442_v13 = vpop.permute.xlu1 %441 }
 0x32d   :  { %v448_v8 = vsel %vm445_vm8, %v4513_v21, %v442_v13  ;;  %v449_v14 = vsel %vm445_vm8, %v442_v13, %v444_v3  ;;  %vm2079_vm8 = vcmask 425272  }
 0x32e   :  { %457 = vst.msk [vmem:[#allocation3 + $0x98] sm:$0xff] %vm337_vm7, %v449_v14 }
 0x330   :  { %v510_v15 = vpop.permute.xlu0 %509  ;;  %v475_v16 = vpop.permute.xlu1 %474 }
 0x331   :  { %v481_v47 = vsel %vm478_vm9, %v4518_v27, %v475_v16  ;;  %v482_v17 = vsel %vm478_vm9, %v475_v16, %v477_v9  ;;  %v604_v20 = vld [vmem:[#allocation3 + $0x78] sm:$0xff] }
 0x332   :  { %490 = vst.msk [vmem:[#allocation3 + $0xb8] sm:$0xff] %vm337_vm7, %v482_v17  ;;  %v4028_v22 = vpack.c.bf16 %v604_v20, %v600_v18  ;;  %v4034_v33 = vpack.c.bf16 %v481_v47, %v448_v8 }
 0x334   :  { %4029 = vmatprep.subr.bf16.mxu1 %v4028_v22  ;;  %v508_v24 = vpop.permute.xlu1 %507  ;;  %v542_v26 = vpop.permute.xlu0 %541 }
 0x335   :  { %v513_v21 = vsel %vm246_vm3, %v4528_v12, %v508_v24  ;;  %v514_v25 = vsel %vm246_vm3, %v508_v24, %v510_v15  ;;  %4031 = vmatpush1.bf16.msra.mxu1 %v4030_v23  ;;  %v608_v30 = vld [vmem:[#allocation3 + $0x98] sm:$0xff]  ;;  %vm2007_vm3 = vcmask 212072  }
 0x336   :  { %522 = vst.msk [vmem:[#allocation3 + $0xd8] sm:$0xff] %vm337_vm7, %v514_v25 }
 0x338   :  { %v540_v27 = vpop.permute.xlu1 %539  ;;  %v575_v34 = vpop.permute.xlu0 %574 }
 0x339   :  { %v546_v28 = vsel %vm543_vm10, %v4533_v43, %v540_v27  ;;  %v547_v29 = vsel %vm543_vm10, %v540_v27, %v542_v26  ;;  %v612_v31 = vld [vmem:[#allocation3 + $0xb8] sm:$0xff]  ;;  %v23_v43 = vld [vmem:[%s6307_s1 + $0x48] sm:$0xff]  ;;  %vm2339_vm10 = vcmask 121872  }
 0x33a   :  { %555 = vst.msk [vmem:[#allocation3 + $0xf8] sm:$0xff] %vm337_vm7, %v547_v29  ;;  %v4032_v32 = vpack.c.bf16 %v612_v31, %v608_v30  ;;  %v4038_v7 = vpack.c.bf16 %v546_v28, %v513_v21  ;;  %v4041_v44 = vpack.c.bf16 %v23_v43, %v22_v41 }
 0x33c   :  { %4033 = vmatprep.subr.bf16.mxu1 %v4032_v32  ;;  %v573_v35 = vpop.permute.xlu1 %572  ;;  %4042 = vmatpush3.bf16.msra.mxu0 %v4041_v44 }
 0x33d   :  { %v579_v36 = vsel %vm576_vm12, %v4537_v42, %v573_v35  ;;  %v580_v37 = vsel %vm576_vm12, %v573_v35, %v575_v34  ;;  %4035 = vmatpush1.bf16.msra.mxu1 %v4034_v33  ;;  %v616_v38 = vld [vmem:[#allocation3 + $0xd8] sm:$0xff]  ;;  %3775 = vmatprep.subr.mxu0 %v4268_v10  ;;  %v24_v42 = vld [vmem:[%s6307_s1 + $0x50] sm:$0xff]  ;;  %vm2375_vm12 = vcmask 228472  }
 0x33e   :  { %588 = vst.msk [vmem:[#allocation3 + $0x118] sm:$0xff] %vm337_vm7, %v580_v37 }
 0x340   :  { %3776 = vmatpush3.msra.mxu0 %v24_v42 }
 0x341   :  { %v620_v39 = vld [vmem:[#allocation3 + $0xf8] sm:$0xff] }
 0x342   :  { %v4036_v12 = vpack.c.bf16 %v620_v39, %v616_v38 }
 0x344   :  { %4037 = vmatprep.subr.bf16.mxu1 %v4036_v12 }
 0x345   :  { %4039 = vmatpush1.bf16.msra.mxu1 %v4038_v7  ;;  %v624_v40 = vld [vmem:[#allocation3 + $0x118] sm:$0xff] }
 0x346   :  { %798 = vmatprep.subr.mxu1 %v624_v40 }
 0x349   :  { %799 = vmatpush1.msra.mxu1 %v579_v36  ;;  %v4693_v50 = vpop.permute.xlu0 %632 }
 0x34a   :  { %3598 = vmatmul.mubr.msk.f32.vlgmr.msra.gmra.mrb[0].mxu1 %vm660_vm13, %v4544_v51  ;;  %4195 = vmatprep.subr.bf16.mxu1 %v4275_v6 }
 0x34b   :  { %852 = vmatprep.mubr.f32.mxu1 %v4268_v10  ;;  %4197 = vmatpush3.bf16.msra.mxu1 %v4041_v44 }
 0x34c   :  { %4196 = vmatprep.subr.mxu1 %v4268_v10 }
 0x34d   :  { %v4688_v45 = vpop.permute.xlu1 %627  ;;  %v4711_v61 = vpop.permute.xlu0 %647 }
 0x34e   :  { %3599 = vmatmul.mubr.msk.f32.gmra.mrb[2].mxu1 %vm660_vm13, %v4555_v53 }
 0x34f   :  { %858 = vmatprep.mubr.f32.mxu1 %v4268_v10  ;;  %4198 = vmatpush3.msra.mxu1 %v24_v42 }
 0x351   :  { %v4697_v52 = vpop.permute.xlu1 %637  ;;  %v4727_v13 = vpop.permute.xlu0 %657 }
 0x352   :  { %3600 = vmatmul.mubr.msk.f32.gmra.mrb[4].mxu1 %vm660_vm13, %v4566_v54 }
 0x353   :  { %864 = vmatprep.mubr.f32.mxu1 %v4268_v10 }
 0x356   :  { %3601 = vmatmul.mubr.msk.f32.gmra.mrb[6].mxu1 %vm660_vm13, %v4577_v55 }
 0x357   :  { %870 = vmatprep.mubr.f32.mxu1 %v4268_v10 }
 0x35a   :  { %3602 = vmatmul.mubr.msk.f32.gmra.mrb[8].mxu1 %vm660_vm13, %v4588_v19 }
 0x35b   :  { %876 = vmatprep.mubr.f32.mxu1 %v4268_v10 }
 0x35e   :  { %3603 = vmatmul.mubr.msk.f32.gmra.mrb[10].mxu1 %vm660_vm13, %v4599_v56 }
 0x35f   :  { %882 = vmatprep.mubr.f32.mxu1 %v4268_v10 }
 0x362   :  { %3604 = vmatmul.mubr.msk.f32.gmra.mrb[12].mxu1 %vm660_vm13, %v4610_v57  ;;  %v4703_v57 = vpop.permute.xlu1 %642  ;;  %vm2151_vm13 = vcmask 638472  }
 0x363   :  { %3936 = vmatprep.mubr.msk.f32.mxu1 %vm4276_vm14, %v4268_v10 }
 0x366   :  { %v4719_v2 = vpop.permute.xlu1 %652 }
 0x38b   :  { %v741_v46 = vpop.f32.mrb[0].mxu0 }
 0x38c   :  { %v4690_v48 = vpop.f32.mrb[1].mxu0  ;;  %v742_v49 = vadd.f32 %v741_v46, %v4688_v45 }
 0x38d   :  { %v744_v20 = vadd.f32 %v4690_v48, %v4688_v45 }
 0x38e   :  { %904 = vrot.lane.b32.xlu1 %v742_v49, %s4267_s20  ;;  %890 = vst.msk [vmem:[#allocation4] sm:$0xff] %vm889_vm15, %v742_v49 }
 0x38f   :  { %v747_v51 = vpop.f32.mrb[2].mxu0 }
 0x390   :  { %v748_v53 = vadd.f32 %v747_v51, %v4693_v50  ;;  %v749_v54 = vpop.f32.mrb[3].mxu0 }
 0x391   :  { %v750_v22 = vadd.f32 %v749_v54, %v4693_v50 }
 0x392   :  { %891 = vst.msk [vmem:[#allocation4 + $0x8] sm:$0xff] %vm889_vm15, %v748_v53  ;;  %906 = vrot.lane.b32.xlu0 %v748_v53, %s4267_s20 }
 0x393   :  { %v753_v55 = vpop.f32.mrb[4].mxu0 }
 0x394   :  { %v755_v19 = vpop.f32.mrb[5].mxu0  ;;  %v754_v56 = vadd.f32 %v753_v55, %v4697_v52 }
 0x395   :  { %v1206_v58 = vld [vmem:[#allocation4] sm:$0xff]  ;;  %v756_v23 = vadd.f32 %v755_v19, %v4697_v52 }
 0x396   :  { %908 = vrot.lane.b32.xlu1 %v754_v56, %s4267_s20  ;;  %892 = vst.msk [vmem:[#allocation4 + $0x10] sm:$0xff] %vm889_vm15, %v754_v56  ;;  %3778 = vmatmul.mubr.msk.f32.vlgmr.msra.gmra.mrb[14].mxu0 %vm889_vm15, %v1206_v58 }
 0x397   :  { %v759_v11 = vpop.f32.mrb[6].mxu0  ;;  %3780 = vmatprep.mubr.msk.f32.mxu0 %vm4276_vm14, %v4268_v10 }
 0x398   :  { %v761_v59 = vpop.f32.mrb[7].mxu0  ;;  %v760_v60 = vadd.f32 %v759_v11, %v4703_v57 }
 0x399   :  { %v1207_v62 = vld [vmem:[#allocation4 + $0x8] sm:$0xff]  ;;  %v762_v24 = vadd.f32 %v761_v59, %v4703_v57 }
 0x39a   :  { %910 = vrot.lane.b32.xlu0 %v760_v60, %s4267_s20  ;;  %893 = vst.msk [vmem:[#allocation4 + $0x18] sm:$0xff] %vm889_vm15, %v760_v60  ;;  %3781 = vmatmul.mubr.msk.f32.gmra.mrb[16].mxu0 %vm889_vm15, %v1207_v62 }
 0x39b   :  { %v765_v63 = vpop.f32.mrb[8].mxu0  ;;  %3783 = vmatprep.mubr.msk.f32.mxu0 %vm4276_vm14, %v4268_v10 }
 0x39c   :  { %v766_v0 = vadd.f32 %v765_v63, %v4711_v61  ;;  %v767_v1 = vpop.f32.mrb[9].mxu0 }
 0x39d   :  { %v1208_v3 = vld [vmem:[#allocation4 + $0x10] sm:$0xff]  ;;  %v768_v21 = vadd.f32 %v767_v1, %v4711_v61  ;;  %v4842_v1 = vld [vmem:[#allocation5] sm:$0xff] }
 0x39e   :  { %894 = vst.msk [vmem:[#allocation4 + $0x20] sm:$0xff] %vm889_vm15, %v766_v0  ;;  %912 = vrot.lane.b32.xlu1 %v766_v0, %s4267_s20  ;;  %3784 = vmatmul.mubr.msk.f32.gmra.mrb[18].mxu0 %vm889_vm15, %v1208_v3 }
 0x39f   :  { %v771_v4 = vpop.f32.mrb[10].mxu0  ;;  %3786 = vmatprep.mubr.msk.f32.mxu0 %vm4276_vm14, %v4268_v10  ;;  %1966 = vst.msk [vmem:[#allocation5 + $0x8] sm:$0xff] %vm1965_vm5, %v4842_v1  ;;  %1968 = vst.msk [vmem:[#allocation5 + $0x18] sm:$0xff] %vm1965_vm5, %v4842_v1 }
 0x3a0   :  { %v773_v5 = vpop.f32.mrb[11].mxu0  ;;  %v772_v9 = vadd.f32 %v771_v4, %v4719_v2  ;;  %1970 = vst.msk [vmem:[#allocation5 + $0x28] sm:$0xff] %vm1965_vm5, %v4842_v1  ;;  %1972 = vst.msk [vmem:[#allocation5 + $0x38] sm:$0xff] %vm1965_vm5, %v4842_v1 }
 0x3a1   :  { %v1209_v8 = vld [vmem:[#allocation4 + $0x18] sm:$0xff]  ;;  %v774_v25 = vadd.f32 %v773_v5, %v4719_v2  ;;  %1974 = vst.msk [vmem:[#allocation5 + $0x48] sm:$0xff] %vm1965_vm5, %v4842_v1  ;;  %1976 = vst.msk [vmem:[#allocation5 + $0x58] sm:$0xff] %vm1965_vm5, %v4842_v1 }
 0x3a2   :  { %914 = vrot.lane.b32.xlu0 %v772_v9, %s4267_s20  ;;  %895 = vst.msk [vmem:[#allocation4 + $0x28] sm:$0xff] %vm889_vm15, %v772_v9  ;;  %3787 = vmatmul.mubr.msk.f32.gmra.mrb[20].mxu0 %vm889_vm15, %v1209_v8 }
 0x3a3   :  { %v777_v14 = vpop.f32.mrb[12].mxu0  ;;  %3789 = vmatprep.mubr.msk.f32.mxu0 %vm4276_vm14, %v4268_v10  ;;  %1978 = vst.msk [vmem:[#allocation5 + $0x68] sm:$0xff] %vm1965_vm5, %v4842_v1  ;;  %vm2650_vm5 = vcmask 941056  }
 0x3a4   :  { %v778_v15 = vadd.f32 %v777_v14, %v4727_v13  ;;  %v779_v16 = vpop.f32.mrb[13].mxu0 }
 0x3a5   :  { %v1210_v47 = vld [vmem:[#allocation4 + $0x20] sm:$0xff]  ;;  %v4761_v26 = vadd.f32 %v779_v16, %v4727_v13 }
 0x3a6   :  { %896 = vst.msk [vmem:[#allocation4 + $0x30] sm:$0xff] %vm889_vm15, %v778_v15  ;;  %916 = vrot.lane.b32.xlu1 %v778_v15, %s4267_s20  ;;  %932 = vrot.lane.b32.xlu0 %v742_v49, %s4277_s27 }
 0x3a7   :  { %3790 = vmatmul.mubr.msk.f32.gmra.mrb[22].mxu0 %vm889_vm15, %v1210_v47 }
 0x3a8   :  { %3792 = vmatprep.mubr.msk.f32.mxu0 %vm4276_vm14, %v4268_v10 }
 0x3a9   :  { %v1211_v17 = vld [vmem:[#allocation4 + $0x28] sm:$0xff] }
 0x3aa   :  { %934 = vrot.lane.b32.xlu1 %v748_v53, %s4277_s27  ;;  %936 = vrot.lane.b32.xlu0 %v754_v56, %s4277_s27 }
 0x3ab   :  { %3793 = vmatmul.mubr.msk.f32.gmra.mrb[24].mxu0 %vm889_vm15, %v1211_v17 }
 0x3ac   :  { %3795 = vmatprep.mubr.msk.f32.mxu0 %vm4276_vm14, %v4268_v10 }
 0x3ad   :  { %v1212_v18 = vld [vmem:[#allocation4 + $0x30] sm:$0xff] }
 0x3ae   :  { %938 = vrot.lane.b32.xlu1 %v760_v60, %s4277_s27  ;;  %940 = vrot.lane.b32.xlu0 %v766_v0, %s4277_s27 }
 0x3af   :  { %3796 = vmatmul.mubr.msk.f32.gmra.mrb[26].mxu0 %vm889_vm15, %v1212_v18 }
 0x3b0   :  { %3798 = vmatprep.mubr.msk.f32.mxu0 %vm4276_vm14, %v4268_v10 }
 0x3b2   :  { %942 = vrot.lane.b32.xlu1 %v772_v9, %s4277_s27  ;;  %944 = vrot.lane.b32.xlu0 %v778_v15, %s4277_s27 }
 0x3b6   :  { %969 = vrot.lane.b32.xlu0 %v750_v22, %s4278_s28  ;;  %967 = vrot.lane.b32.xlu1 %v744_v20, %s4278_s28 }
 0x3ba   :  { %973 = vrot.lane.b32.xlu0 %v762_v24, %s4278_s28  ;;  %971 = vrot.lane.b32.xlu1 %v756_v23, %s4278_s28 }
 0x3be   :  { %977 = vrot.lane.b32.xlu0 %v774_v25, %s4278_s28  ;;  %975 = vrot.lane.b32.xlu1 %v768_v21, %s4278_s28 }
 0x3c2   :  { %995 = vrot.lane.b32.xlu0 %v744_v20, %s4279_s30  ;;  %979 = vrot.lane.b32.xlu1 %v4761_v26, %s4278_s28 }
 0x3c6   :  { %999 = vrot.lane.b32.xlu0 %v756_v23, %s4279_s30  ;;  %997 = vrot.lane.b32.xlu1 %v750_v22, %s4279_s30 }
 0x3ca   :  { %1001 = vrot.lane.b32.xlu0 %v762_v24, %s4279_s30 }
 0x3ce   :  { %1003 = vrot.lane.b32.xlu0 %v768_v21, %s4279_s30 }
 0x3d2   :  { %1005 = vrot.lane.b32.xlu0 %v774_v25, %s4279_s30 }
 0x3d6   :  { %1030 = vrot.lane.b32.xlu0 %v744_v20, %s4280_s4 }
 0x3da   :  { %1034 = vrot.lane.b32.xlu0 %v750_v22, %s4280_s4 }
 0x3de   :  { %1038 = vrot.lane.b32.xlu0 %v756_v23, %s4280_s4 }
 0x3e2   :  { %1042 = vrot.lane.b32.xlu0 %v762_v24, %s4280_s4 }
 0x3e6   :  { %1046 = vrot.lane.b32.xlu0 %v768_v21, %s4280_s4 }
 0x3ea   :  { %1050 = vrot.lane.b32.xlu0 %v774_v25, %s4280_s4 }
 0x400   :  { %v905_v27 = vpop.permute.xlu1 %904 }
 0x401   :  { %925 = vst.msk [vmem:[#allocation4 + $0x38] sm:$0xff] %vm889_vm15, %v905_v27 }
 0x404   :  { %v907_v28 = vpop.permute.xlu0 %906 }
 0x405   :  { %926 = vst.msk [vmem:[#allocation4 + $0x40] sm:$0xff] %vm889_vm15, %v907_v28 }
 0x408   :  { %v909_v29 = vpop.permute.xlu1 %908  ;;  %v1213_v30 = vld [vmem:[#allocation4 + $0x38] sm:$0xff] }
 0x409   :  { %927 = vst.msk [vmem:[#allocation4 + $0x48] sm:$0xff] %vm889_vm15, %v909_v29  ;;  %3799 = vmatmul.mubr.msk.f32.gmra.mrb[28].mxu0 %vm889_vm15, %v1213_v30 }
 0x40a   :  { %3801 = vmatprep.mubr.msk.f32.mxu0 %vm4276_vm14, %v4268_v10 }
 0x40c   :  { %v911_v31 = vpop.permute.xlu0 %910  ;;  %v1214_v32 = vld [vmem:[#allocation4 + $0x40] sm:$0xff] }
 0x40d   :  { %928 = vst.msk [vmem:[#allocation4 + $0x50] sm:$0xff] %vm889_vm15, %v911_v31  ;;  %3802 = vmatmul.mubr.msk.f32.gmra.mrb[30].mxu0 %vm889_vm15, %v1214_v32 }
 0x40e   :  { %3804 = vmatprep.mubr.msk.f32.mxu0 %vm4276_vm14, %v4268_v10 }
 0x410   :  { %v913_v33 = vpop.permute.xlu1 %912  ;;  %v1215_v34 = vld [vmem:[#allocation4 + $0x48] sm:$0xff] }
 0x411   :  { %929 = vst.msk [vmem:[#allocation4 + $0x58] sm:$0xff] %vm889_vm15, %v913_v33  ;;  %3805 = vmatmul.mubr.msk.f32.gmra.mrb[32].mxu0 %vm889_vm15, %v1215_v34 }
 0x412   :  { %3807 = vmatprep.mubr.msk.f32.mxu0 %vm4276_vm14, %v4268_v10 }
 0x414   :  { %v915_v35 = vpop.permute.xlu0 %914  ;;  %v1216_v36 = vld [vmem:[#allocation4 + $0x50] sm:$0xff] }
 0x415   :  { %930 = vst.msk [vmem:[#allocation4 + $0x60] sm:$0xff] %vm889_vm15, %v915_v35  ;;  %3808 = vmatmul.mubr.msk.f32.gmra.mrb[34].mxu0 %vm889_vm15, %v1216_v36 }
 0x416   :  { %3810 = vmatprep.mubr.msk.f32.mxu0 %vm4276_vm14, %v4268_v10 }
 0x418   :  { %v917_v37 = vpop.permute.xlu1 %916  ;;  %v1217_v38 = vld [vmem:[#allocation4 + $0x58] sm:$0xff]  ;;  %v933_v39 = vpop.permute.xlu0 %932 }
 0x419   :  { %931 = vst.msk [vmem:[#allocation4 + $0x68] sm:$0xff] %vm889_vm15, %v917_v37  ;;  %3811 = vmatmul.mubr.msk.f32.gmra.mrb[36].mxu0 %vm889_vm15, %v1217_v38  ;;  %953 = vst.msk [vmem:[#allocation4 + $0x70] sm:$0xff] %vm889_vm15, %v933_v39 }
 0x41a   :  { %3813 = vmatprep.mubr.msk.f32.mxu0 %vm4276_vm14, %v4268_v10 }
 0x41c   :  { %v1218_v12 = vld [vmem:[#allocation4 + $0x60] sm:$0xff]  ;;  %v935_v7 = vpop.permute.xlu1 %934  ;;  %v937_v40 = vpop.permute.xlu0 %936 }
 0x41d   :  { %v4799_v41 = vpop.f32.mrb[0].mxu1  ;;  %3814 = vmatmul.mubr.msk.f32.gmra.mrb[38].mxu0 %vm889_vm15, %v1218_v12  ;;  %954 = vst.msk [vmem:[#allocation4 + $0x78] sm:$0xff] %vm889_vm15, %v935_v7  ;;  %955 = vst.msk [vmem:[#allocation4 + $0x80] sm:$0xff] %vm889_vm15, %v937_v40 }
 0x41e   :  { %v850_v43 = vpop.f32.mrb[1].mxu1  ;;  %3816 = vmatprep.mubr.msk.f32.mxu0 %vm4276_vm14, %v4268_v10  ;;  %v849_v32 = vadd.f32 %v4799_v41, %v4688_v45 }
 0x41f   :  { %v4807_v44 = vadd.f32 %v850_v43, %v4688_v45 }
 0x420   :  { %v1219_v42 = vld [vmem:[#allocation4 + $0x68] sm:$0xff]  ;;  %v939_v46 = vpop.permute.xlu1 %938  ;;  %v941_v48 = vpop.permute.xlu0 %940  ;;  %v1220_v53 = vld [vmem:[#allocation4 + $0x70] sm:$0xff] }
 0x421   :  { %1136 = vst.msk [vmem:[#allocation4 + $0x1c0] sm:$0xff] %vm889_vm15, %v4807_v44  ;;  %v4811_v49 = vpop.f32.mrb[2].mxu1  ;;  %1150 = vrot.lane.b32.xlu0 %v4807_v44, %s4267_s20  ;;  %3817 = vmatmul.mubr.msk.f32.gmra.mrb[40].mxu0 %vm889_vm15, %v1219_v42  ;;  %956 = vst.msk [vmem:[#allocation4 + $0x88] sm:$0xff] %vm889_vm15, %v939_v46 }
 0x422   :  { %957 = vst.msk [vmem:[#allocation4 + $0x90] sm:$0xff] %vm889_vm15, %v941_v48  ;;  %v856_v51 = vpop.f32.mrb[3].mxu1  ;;  %3819 = vmatprep.mubr.msk.f32.mxu0 %vm4276_vm14, %v4268_v10  ;;  %v855_v34 = vadd.f32 %v4811_v49, %v4693_v50 }
 0x423   :  { %v4821_v54 = vadd.f32 %v856_v51, %v4693_v50 }
 0x424   :  { %v943_v55 = vpop.permute.xlu1 %942  ;;  %v945_v19 = vpop.permute.xlu0 %944  ;;  %v1221_v11 = vld [vmem:[#allocation4 + $0x78] sm:$0xff] }
 0x425   :  { %1137 = vst.msk [vmem:[#allocation4 + $0x1c8] sm:$0xff] %vm889_vm15, %v4821_v54  ;;  %v4825_v56 = vpop.f32.mrb[4].mxu1  ;;  %3820 = vmatmul.mubr.msk.f32.gmra.mrb[42].mxu0 %vm889_vm15, %v1220_v53  ;;  %958 = vst.msk [vmem:[#allocation4 + $0x98] sm:$0xff] %vm889_vm15, %v943_v55 }
 0x426   :  { %959 = vst.msk [vmem:[#allocation4 + $0xa0] sm:$0xff] %vm889_vm15, %v945_v19  ;;  %v862_v58 = vpop.f32.mrb[5].mxu1  ;;  %3822 = vmatprep.mubr.msk.f32.mxu0 %vm4276_vm14, %v4268_v10  ;;  %v1222_v10 = vld [vmem:[#allocation4 + $0x80] sm:$0xff]  ;;  %v861_v36 = vadd.f32 %v4825_v56, %v4697_v52 }
 0x427   :  { %v4833_v59 = vadd.f32 %v862_v58, %v4697_v52 }
 0x428   :  { %v970_v60 = vpop.permute.xlu0 %969  ;;  %v968_v62 = vpop.permute.xlu1 %967  ;;  %v1223_v15 = vld [vmem:[#allocation4 + $0x88] sm:$0xff] }
 0x429   :  { %1138 = vst.msk [vmem:[#allocation4 + $0x1d0] sm:$0xff] %vm889_vm15, %v4833_v59  ;;  %v4837_v63 = vpop.f32.mrb[6].mxu1  ;;  %3823 = vmatmul.mubr.msk.f32.gmra.mrb[44].mxu0 %vm889_vm15, %v1221_v11  ;;  %989 = vst.msk [vmem:[#allocation4 + $0xb0] sm:$0xff] %vm889_vm15, %v970_v60  ;;  %v1224_v22 = vld [vmem:[#allocation4 + $0x90] sm:$0xff] }
 0x42a   :  { %988 = vst.msk [vmem:[#allocation4 + $0xa8] sm:$0xff] %vm889_vm15, %v968_v62  ;;  %v868_v0 = vpop.f32.mrb[7].mxu1  ;;  %3825 = vmatprep.mubr.msk.f32.mxu0 %vm4276_vm14, %v4842_v1  ;;  %v867_v38 = vadd.f32 %v4837_v63, %v4703_v57 }
 0x42b   :  { %v4847_v3 = vadd.f32 %v868_v0, %v4703_v57 }
 0x42c   :  { %v974_v4 = vpop.permute.xlu0 %973  ;;  %v972_v5 = vpop.permute.xlu1 %971 }
 0x42d   :  { %1139 = vst.msk [vmem:[#allocation4 + $0x1d8] sm:$0xff] %vm889_vm15, %v4847_v3  ;;  %v872_v9 = vpop.f32.mrb[8].mxu1  ;;  %3826 = vmatmul.mubr.msk.f32.gmra.mrb[46].mxu0 %vm889_vm15, %v1222_v10  ;;  %991 = vst.msk [vmem:[#allocation4 + $0xc0] sm:$0xff] %vm889_vm15, %v974_v4 }
 0x42e   :  { %990 = vst.msk [vmem:[#allocation4 + $0xb8] sm:$0xff] %vm889_vm15, %v972_v5  ;;  %v4855_v8 = vadd.f32 %v872_v9, %v4711_v61  ;;  %v874_v14 = vpop.f32.mrb[9].mxu1  ;;  %3828 = vmatprep.mubr.msk.f32.mxu0 %vm4276_vm14, %v4842_v1 }
 0x42f   :  { %v4860_v16 = vadd.f32 %v874_v14, %v4711_v61 }
 0x430   :  { %1116 = vrot.lane.b32.xlu1 %v4855_v8, %s4281_s5  ;;  %v978_v47 = vpop.permute.xlu0 %977  ;;  %v976_v17 = vpop.permute.xlu1 %975  ;;  %v1228_v50 = vld [vmem:[#allocation4 + $0xb0] sm:$0xff] }
 0x431   :  { %1140 = vst.msk [vmem:[#allocation4 + $0x1e0] sm:$0xff] %vm889_vm15, %v4860_v16  ;;  %v878_v18 = vpop.f32.mrb[10].mxu1  ;;  %3829 = vmatmul.mubr.msk.f32.gmra.mrb[48].mxu0 %vm889_vm15, %v1223_v15  ;;  %993 = vst.msk [vmem:[#allocation4 + $0xd0] sm:$0xff] %vm889_vm15, %v978_v47  ;;  %v1227_v45 = vld [vmem:[#allocation4 + $0xa8] sm:$0xff] }
 0x432   :  { %992 = vst.msk [vmem:[#allocation4 + $0xc8] sm:$0xff] %vm889_vm15, %v976_v17  ;;  %v4870_v20 = vadd.f32 %v878_v18, %v4719_v2  ;;  %v880_v61 = vpop.f32.mrb[11].mxu1  ;;  %3831 = vmatprep.mubr.msk.f32.mxu0 %vm4276_vm14, %v4842_v1 }
 0x433   :  { %v4875_v23 = vadd.f32 %v880_v61, %v4719_v2  ;;  %v1225_v2 = vld [vmem:[#allocation4 + $0x98] sm:$0xff] }
 0x434   :  { %1118 = vrot.lane.b32.xlu1 %v4870_v20, %s4281_s5  ;;  %v996_v24 = vpop.permute.xlu0 %995  ;;  %v980_v21 = vpop.permute.xlu1 %979  ;;  %v1230_v39 = vld [vmem:[#allocation4 + $0xc0] sm:$0xff] }
 0x435   :  { %1141 = vst.msk [vmem:[#allocation4 + $0x1e8] sm:$0xff] %vm889_vm15, %v4875_v23  ;;  %v884_v25 = vpop.f32.mrb[12].mxu1  ;;  %3832 = vmatmul.mubr.msk.f32.gmra.mrb[50].mxu0 %vm889_vm15, %v1224_v22  ;;  %1016 = vst.msk [vmem:[#allocation4 + $0xe0] sm:$0xff] %vm889_vm15, %v996_v24  ;;  %v1229_v52 = vld [vmem:[#allocation4 + $0xb8] sm:$0xff] }
 0x436   :  { %994 = vst.msk [vmem:[#allocation4 + $0xd8] sm:$0xff] %vm889_vm15, %v980_v21  ;;  %v885_v27 = vadd.f32 %v884_v25, %v4727_v13  ;;  %v886_v28 = vpop.f32.mrb[13].mxu1  ;;  %3834 = vmatprep.mubr.msk.f32.mxu0 %vm4276_vm14, %v4842_v1 }
 0x437   :  { %v4888_v29 = vadd.f32 %v886_v28, %v4727_v13  ;;  %v1226_v13 = vld [vmem:[#allocation4 + $0xa0] sm:$0xff] }
 0x438   :  { %1120 = vrot.lane.b32.xlu1 %v885_v27, %s4281_s5  ;;  %1056 = vrot.lane.b32.xlu0 %v885_v27, %s4280_s4  ;;  %v1000_v30 = vpop.permute.xlu0 %999  ;;  %v998_v31 = vpop.permute.xlu1 %997  ;;  %v1232_v12 = vld [vmem:[#allocation4 + $0xd0] sm:$0xff]  ;;  %v1262_v28 = vld [vmem:[#allocation4 + $0x1c0] sm:$0xff] }
 0x439   :  { %1142 = vst.msk [vmem:[#allocation4 + $0x1f0] sm:$0xff] %vm889_vm15, %v4888_v29  ;;  %3835 = vmatmul.mubr.msk.f32.gmra.mrb[52].mxu0 %vm889_vm15, %v1225_v2  ;;  %1018 = vst.msk [vmem:[#allocation4 + $0xf0] sm:$0xff] %vm889_vm15, %v1000_v30  ;;  %v1231_v57 = vld [vmem:[#allocation4 + $0xc8] sm:$0xff] }
 0x43a   :  { %1017 = vst.msk [vmem:[#allocation4 + $0xe8] sm:$0xff] %vm889_vm15, %v998_v31  ;;  %3837 = vmatprep.mubr.msk.f32.mxu0 %vm4276_vm14, %v4842_v1  ;;  %v1263_v31 = vld [vmem:[#allocation4 + $0x1c8] sm:$0xff] }
 0x43c   :  { %1007 = vrot.lane.b32.xlu1 %v4761_v26, %s4279_s30  ;;  %1080 = vrot.lane.b32.xlu0 %v849_v32, %s4282_s6  ;;  %v1002_v33 = vpop.permute.xlu0 %1001  ;;  %v1234_v40 = vld [vmem:[#allocation4 + $0xe0] sm:$0xff] }
 0x43d   :  { %3838 = vmatmul.mubr.msk.f32.gmra.mrb[54].mxu0 %vm889_vm15, %v1226_v13  ;;  %1019 = vst.msk [vmem:[#allocation4 + $0xf8] sm:$0xff] %vm889_vm15, %v1002_v33  ;;  %v1233_v7 = vld [vmem:[#allocation4 + $0xd8] sm:$0xff] }
 0x43e   :  { %3840 = vmatprep.mubr.msk.f32.mxu0 %vm4276_vm14, %v4842_v1 }
 0x440   :  { %1032 = vrot.lane.b32.xlu1 %v849_v32, %s4280_s4  ;;  %1082 = vrot.lane.b32.xlu0 %v855_v34, %s4282_s6  ;;  %v1004_v35 = vpop.permute.xlu0 %1003 }
 0x441   :  { %3841 = vmatmul.mubr.msk.f32.gmra.mrb[56].mxu0 %vm889_vm15, %v1227_v45  ;;  %1020 = vst.msk [vmem:[#allocation4 + $0x100] sm:$0xff] %vm889_vm15, %v1004_v35  ;;  %v1235_v41 = vld [vmem:[#allocation4 + $0xe8] sm:$0xff]  ;;  %v1264_v45 = vld [vmem:[#allocation4 + $0x1d0] sm:$0xff] }
 0x442   :  { %3843 = vmatprep.mubr.msk.f32.mxu0 %vm4276_vm14, %v4842_v1 }
 0x444   :  { %1036 = vrot.lane.b32.xlu1 %v855_v34, %s4280_s4  ;;  %1084 = vrot.lane.b32.xlu0 %v861_v36, %s4282_s6  ;;  %v1006_v37 = vpop.permute.xlu0 %1005  ;;  %v1237_v43 = vld [vmem:[#allocation4 + $0xf8] sm:$0xff] }
 0x445   :  { %3844 = vmatmul.mubr.msk.f32.gmra.mrb[58].mxu0 %vm889_vm15, %v1228_v50  ;;  %1021 = vst.msk [vmem:[#allocation4 + $0x108] sm:$0xff] %vm889_vm15, %v1006_v37 }
 0x446   :  { %3846 = vmatprep.mubr.msk.f32.mxu0 %vm4276_vm14, %v4842_v1 }
 0x448   :  { %1040 = vrot.lane.b32.xlu1 %v861_v36, %s4280_s4  ;;  %1086 = vrot.lane.b32.xlu0 %v867_v38, %s4282_s6  ;;  %v1238_v46 = vld [vmem:[#allocation4 + $0x100] sm:$0xff]  ;;  %v1031_v55 = vpop.permute.xlu0 %1030 }
 0x449   :  { %3847 = vmatmul.mubr.msk.f32.gmra.mrb[60].mxu0 %vm889_vm15, %v1229_v52 }
 0x44a   :  { %3849 = vmatprep.mubr.msk.f32.mxu0 %vm4276_vm14, %v4842_v1 }
 0x44c   :  { %1044 = vrot.lane.b32.xlu1 %v867_v38, %s4280_s4  ;;  %1088 = vrot.lane.b32.xlu0 %v4855_v8, %s4282_s6  ;;  %v1239_v51 = vld [vmem:[#allocation4 + $0x108] sm:$0xff]  ;;  %v1035_v60 = vpop.permute.xlu0 %1034 }
 0x44d   :  { %3850 = vmatmul.mubr.msk.f32.gmra.mrb[62].mxu0 %vm889_vm15, %v1230_v39 }
 0x44e   :  { %3852 = vmatprep.mubr.msk.f32.mxu0 %vm4276_vm14, %v4842_v1 }
 0x450   :  { %1048 = vrot.lane.b32.xlu1 %v4855_v8, %s4280_s4  ;;  %1090 = vrot.lane.b32.xlu0 %v4870_v20, %s4282_s6  ;;  %v1039_v0 = vpop.permute.xlu0 %1038 }
 0x451   :  { %3853 = vmatmul.mubr.msk.f32.gmra.mrb[64].mxu0 %vm889_vm15, %v1231_v57 }
 0x452   :  { %3855 = vmatprep.mubr.msk.f32.mxu0 %vm4276_vm14, %v4842_v1 }
 0x454   :  { %1052 = vrot.lane.b32.xlu1 %v4870_v20, %s4280_s4  ;;  %1092 = vrot.lane.b32.xlu0 %v885_v27, %s4282_s6  ;;  %v4999_v5 = vpop.permute.xlu0 %1042 }
 0x455   :  { %3856 = vmatmul.mubr.msk.f32.gmra.mrb[66].mxu0 %vm889_vm15, %v1232_v12 }
 0x456   :  { %3858 = vmatprep.mubr.msk.f32.mxu0 %vm4276_vm14, %v4842_v1 }
 0x458   :  { %1054 = vrot.lane.b32.xlu1 %v4761_v26, %s4280_s4  ;;  %1108 = vrot.lane.b32.xlu0 %v849_v32, %s4281_s5  ;;  %v1236_v26 = vld [vmem:[#allocation4 + $0xf0] sm:$0xff] }
 0x459   :  { %3859 = vmatmul.mubr.msk.f32.gmra.mrb[68].mxu0 %vm889_vm15, %v1233_v7  ;;  %v1266_v7 = vld [vmem:[#allocation4 + $0x1e0] sm:$0xff] }
 0x45a   :  { %3861 = vmatprep.mubr.msk.f32.mxu0 %vm4276_vm14, %v4842_v1 }
 0x45c   :  { %1152 = vrot.lane.b32.xlu1 %v4821_v54, %s4267_s20  ;;  %1110 = vrot.lane.b32.xlu0 %v855_v34, %s4281_s5 }
 0x45d   :  { %3862 = vmatmul.mubr.msk.f32.gmra.mrb[70].mxu0 %vm889_vm15, %v1234_v40 }
 0x45e   :  { %3864 = vmatprep.mubr.msk.f32.mxu0 %vm4276_vm14, %v4842_v1 }
 0x460   :  { %1154 = vrot.lane.b32.xlu1 %v4833_v59, %s4267_s20  ;;  %1112 = vrot.lane.b32.xlu0 %v861_v36, %s4281_s5 }
 0x461   :  { %3865 = vmatmul.mubr.msk.f32.gmra.mrb[72].mxu0 %vm889_vm15, %v1235_v41 }
 0x462   :  { %3867 = vmatprep.mubr.msk.f32.mxu0 %vm4276_vm14, %v4842_v1 }
 0x464   :  { %1156 = vrot.lane.b32.xlu1 %v4847_v3, %s4267_s20  ;;  %1114 = vrot.lane.b32.xlu0 %v867_v38, %s4281_s5  ;;  %v1265_v38 = vld [vmem:[#allocation4 + $0x1d8] sm:$0xff] }
 0x465   :  { %3868 = vmatmul.mubr.msk.f32.gmra.mrb[74].mxu0 %vm889_vm15, %v1236_v26 }
 0x466   :  { %3870 = vmatprep.mubr.msk.f32.mxu0 %vm4276_vm14, %v4842_v1 }
 0x468   :  { %1158 = vrot.lane.b32.xlu1 %v4860_v16, %s4267_s20  ;;  %1190 = vrot.lane.b32.xlu0 %v4888_v29, %s4277_s27 }
 0x469   :  { %3871 = vmatmul.mubr.msk.f32.gmra.mrb[76].mxu0 %vm889_vm15, %v1237_v43  ;;  %v1580_v42 = vpop.f32.mrb[14].mxu0 }
 0x46a   :  { %3873 = vmatprep.mubr.msk.f32.mxu0 %vm4276_vm14, %v4842_v1  ;;  %v3779_v48 = vpop.f32.mrb[15].mxu0 }
 0x46c   :  { %1160 = vrot.lane.b32.xlu1 %v4875_v23, %s4267_s20 }
 0x46d   :  { %3874 = vmatmul.mubr.msk.f32.gmra.mrb[78].mxu0 %vm889_vm15, %v1238_v46  ;;  %v1585_v49 = vpop.f32.mrb[16].mxu0 }
 0x46e   :  { %3876 = vmatprep.mubr.msk.f32.mxu0 %vm4276_vm14, %v4842_v1  ;;  %v3782_v53 = vpop.f32.mrb[17].mxu0 }
 0x46f   :  { %v1268_v53 = vld [vmem:[#allocation4 + $0x1f0] sm:$0xff] }
 0x470   :  { %1162 = vrot.lane.b32.xlu1 %v4888_v29, %s4267_s20  ;;  %s4284_s20 = smov 26  }
 0x471   :  { %3877 = vmatmul.mubr.msk.f32.gmra.mrb[80].mxu0 %vm889_vm15, %v1239_v51  ;;  %v1590_v19 = vpop.f32.mrb[18].mxu0 }
 0x472   :  { %3879 = vmatprep.mubr.msk.f32.mxu0 %vm4276_vm14, %v4842_v1  ;;  %v3785_v56 = vpop.f32.mrb[19].mxu0  ;;  %1990 = vrot.lane.b32.xlu0 %v1590_v19, %s4283_s7 }
 0x474   :  { %1178 = vrot.lane.b32.xlu1 %v4807_v44, %s4277_s27 }
 0x475   :  { %v1595_v58 = vpop.f32.mrb[20].mxu0 }
 0x476   :  { %v3788_v11 = vpop.f32.mrb[21].mxu0 }
 0x478   :  { %1180 = vrot.lane.b32.xlu1 %v4821_v54, %s4277_s27  ;;  %v5005_v54 = vpop.permute.xlu0 %1046 }
 0x47a   :  { %v1600_v62 = vpop.f32.mrb[22].mxu0 }
 0x47b   :  { %1994 = vrot.lane.b32.xlu0 %v1600_v62, %s4283_s7  ;;  %v3791_v63 = vpop.f32.mrb[23].mxu0 }
 0x47c   :  { %1182 = vrot.lane.b32.xlu1 %v4833_v59, %s4277_s27  ;;  %v5007_v59 = vpop.permute.xlu0 %1050 }
 0x47e   :  { %v1605_v10 = vpop.f32.mrb[24].mxu0 }
 0x47f   :  { %v3794_v4 = vpop.f32.mrb[25].mxu0  ;;  %1996 = vrot.lane.b32.xlu0 %v1605_v10, %s4283_s7 }
 0x480   :  { %1184 = vrot.lane.b32.xlu1 %v4847_v3, %s4277_s27 }
 0x482   :  { %v1610_v44 = vpop.f32.mrb[26].mxu0 }
 0x483   :  { %v3797_v9 = vpop.f32.mrb[27].mxu0 }
 0x484   :  { %1186 = vrot.lane.b32.xlu1 %v4860_v16, %s4277_s27 }
 0x488   :  { %1188 = vrot.lane.b32.xlu1 %v4875_v23, %s4277_s27 }
 0x48c   :  { %1986 = vrot.lane.b32.xlu1 %v1580_v42, %s4283_s7  ;;  %v1267_v42 = vld [vmem:[#allocation4 + $0x1e8] sm:$0xff] }
 0x490   :  { %1988 = vrot.lane.b32.xlu1 %v1585_v49, %s4283_s7 }
 0x493   :  { %v1151_v8 = vpop.permute.xlu0 %1150 }
 0x494   :  { %1171 = vst.msk [vmem:[#allocation4 + $0x1f8] sm:$0xff] %vm889_vm15, %v1151_v8  ;;  %1992 = vrot.lane.b32.xlu1 %v1595_v58, %s4283_s7 }
 0x498   :  { %1998 = vrot.lane.b32.xlu1 %v1610_v44, %s4283_s7 }
 0x49b   :  { %v1269_v58 = vld [vmem:[#allocation4 + $0x1f8] sm:$0xff] }
 0x4a2   :  { %v1117_v3 = vpop.permute.xlu1 %1116 }
 0x4a3   :  { %1133 = vst.msk [vmem:[#allocation4 + $0x1a8] sm:$0xff] %vm889_vm15, %v1117_v3 }
 0x4a6   :  { %v1119_v14 = vpop.permute.xlu1 %1118 }
 0x4a7   :  { %1134 = vst.msk [vmem:[#allocation4 + $0x1b0] sm:$0xff] %vm889_vm15, %v1119_v14 }
 0x4aa   :  { %v5012_v15 = vpop.permute.xlu0 %1056  ;;  %v1121_v16 = vpop.permute.xlu1 %1120  ;;  %v1259_v47 = vld [vmem:[#allocation4 + $0x1a8] sm:$0xff] }
 0x4ab   :  { %1135 = vst.msk [vmem:[#allocation4 + $0x1b8] sm:$0xff] %vm889_vm15, %v1121_v16  ;;  %3937 = vmatmul.mubr.msk.f32.vlgmr.msra.gmra.mrb[14].mxu1 %vm889_vm15, %v1259_v47 }
 0x4ac   :  { %3939 = vmatprep.mubr.msk.f32.mxu1 %vm4276_vm14, %v4842_v1 }
 0x4ae   :  { %v1081_v17 = vpop.permute.xlu0 %1080  ;;  %v1008_v18 = vpop.permute.xlu1 %1007  ;;  %v1260_v20 = vld [vmem:[#allocation4 + $0x1b0] sm:$0xff] }
 0x4af   :  { %1101 = vst.msk [vmem:[#allocation4 + $0x150] sm:$0xff] %vm889_vm15, %v1081_v17  ;;  %1022 = vst.msk [vmem:[#allocation4 + $0x110] sm:$0xff] %vm889_vm15, %v1008_v18  ;;  %3940 = vmatmul.mubr.msk.f32.gmra.mrb[16].mxu1 %vm889_vm15, %v1260_v20 }
 0x4b0   :  { %3942 = vmatprep.mubr.msk.f32.mxu1 %vm4276_vm14, %v4842_v1 }
 0x4b2   :  { %v1083_v61 = vpop.permute.xlu0 %1082  ;;  %v1033_v22 = vpop.permute.xlu1 %1032  ;;  %v1261_v23 = vld [vmem:[#allocation4 + $0x1b8] sm:$0xff] }
 0x4b3   :  { %1102 = vst.msk [vmem:[#allocation4 + $0x158] sm:$0xff] %vm889_vm15, %v1083_v61  ;;  %v1059_v24 = vsel %vm1058_vm2, %v1031_v55, %v1033_v22  ;;  %3943 = vmatmul.mubr.msk.f32.gmra.mrb[18].mxu1 %vm889_vm15, %v1261_v23 }
 0x4b4   :  { %1073 = vst.msk [vmem:[#allocation4 + $0x118] sm:$0xff] %vm889_vm15, %v1059_v24  ;;  %3945 = vmatprep.mubr.msk.f32.mxu1 %vm4276_vm14, %v4842_v1 }
 0x4b6   :  { %v1085_v21 = vpop.permute.xlu0 %1084  ;;  %v1037_v25 = vpop.permute.xlu1 %1036  ;;  %v1240_v27 = vld [vmem:[#allocation4 + $0x110] sm:$0xff] }
 0x4b7   :  { %1103 = vst.msk [vmem:[#allocation4 + $0x160] sm:$0xff] %vm889_vm15, %v1085_v21  ;;  %v1060_v2 = vsel %vm1058_vm2, %v1035_v60, %v1037_v25  ;;  %3880 = vmatmul.mubr.msk.f32.gmra.mrb[82].mxu0 %vm889_vm15, %v1240_v27  ;;  %3946 = vmatmul.mubr.msk.f32.gmra.mrb[20].mxu1 %vm889_vm15, %v1262_v28 }
 0x4b8   :  { %1074 = vst.msk [vmem:[#allocation4 + $0x120] sm:$0xff] %vm889_vm15, %v1060_v2  ;;  %3948 = vmatprep.mubr.msk.f32.mxu1 %vm4276_vm14, %v4842_v1  ;;  %3882 = vmatprep.mubr.msk.f32.mxu0 %vm4276_vm14, %v4842_v1 }
 0x4ba   :  { %v1087_v29 = vpop.permute.xlu0 %1086  ;;  %v1041_v30 = vpop.permute.xlu1 %1040 }
 0x4bb   :  { %1104 = vst.msk [vmem:[#allocation4 + $0x168] sm:$0xff] %vm889_vm15, %v1087_v29  ;;  %v1061_v32 = vsel %vm1058_vm2, %v1039_v0, %v1041_v30  ;;  %3949 = vmatmul.mubr.msk.f32.gmra.mrb[22].mxu1 %vm889_vm15, %v1263_v31  ;;  %v1241_v13 = vld [vmem:[#allocation4 + $0x118] sm:$0xff]  ;;  %v1248_v0 = vld [vmem:[#allocation4 + $0x150] sm:$0xff] }
 0x4bc   :  { %1075 = vst.msk [vmem:[#allocation4 + $0x128] sm:$0xff] %vm889_vm15, %v1061_v32  ;;  %3883 = vmatmul.mubr.msk.f32.gmra.mrb[84].mxu0 %vm889_vm15, %v1241_v13  ;;  %3951 = vmatprep.mubr.msk.f32.mxu1 %vm4276_vm14, %v4842_v1 }
 0x4bd   :  { %3885 = vmatprep.mubr.msk.f32.mxu0 %vm4276_vm14, %v4842_v1 }
 0x4be   :  { %v1089_v33 = vpop.permute.xlu0 %1088  ;;  %v1045_v34 = vpop.permute.xlu1 %1044  ;;  %v1250_v3 = vld [vmem:[#allocation4 + $0x160] sm:$0xff] }
 0x4bf   :  { %1105 = vst.msk [vmem:[#allocation4 + $0x170] sm:$0xff] %vm889_vm15, %v1089_v33  ;;  %v1062_v35 = vsel %vm1058_vm2, %v4999_v5, %v1045_v34  ;;  %3952 = vmatmul.mubr.msk.f32.gmra.mrb[24].mxu1 %vm889_vm15, %v1264_v45  ;;  %v1242_v36 = vld [vmem:[#allocation4 + $0x120] sm:$0xff]  ;;  %v1249_v5 = vld [vmem:[#allocation4 + $0x158] sm:$0xff] }
 0x4c0   :  { %1076 = vst.msk [vmem:[#allocation4 + $0x130] sm:$0xff] %vm889_vm15, %v1062_v35  ;;  %3886 = vmatmul.mubr.msk.f32.gmra.mrb[86].mxu0 %vm889_vm15, %v1242_v36  ;;  %3954 = vmatprep.mubr.msk.f32.mxu1 %vm4276_vm14, %v4842_v1 }
 0x4c1   :  { %3888 = vmatprep.mubr.msk.f32.mxu0 %vm4276_vm14, %v4842_v1 }
 0x4c2   :  { %v1091_v50 = vpop.permute.xlu0 %1090  ;;  %v1049_v37 = vpop.permute.xlu1 %1048  ;;  %v1251_v17 = vld [vmem:[#allocation4 + $0x168] sm:$0xff] }
 0x4c3   :  { %1106 = vst.msk [vmem:[#allocation4 + $0x178] sm:$0xff] %vm889_vm15, %v1091_v50  ;;  %v1063_v52 = vsel %vm1058_vm2, %v5005_v54, %v1049_v37  ;;  %3955 = vmatmul.mubr.msk.f32.gmra.mrb[26].mxu1 %vm889_vm15, %v1265_v38  ;;  %v1243_v39 = vld [vmem:[#allocation4 + $0x128] sm:$0xff] }
 0x4c4   :  { %1077 = vst.msk [vmem:[#allocation4 + $0x138] sm:$0xff] %vm889_vm15, %v1063_v52  ;;  %3889 = vmatmul.mubr.msk.f32.gmra.mrb[88].mxu0 %vm889_vm15, %v1243_v39  ;;  %3957 = vmatprep.mubr.msk.f32.mxu1 %vm4276_vm14, %v4842_v1 }
 0x4c5   :  { %3891 = vmatprep.mubr.msk.f32.mxu0 %vm4276_vm14, %v4842_v1 }
 0x4c6   :  { %v1093_v57 = vpop.permute.xlu0 %1092  ;;  %v1053_v12 = vpop.permute.xlu1 %1052  ;;  %v1252_v24 = vld [vmem:[#allocation4 + $0x170] sm:$0xff] }
 0x4c7   :  { %1107 = vst.msk [vmem:[#allocation4 + $0x180] sm:$0xff] %vm889_vm15, %v1093_v57  ;;  %v1064_v40 = vsel %vm1058_vm2, %v5007_v59, %v1053_v12  ;;  %3958 = vmatmul.mubr.msk.f32.gmra.mrb[28].mxu1 %vm889_vm15, %v1266_v7  ;;  %v1244_v41 = vld [vmem:[#allocation4 + $0x130] sm:$0xff] }
 0x4c8   :  { %1078 = vst.msk [vmem:[#allocation4 + $0x140] sm:$0xff] %vm889_vm15, %v1064_v40  ;;  %3892 = vmatmul.mubr.msk.f32.gmra.mrb[90].mxu0 %vm889_vm15, %v1244_v41  ;;  %3960 = vmatprep.mubr.msk.f32.mxu1 %vm4276_vm14, %v4842_v1 }
 0x4c9   :  { %3894 = vmatprep.mubr.msk.f32.mxu0 %vm4276_vm14, %v4842_v1 }
 0x4ca   :  { %v1109_v26 = vpop.permute.xlu0 %1108  ;;  %v1055_v43 = vpop.permute.xlu1 %1054  ;;  %v1253_v2 = vld [vmem:[#allocation4 + $0x178] sm:$0xff] }
 0x4cb   :  { %1129 = vst.msk [vmem:[#allocation4 + $0x188] sm:$0xff] %vm889_vm15, %v1109_v26  ;;  %v1065_v46 = vsel %vm1058_vm2, %v1055_v43, %v5012_v15  ;;  %3961 = vmatmul.mubr.msk.f32.gmra.mrb[30].mxu1 %vm889_vm15, %v1267_v42  ;;  %v1245_v48 = vld [vmem:[#allocation4 + $0x138] sm:$0xff]  ;;  %vm2223_vm2 = vcmask 851672  }
 0x4cc   :  { %1079 = vst.msk [vmem:[#allocation4 + $0x148] sm:$0xff] %vm889_vm15, %v1065_v46  ;;  %3895 = vmatmul.mubr.msk.f32.gmra.mrb[92].mxu0 %vm889_vm15, %v1245_v48  ;;  %3963 = vmatprep.mubr.msk.f32.mxu1 %vm4276_vm14, %v4842_v1 }
 0x4cd   :  { %3897 = vmatprep.mubr.msk.f32.mxu0 %vm4276_vm14, %v4842_v1 }
 0x4ce   :  { %v1111_v49 = vpop.permute.xlu0 %1110  ;;  %v1153_v51 = vpop.permute.xlu1 %1152  ;;  %v1254_v33 = vld [vmem:[#allocation4 + $0x180] sm:$0xff] }
 0x4cf   :  { %1130 = vst.msk [vmem:[#allocation4 + $0x190] sm:$0xff] %vm889_vm15, %v1111_v49  ;;  %1172 = vst.msk [vmem:[#allocation4 + $0x200] sm:$0xff] %vm889_vm15, %v1153_v51  ;;  %3964 = vmatmul.mubr.msk.f32.gmra.mrb[32].mxu1 %vm889_vm15, %v1268_v53  ;;  %v1246_v55 = vld [vmem:[#allocation4 + $0x140] sm:$0xff] }
 0x4d0   :  { %3898 = vmatmul.mubr.msk.f32.gmra.mrb[94].mxu0 %vm889_vm15, %v1246_v55  ;;  %3966 = vmatprep.mubr.msk.f32.mxu1 %vm4276_vm14, %v4842_v1 }
 0x4d1   :  { %3900 = vmatprep.mubr.msk.f32.mxu0 %vm4276_vm14, %v4842_v1 }
 0x4d2   :  { %v1113_v19 = vpop.permute.xlu0 %1112  ;;  %v1155_v56 = vpop.permute.xlu1 %1154  ;;  %v1255_v37 = vld [vmem:[#allocation4 + $0x188] sm:$0xff] }
 0x4d3   :  { %1131 = vst.msk [vmem:[#allocation4 + $0x198] sm:$0xff] %vm889_vm15, %v1113_v19  ;;  %1173 = vst.msk [vmem:[#allocation4 + $0x208] sm:$0xff] %vm889_vm15, %v1155_v56  ;;  %3967 = vmatmul.mubr.msk.f32.gmra.mrb[34].mxu1 %vm889_vm15, %v1269_v58  ;;  %v1247_v11 = vld [vmem:[#allocation4 + $0x148] sm:$0xff] }
 0x4d4   :  { %3901 = vmatmul.mubr.msk.f32.gmra.mrb[96].mxu0 %vm889_vm15, %v1247_v11  ;;  %3969 = vmatprep.mubr.msk.f32.mxu1 %vm4276_vm14, %v4842_v1 }
 0x4d5   :  { %3903 = vmatprep.mubr.msk.f32.mxu0 %vm4276_vm14, %v4842_v1 }
 0x4d6   :  { %v1115_v60 = vpop.permute.xlu0 %1114  ;;  %v1157_v62 = vpop.permute.xlu1 %1156  ;;  %v1270_v63 = vld [vmem:[#allocation4 + $0x200] sm:$0xff]  ;;  %v1256_v12 = vld [vmem:[#allocation4 + $0x190] sm:$0xff] }
 0x4d7   :  { %1132 = vst.msk [vmem:[#allocation4 + $0x1a0] sm:$0xff] %vm889_vm15, %v1115_v60  ;;  %1174 = vst.msk [vmem:[#allocation4 + $0x210] sm:$0xff] %vm889_vm15, %v1157_v62  ;;  %3970 = vmatmul.mubr.msk.f32.gmra.mrb[36].mxu1 %vm889_vm15, %v1270_v63 }
 0x4d8   :  { %3904 = vmatmul.mubr.msk.f32.gmra.mrb[98].mxu0 %vm889_vm15, %v1248_v0  ;;  %3972 = vmatprep.mubr.msk.f32.mxu1 %vm4276_vm14, %v4842_v1 }
 0x4d9   :  { %3906 = vmatprep.mubr.msk.f32.mxu0 %vm4276_vm14, %v4842_v1 }
 0x4da   :  { %v1191_v10 = vpop.permute.xlu0 %1190  ;;  %v1159_v4 = vpop.permute.xlu1 %1158  ;;  %v1271_v44 = vld [vmem:[#allocation4 + $0x208] sm:$0xff]  ;;  %v1257_v43 = vld [vmem:[#allocation4 + $0x198] sm:$0xff] }
 0x4db   :  { %1205 = vst.msk [vmem:[#allocation4 + $0x260] sm:$0xff] %vm889_vm15, %v1191_v10  ;;  %1175 = vst.msk [vmem:[#allocation4 + $0x218] sm:$0xff] %vm889_vm15, %v1159_v4  ;;  %3973 = vmatmul.mubr.msk.f32.gmra.mrb[38].mxu1 %vm889_vm15, %v1271_v44 }
 0x4dc   :  { %3907 = vmatmul.mubr.msk.f32.gmra.mrb[100].mxu0 %vm889_vm15, %v1249_v5  ;;  %3975 = vmatprep.mubr.msk.f32.mxu1 %vm4276_vm14, %v4842_v1  ;;  %v1615_v9 = vpop.f32.mrb[28].mxu0 }
 0x4dd   :  { %3909 = vmatprep.mubr.msk.f32.mxu0 %vm4276_vm14, %v4842_v1  ;;  %v3800_v54 = vpop.f32.mrb[29].mxu0  ;;  %2022 = vrot.lane.b32.xlu0 %v1615_v9, %s4284_s20 }
 0x4de   :  { %v1161_v59 = vpop.permute.xlu1 %1160  ;;  %v1272_v8 = vld [vmem:[#allocation4 + $0x210] sm:$0xff]  ;;  %v1258_v51 = vld [vmem:[#allocation4 + $0x1a0] sm:$0xff] }
 0x4df   :  { %1176 = vst.msk [vmem:[#allocation4 + $0x220] sm:$0xff] %vm889_vm15, %v1161_v59  ;;  %3976 = vmatmul.mubr.msk.f32.gmra.mrb[40].mxu1 %vm889_vm15, %v1272_v8 }
 0x4e0   :  { %3910 = vmatmul.mubr.msk.f32.gmra.mrb[102].mxu0 %vm889_vm15, %v1250_v3  ;;  %3978 = vmatprep.mubr.msk.f32.mxu1 %vm4276_vm14, %v4842_v1  ;;  %v1620_v14 = vpop.f32.mrb[30].mxu0 }
 0x4e1   :  { %3912 = vmatprep.mubr.msk.f32.mxu0 %vm4276_vm14, %v4842_v1  ;;  %v3803_v15 = vpop.f32.mrb[31].mxu0  ;;  %2024 = vrot.lane.b32.xlu0 %v1620_v14, %s4284_s20 }
 0x4e2   :  { %v1163_v16 = vpop.permute.xlu1 %1162  ;;  %v1273_v47 = vld [vmem:[#allocation4 + $0x218] sm:$0xff]  ;;  %v1282_v60 = vld [vmem:[#allocation4 + $0x260] sm:$0xff] }
 0x4e3   :  { %1177 = vst.msk [vmem:[#allocation4 + $0x228] sm:$0xff] %vm889_vm15, %v1163_v16  ;;  %3979 = vmatmul.mubr.msk.f32.gmra.mrb[42].mxu1 %vm889_vm15, %v1273_v47 }
 0x4e4   :  { %3913 = vmatmul.mubr.msk.f32.gmra.mrb[104].mxu0 %vm889_vm15, %v1251_v17  ;;  %3981 = vmatprep.mubr.msk.f32.mxu1 %vm4276_vm14, %v4842_v1  ;;  %v1625_v18 = vpop.f32.mrb[32].mxu0  ;;  %v1991_v20 = vpop.permute.xlu0 %1990 }
 0x4e5   :  { %3915 = vmatprep.mubr.msk.f32.mxu0 %vm4276_vm14, %v4842_v1  ;;  %v3806_v61 = vpop.f32.mrb[33].mxu0  ;;  %2010 = vst.msk [vmem:[#allocation5 + $0x20] sm:$0xff] %vm2007_vm3, %v1991_v20  ;;  %2026 = vrot.lane.b32.xlu1 %v1625_v18, %s4284_s20 }
 0x4e6   :  { %v1179_v22 = vpop.permute.xlu1 %1178  ;;  %v1274_v23 = vld [vmem:[#allocation4 + $0x220] sm:$0xff] }
 0x4e7   :  { %1199 = vst.msk [vmem:[#allocation4 + $0x230] sm:$0xff] %vm889_vm15, %v1179_v22  ;;  %3982 = vmatmul.mubr.msk.f32.gmra.mrb[44].mxu1 %vm889_vm15, %v1274_v23 }
 0x4e8   :  { %3916 = vmatmul.mubr.msk.f32.gmra.mrb[106].mxu0 %vm889_vm15, %v1252_v24  ;;  %3984 = vmatprep.mubr.msk.f32.mxu1 %vm4276_vm14, %v4842_v1  ;;  %v1630_v21 = vpop.f32.mrb[34].mxu0 }
 0x4e9   :  { %3918 = vmatprep.mubr.msk.f32.mxu0 %vm4276_vm14, %v4842_v1  ;;  %v3809_v25 = vpop.f32.mrb[35].mxu0  ;;  %2028 = vrot.lane.b32.xlu0 %v1630_v21, %s4284_s20 }
 0x4ea   :  { %v1181_v27 = vpop.permute.xlu1 %1180  ;;  %v1275_v28 = vld [vmem:[#allocation4 + $0x228] sm:$0xff] }
 0x4eb   :  { %1200 = vst.msk [vmem:[#allocation4 + $0x238] sm:$0xff] %vm889_vm15, %v1181_v27  ;;  %3985 = vmatmul.mubr.msk.f32.gmra.mrb[46].mxu1 %vm889_vm15, %v1275_v28 }
 0x4ec   :  { %3919 = vmatmul.mubr.msk.f32.gmra.mrb[108].mxu0 %vm889_vm15, %v1253_v2  ;;  %3987 = vmatprep.mubr.msk.f32.mxu1 %vm4276_vm14, %v4842_v1  ;;  %v5150_v29 = vpop.f32.mrb[36].mxu0 }
 0x4ed   :  { %3921 = vmatprep.mubr.msk.f32.mxu0 %vm4276_vm14, %v4842_v1  ;;  %v3812_v30 = vpop.f32.mrb[37].mxu0  ;;  %v1995_v31 = vpop.permute.xlu0 %1994 }
 0x4ee   :  { %v1183_v32 = vpop.permute.xlu1 %1182  ;;  %v1276_v13 = vld [vmem:[#allocation4 + $0x230] sm:$0xff]  ;;  %2012 = vst.msk [vmem:[#allocation5 + $0x40] sm:$0xff] %vm2007_vm3, %v1995_v31 }
 0x4ef   :  { %1201 = vst.msk [vmem:[#allocation4 + $0x240] sm:$0xff] %vm889_vm15, %v1183_v32  ;;  %3988 = vmatmul.mubr.msk.f32.gmra.mrb[48].mxu1 %vm889_vm15, %v1276_v13 }
 0x4f0   :  { %3922 = vmatmul.mubr.msk.f32.gmra.mrb[110].mxu0 %vm889_vm15, %v1254_v33  ;;  %3990 = vmatprep.mubr.msk.f32.mxu1 %vm4276_vm14, %v4842_v1  ;;  %v5160_v34 = vpop.f32.mrb[38].mxu0 }
 0x4f1   :  { %3924 = vmatprep.mubr.msk.f32.mxu0 %vm4276_vm14, %v4842_v1  ;;  %v3815_v45 = vpop.f32.mrb[39].mxu0  ;;  %v1997_v35 = vpop.permute.xlu0 %1996 }
 0x4f2   :  { %v1185_v36 = vpop.permute.xlu1 %1184  ;;  %v1277_v50 = vld [vmem:[#allocation4 + $0x238] sm:$0xff]  ;;  %2013 = vst.msk [vmem:[#allocation5 + $0x50] sm:$0xff] %vm2007_vm3, %v1997_v35 }
 0x4f3   :  { %1202 = vst.msk [vmem:[#allocation4 + $0x248] sm:$0xff] %vm889_vm15, %v1185_v36  ;;  %3991 = vmatmul.mubr.msk.f32.gmra.mrb[50].mxu1 %vm889_vm15, %v1277_v50 }
 0x4f4   :  { %3925 = vmatmul.mubr.msk.f32.gmra.mrb[112].mxu0 %vm889_vm15, %v1255_v37  ;;  %3993 = vmatprep.mubr.msk.f32.mxu1 %vm4276_vm14, %v4842_v1  ;;  %v5170_v38 = vpop.f32.mrb[40].mxu0 }
 0x4f5   :  { %3927 = vmatprep.mubr.msk.f32.mxu0 %vm4276_vm14, %v4842_v1  ;;  %v3818_v52 = vpop.f32.mrb[41].mxu0 }
 0x4f6   :  { %v1187_v39 = vpop.permute.xlu1 %1186  ;;  %v1278_v57 = vld [vmem:[#allocation4 + $0x240] sm:$0xff] }
 0x4f7   :  { %1203 = vst.msk [vmem:[#allocation4 + $0x250] sm:$0xff] %vm889_vm15, %v1187_v39  ;;  %3994 = vmatmul.mubr.msk.f32.gmra.mrb[52].mxu1 %vm889_vm15, %v1278_v57 }
 0x4f8   :  { %3928 = vmatmul.mubr.msk.f32.gmra.mrb[114].mxu0 %vm889_vm15, %v1256_v12  ;;  %3996 = vmatprep.mubr.msk.f32.mxu1 %vm4276_vm14, %v4842_v1  ;;  %v5179_v7 = vpop.f32.mrb[42].mxu0 }
 0x4f9   :  { %3930 = vmatprep.mubr.msk.f32.mxu0 %vm4276_vm14, %v4842_v1  ;;  %v3821_v40 = vpop.f32.mrb[43].mxu0 }
 0x4fa   :  { %v1189_v41 = vpop.permute.xlu1 %1188  ;;  %v1279_v26 = vld [vmem:[#allocation4 + $0x248] sm:$0xff] }
 0x4fb   :  { %1204 = vst.msk [vmem:[#allocation4 + $0x258] sm:$0xff] %vm889_vm15, %v1189_v41  ;;  %3997 = vmatmul.mubr.msk.f32.gmra.mrb[54].mxu1 %vm889_vm15, %v1279_v26 }
 0x4fc   :  { %3931 = vmatmul.mubr.msk.f32.gmra.mrb[116].mxu0 %vm889_vm15, %v1257_v43  ;;  %3999 = vmatprep.mubr.msk.f32.mxu1 %vm4276_vm14, %v4842_v1  ;;  %v5188_v42 = vpop.f32.mrb[44].mxu0 }
 0x4fd   :  { %3933 = vmatprep.mubr.msk.f32.mxu0 %vm4276_vm14, %v4842_v1  ;;  %v3824_v46 = vpop.f32.mrb[45].mxu0 }
 0x4fe   :  { %v1280_v48 = vld [vmem:[#allocation4 + $0x250] sm:$0xff]  ;;  %v1987_v49 = vpop.permute.xlu1 %1986 }
 0x4ff   :  { %4000 = vmatmul.mubr.msk.f32.gmra.mrb[56].mxu1 %vm889_vm15, %v1280_v48  ;;  %2008 = vst.msk [vmem:[#allocation5] sm:$0xff] %vm2007_vm3, %v1987_v49 }
 0x500   :  { %3934 = vmatmul.mubr.msk.f32.gmra.mrb[118].mxu0 %vm889_vm15, %v1258_v51  ;;  %4002 = vmatprep.mubr.msk.f32.mxu1 %vm4276_vm14, %v4842_v1  ;;  %v5197_v53 = vpop.f32.mrb[46].mxu0 }
 0x501   :  { %v3827_v55 = vpop.f32.mrb[47].mxu0 }
 0x502   :  { %v1281_v19 = vld [vmem:[#allocation4 + $0x258] sm:$0xff]  ;;  %v1989_v56 = vpop.permute.xlu1 %1988 }
 0x503   :  { %4003 = vmatmul.mubr.msk.f32.gmra.mrb[58].mxu1 %vm889_vm15, %v1281_v19  ;;  %2009 = vst.msk [vmem:[#allocation5 + $0x10] sm:$0xff] %vm2007_vm3, %v1989_v56 }
 0x504   :  { %4005 = vmatprep.mubr.msk.f32.mxu1 %vm4276_vm14, %v4842_v1  ;;  %v5203_v58 = vpop.f32.mrb[48].mxu0  ;;  %vm2398_vm14 = vcmask 105472  }
 0x505   :  { %v3830_v11 = vpop.f32.mrb[49].mxu0 }
 0x506   :  { %v1993_v62 = vpop.permute.xlu1 %1992 }
 0x507   :  { %4006 = vmatmul.mubr.msk.f32.gmra.mrb[60].mxu1 %vm889_vm15, %v1282_v60  ;;  %2011 = vst.msk [vmem:[#allocation5 + $0x30] sm:$0xff] %vm2007_vm3, %v1993_v62  ;;  %vm2187_vm15 = vcmask 745072  }
 0x508   :  { %v5207_v63 = vpop.f32.mrb[50].mxu0 }
 0x509   :  { %v3833_v0 = vpop.f32.mrb[51].mxu0 }
 0x50a   :  { %v1999_v10 = vpop.permute.xlu1 %1998 }
 0x50b   :  { %2014 = vst.msk [vmem:[#allocation5 + $0x60] sm:$0xff] %vm2007_vm3, %v1999_v10  ;;  %vm2259_vm3 = vcmask 958272  }
 0x50c   :  { %v5210_v4 = vpop.f32.mrb[52].mxu0 }
 0x50d   :  { %v3836_v44 = vpop.f32.mrb[53].mxu0 }
 0x510   :  { %v5212_v5 = vpop.f32.mrb[54].mxu0 }
 0x511   :  { %v3839_v9 = vpop.f32.mrb[55].mxu0 }
 0x514   :  { %v5214_v54 = vpop.f32.mrb[56].mxu0 }
 0x515   :  { %v3842_v59 = vpop.f32.mrb[57].mxu0 }
 0x518   :  { %v5216_v8 = vpop.f32.mrb[58].mxu0 }
 0x519   :  { %v3845_v3 = vpop.f32.mrb[59].mxu0 }
 0x51c   :  { %v5218_v14 = vpop.f32.mrb[60].mxu0 }
 0x51d   :  { %v3848_v15 = vpop.f32.mrb[61].mxu0 }
 0x520   :  { %v5220_v16 = vpop.f32.mrb[62].mxu0 }
 0x521   :  { %v3851_v47 = vpop.f32.mrb[63].mxu0 }
 0x524   :  { %v5222_v17 = vpop.f32.mrb[64].mxu0 }
 0x525   :  { %v3854_v18 = vpop.f32.mrb[65].mxu0 }
 0x528   :  { %v5224_v20 = vpop.f32.mrb[66].mxu0 }
 0x529   :  { %v3857_v61 = vpop.f32.mrb[67].mxu0 }
 0x52c   :  { %v5226_v22 = vpop.f32.mrb[68].mxu0 }
 0x52d   :  { %v3860_v23 = vpop.f32.mrb[69].mxu0 }
 0x530   :  { %v5228_v24 = vpop.f32.mrb[70].mxu0 }
 0x531   :  { %v3863_v21 = vpop.f32.mrb[71].mxu0 }
 0x534   :  { %v5230_v25 = vpop.f32.mrb[72].mxu0 }
 0x535   :  { %v3866_v27 = vpop.f32.mrb[73].mxu0 }
 0x538   :  { %v5232_v28 = vpop.f32.mrb[74].mxu0 }
 0x539   :  { %v3869_v2 = vpop.f32.mrb[75].mxu0 }
 0x53c   :  { %v5234_v30 = vpop.f32.mrb[76].mxu0 }
 0x53d   :  { %v3872_v31 = vpop.f32.mrb[77].mxu0 }
 0x540   :  { %v5236_v32 = vpop.f32.mrb[78].mxu0 }
 0x541   :  { %v3875_v13 = vpop.f32.mrb[79].mxu0 }
 0x544   :  { %v5238_v33 = vpop.f32.mrb[80].mxu0 }
 0x545   :  { %v3878_v45 = vpop.f32.mrb[81].mxu0 }
 0x54f   :  { %v2023_v35 = vpop.permute.xlu0 %2022 }
 0x550   :  { %2044 = vst.msk [vmem:[#allocation5] sm:$0xff] %vm2043_vm4, %v2023_v35 }
 0x553   :  { %v2025_v36 = vpop.permute.xlu0 %2024 }
 0x554   :  { %2045 = vst.msk [vmem:[#allocation5 + $0x10] sm:$0xff] %vm2043_vm4, %v2025_v36 }
 0x557   :  { %v2027_v50 = vpop.permute.xlu1 %2026 }
 0x558   :  { %2046 = vst.msk [vmem:[#allocation5 + $0x20] sm:$0xff] %vm2043_vm4, %v2027_v50 }
 0x55b   :  { %v2029_v37 = vpop.permute.xlu0 %2028 }
 0x55c   :  { %2047 = vst.msk [vmem:[#allocation5 + $0x30] sm:$0xff] %vm2043_vm4, %v2029_v37 }
 0x57e   :  { %v1845_v52 = vpop.f32.mrb[14].mxu1 }
 0x57f   :  { %2246 = vrot.lane.b32.xlu1 %v1845_v52, %s4266_s19  ;;  %v3938_v39 = vpop.f32.mrb[15].mxu1 }
 0x582   :  { %v1850_v57 = vpop.f32.mrb[16].mxu1 }
 0x583   :  { %2030 = vrot.lane.b32.xlu1 %v5150_v29, %s4284_s20  ;;  %2248 = vrot.lane.b32.xlu0 %v1850_v57, %s4266_s19  ;;  %v3941_v12 = vpop.f32.mrb[17].mxu1 }
 0x586   :  { %v1855_v40 = vpop.f32.mrb[18].mxu1 }
 0x587   :  { %2032 = vrot.lane.b32.xlu0 %v5160_v34, %s4284_s20  ;;  %2250 = vrot.lane.b32.xlu1 %v1855_v40, %s4266_s19  ;;  %v3944_v41 = vpop.f32.mrb[19].mxu1 }
 0x58a   :  { %v5258_v26 = vpop.f32.mrb[82].mxu0  ;;  %v1860_v1 = vpop.f32.mrb[20].mxu1 }
 0x58b   :  { %2034 = vrot.lane.b32.xlu1 %v5170_v38, %s4284_s20  ;;  %2274 = vrot.lane.b32.xlu0 %v1860_v1, %s4285_s8  ;;  %v3881_v29 = vpop.f32.mrb[83].mxu0  ;;  %v3947_v43 = vpop.f32.mrb[21].mxu1 }
 0x58e   :  { %v1865_v46 = vpop.f32.mrb[22].mxu1 }
 0x58f   :  { %2058 = vrot.lane.b32.xlu1 %v5179_v7, %s4286_s9  ;;  %2276 = vrot.lane.b32.xlu0 %v1865_v46, %s4285_s8  ;;  %v5266_v34 = vpop.f32.mrb[84].mxu0  ;;  %v3950_v48 = vpop.f32.mrb[23].mxu1 }
 0x590   :  { %v3884_v49 = vpop.f32.mrb[85].mxu0 }
 0x592   :  { %v1870_v51 = vpop.f32.mrb[24].mxu1 }
 0x593   :  { %2060 = vrot.lane.b32.xlu1 %v5188_v42, %s4286_s9  ;;  %2062 = vrot.lane.b32.xlu0 %v5197_v53, %s4286_s9  ;;  %v5272_v38 = vpop.f32.mrb[86].mxu0  ;;  %v3953_v55 = vpop.f32.mrb[25].mxu1 }
 0x594   :  { %v3887_v19 = vpop.f32.mrb[87].mxu0 }
 0x596   :  { %v1875_v56 = vpop.f32.mrb[26].mxu1 }
 0x597   :  { %2278 = vrot.lane.b32.xlu1 %v1870_v51, %s4285_s8  ;;  %2280 = vrot.lane.b32.xlu0 %v1875_v56, %s4285_s8  ;;  %v5276_v7 = vpop.f32.mrb[88].mxu0  ;;  %v3956_v11 = vpop.f32.mrb[27].mxu1 }
 0x598   :  { %v3890_v60 = vpop.f32.mrb[89].mxu0 }
 0x59a   :  { %v1880_v62 = vpop.f32.mrb[28].mxu1 }
 0x59b   :  { %2064 = vrot.lane.b32.xlu0 %v5203_v58, %s4286_s9  ;;  %2282 = vrot.lane.b32.xlu1 %v1880_v62, %s4285_s8  ;;  %v5281_v42 = vpop.f32.mrb[90].mxu0  ;;  %v3959_v53 = vpop.f32.mrb[29].mxu1 }
 0x59c   :  { %v3893_v0 = vpop.f32.mrb[91].mxu0 }
 0x59e   :  { %v1885_v10 = vpop.f32.mrb[30].mxu1 }
 0x59f   :  { %2066 = vrot.lane.b32.xlu1 %v5207_v63, %s4286_s9  ;;  %2284 = vrot.lane.b32.xlu0 %v1885_v10, %s4285_s8  ;;  %v5286_v44 = vpop.f32.mrb[92].mxu0  ;;  %v3962_v9 = vpop.f32.mrb[31].mxu1 }
 0x5a0   :  { %v3896_v59 = vpop.f32.mrb[93].mxu0 }
 0x5a2   :  { %v1890_v3 = vpop.f32.mrb[32].mxu1 }
 0x5a3   :  { %2068 = vrot.lane.b32.xlu0 %v5210_v4, %s4286_s9  ;;  %2286 = vrot.lane.b32.xlu1 %v1890_v3, %s4285_s8  ;;  %v5291_v58 = vpop.f32.mrb[94].mxu0  ;;  %v3965_v15 = vpop.f32.mrb[33].mxu1 }
 0x5a4   :  { %v3899_v47 = vpop.f32.mrb[95].mxu0 }
 0x5a6   :  { %v1895_v18 = vpop.f32.mrb[34].mxu1 }
 0x5a7   :  { %2070 = vrot.lane.b32.xlu1 %v5212_v5, %s4286_s9  ;;  %2318 = vrot.lane.b32.xlu0 %v1895_v18, %s4287_s10  ;;  %v5296_v63 = vpop.f32.mrb[96].mxu0  ;;  %v3968_v61 = vpop.f32.mrb[35].mxu1 }
 0x5a8   :  { %v3902_v23 = vpop.f32.mrb[97].mxu0 }
 0x5aa   :  { %v1900_v21 = vpop.f32.mrb[36].mxu1 }
 0x5ab   :  { %2096 = vrot.lane.b32.xlu1 %v5216_v8, %s4288_s11  ;;  %2094 = vrot.lane.b32.xlu0 %v5214_v54, %s4288_s11  ;;  %v5302_v4 = vpop.f32.mrb[98].mxu0  ;;  %v3971_v27 = vpop.f32.mrb[37].mxu1 }
 0x5ac   :  { %v3905_v2 = vpop.f32.mrb[99].mxu0 }
 0x5ae   :  { %v1905_v5 = vpop.f32.mrb[38].mxu1 }
 0x5af   :  { %v5304_v31 = vpop.f32.mrb[100].mxu0  ;;  %2320 = vrot.lane.b32.xlu0 %v1900_v21, %s4287_s10  ;;  %2322 = vrot.lane.b32.xlu1 %v1905_v5, %s4287_s10  ;;  %v3974_v13 = vpop.f32.mrb[39].mxu1 }
 0x5b0   :  { %v3908_v45 = vpop.f32.mrb[101].mxu0 }
 0x5b2   :  { %v1910_v35 = vpop.f32.mrb[40].mxu1 }
 0x5b3   :  { %v5308_v36 = vpop.f32.mrb[102].mxu0  ;;  %2098 = vrot.lane.b32.xlu0 %v5218_v14, %s4288_s11  ;;  %v3977_v54 = vpop.f32.mrb[41].mxu1 }
 0x5b4   :  { %v3911_v8 = vpop.f32.mrb[103].mxu0 }
 0x5b6   :  { %v1915_v50 = vpop.f32.mrb[42].mxu1 }
 0x5b7   :  { %v5312_v37 = vpop.f32.mrb[104].mxu0  ;;  %2324 = vrot.lane.b32.xlu0 %v1910_v35, %s4287_s10  ;;  %2326 = vrot.lane.b32.xlu1 %v1915_v50, %s4287_s10  ;;  %v3980_v52 = vpop.f32.mrb[43].mxu1 }
 0x5b8   :  { %v3914_v39 = vpop.f32.mrb[105].mxu0 }
 0x5ba   :  { %v1920_v57 = vpop.f32.mrb[44].mxu1 }
 0x5bb   :  { %v5316_v12 = vpop.f32.mrb[106].mxu0  ;;  %2100 = vrot.lane.b32.xlu0 %v5220_v16, %s4288_s11  ;;  %2102 = vrot.lane.b32.xlu1 %v5222_v17, %s4288_s11  ;;  %v3983_v14 = vpop.f32.mrb[45].mxu1 }
 0x5bc   :  { %v3917_v40 = vpop.f32.mrb[107].mxu0 }
 0x5be   :  { %v1925_v41 = vpop.f32.mrb[46].mxu1 }
 0x5bf   :  { %v1815_v1 = vpop.f32.mrb[108].mxu0  ;;  %2328 = vrot.lane.b32.xlu0 %v1920_v57, %s4287_s10  ;;  %2330 = vrot.lane.b32.xlu1 %v1925_v41, %s4287_s10  ;;  %v3986_v29 = vpop.f32.mrb[47].mxu1 }
 0x5c0   :  { %v3920_v43 = vpop.f32.mrb[109].mxu0 }
 0x5c2   :  { %v1930_v46 = vpop.f32.mrb[48].mxu1 }
 0x5c3   :  { %v5324_v48 = vpop.f32.mrb[110].mxu0  ;;  %2104 = vrot.lane.b32.xlu0 %v5224_v20, %s4288_s11  ;;  %2106 = vrot.lane.b32.xlu1 %v5226_v22, %s4288_s11  ;;  %v3989_v16 = vpop.f32.mrb[49].mxu1 }
 0x5c4   :  { %v3923_v17 = vpop.f32.mrb[111].mxu0 }
 0x5c6   :  { %v1935_v49 = vpop.f32.mrb[50].mxu1 }
 0x5c7   :  { %v5330_v51 = vpop.f32.mrb[112].mxu0  ;;  %2354 = vrot.lane.b32.xlu1 %v1930_v46, %s4289_s12  ;;  %2356 = vrot.lane.b32.xlu0 %v1935_v49, %s4289_s12  ;;  %v3992_v55 = vpop.f32.mrb[51].mxu1 }
 0x5c8   :  { %v3926_v19 = vpop.f32.mrb[113].mxu0 }
 0x5ca   :  { %v1940_v56 = vpop.f32.mrb[52].mxu1 }
 0x5cb   :  { %v1830_v11 = vpop.f32.mrb[114].mxu0  ;;  %2130 = vrot.lane.b32.xlu1 %v5228_v24, %s4290_s13  ;;  %2134 = vrot.lane.b32.xlu0 %v5232_v28, %s4290_s13  ;;  %v3995_v20 = vpop.f32.mrb[53].mxu1 }
 0x5cc   :  { %v3929_v22 = vpop.f32.mrb[115].mxu0 }
 0x5ce   :  { %v1945_v60 = vpop.f32.mrb[54].mxu1 }
 0x5cf   :  { %v1835_v62 = vpop.f32.mrb[116].mxu0  ;;  %2132 = vrot.lane.b32.xlu1 %v5230_v25, %s4290_s13  ;;  %2360 = vrot.lane.b32.xlu0 %v1945_v60, %s4289_s12  ;;  %v3998_v53 = vpop.f32.mrb[55].mxu1 }
 0x5d0   :  { %v3932_v0 = vpop.f32.mrb[117].mxu0 }
 0x5d2   :  { %v1950_v10 = vpop.f32.mrb[56].mxu1 }
 0x5d3   :  { %v1840_v9 = vpop.f32.mrb[118].mxu0  ;;  %2358 = vrot.lane.b32.xlu1 %v1940_v56, %s4289_s12  ;;  %2136 = vrot.lane.b32.xlu0 %v5234_v30, %s4290_s13  ;;  %v4001_v59 = vpop.f32.mrb[57].mxu1 }
 0x5d4   :  { %v3935_v24 = vpop.f32.mrb[119].mxu0 }
 0x5d6   :  { %v1955_v3 = vpop.f32.mrb[58].mxu1 }
 0x5d7   :  { %2362 = vrot.lane.b32.xlu1 %v1950_v10, %s4289_s12  ;;  %2364 = vrot.lane.b32.xlu0 %v1955_v3, %s4289_s12  ;;  %v4004_v28 = vpop.f32.mrb[59].mxu1 }
 0x5da   :  { %v1960_v15 = vpop.f32.mrb[60].mxu1 }
 0x5db   :  { %2138 = vrot.lane.b32.xlu1 %v5236_v32, %s4290_s13  ;;  %2140 = vrot.lane.b32.xlu0 %v5238_v33, %s4290_s13  ;;  %v4007_v25 = vpop.f32.mrb[61].mxu1 }
 0x5df   :  { %2166 = vrot.lane.b32.xlu0 %v5266_v34, %s4273_s29  ;;  %2366 = vrot.lane.b32.xlu1 %v1960_v15, %s4289_s12 }
 0x5e3   :  { %2168 = vrot.lane.b32.xlu0 %v5272_v38, %s4273_s29  ;;  %2142 = vrot.lane.b32.xlu1 %v5258_v26, %s4290_s13 }
 0x5e7   :  { %2172 = vrot.lane.b32.xlu0 %v5281_v42, %s4273_s29  ;;  %2170 = vrot.lane.b32.xlu1 %v5276_v7, %s4273_s29 }
 0x5eb   :  { %2176 = vrot.lane.b32.xlu0 %v5291_v58, %s4273_s29  ;;  %2174 = vrot.lane.b32.xlu1 %v5286_v44, %s4273_s29 }
 0x5ef   :  { %2204 = vrot.lane.b32.xlu0 %v5304_v31, %s4291_s14  ;;  %2178 = vrot.lane.b32.xlu1 %v5296_v63, %s4273_s29  ;;  %s4293_s29 = smov 114  }
 0x5f1   :  { %v5361_v30 = vpop.permute.xlu1 %2246 }
 0x5f3   :  { %2208 = vrot.lane.b32.xlu0 %v5312_v37, %s4291_s14  ;;  %2202 = vrot.lane.b32.xlu1 %v5302_v4, %s4291_s14 }
 0x5f5   :  { %v5365_v32 = vpop.permute.xlu0 %2248  ;;  %v2031_v33 = vpop.permute.xlu1 %2030 }
 0x5f6   :  { %2048 = vst.msk [vmem:[#allocation5 + $0x40] sm:$0xff] %vm2043_vm4, %v2031_v33 }
 0x5f7   :  { %2212 = vrot.lane.b32.xlu0 %v1815_v1, %s4291_s14  ;;  %2206 = vrot.lane.b32.xlu1 %v5308_v36, %s4291_s14 }
 0x5f9   :  { %v2033_v26 = vpop.permute.xlu0 %2032  ;;  %v5369_v34 = vpop.permute.xlu1 %2250 }
 0x5fa   :  { %2049 = vst.msk [vmem:[#allocation5 + $0x50] sm:$0xff] %vm2043_vm4, %v2033_v26 }
 0x5fb   :  { %2240 = vrot.lane.b32.xlu0 %v1830_v11, %s4266_s19  ;;  %2210 = vrot.lane.b32.xlu1 %v5316_v12, %s4291_s14 }
 0x5fd   :  { %v5374_v38 = vpop.permute.xlu0 %2274  ;;  %v2035_v7 = vpop.permute.xlu1 %2034 }
 0x5fe   :  { %2298 = vst.msk [vmem:[#allocation5 + $0x8] sm:$0xff] %vm2297_vm6, %v5374_v38 }
 0x5ff   :  { %2050 = vst.msk [vmem:[#allocation5 + $0x60] sm:$0xff] %vm2043_vm4, %v2035_v7  ;;  %2244 = vrot.lane.b32.xlu0 %v1840_v9, %s4266_s19  ;;  %2214 = vrot.lane.b32.xlu1 %v5324_v48, %s4291_s14  ;;  %vm2295_vm4 = vcmask 1048488  }
 0x601   :  { %v5381_v42 = vpop.permute.xlu0 %2276  ;;  %v2059_v44 = vpop.permute.xlu1 %2058 }
 0x602   :  { %2300 = vst.msk [vmem:[#allocation5 + $0x18] sm:$0xff] %vm2297_vm6, %v5381_v42 }
 0x603   :  { %2080 = vst.msk [vmem:[#allocation5] sm:$0xff] %vm2079_vm8, %v2059_v44  ;;  %2238 = vrot.lane.b32.xlu1 %v5330_v51, %s4266_s19 }
 0x605   :  { %v2063_v58 = vpop.permute.xlu0 %2062  ;;  %v2061_v47 = vpop.permute.xlu1 %2060 }
 0x606   :  { %2082 = vst.msk [vmem:[#allocation5 + $0x20] sm:$0xff] %vm2079_vm8, %v2063_v58  ;;  %2081 = vst.msk [vmem:[#allocation5 + $0x10] sm:$0xff] %vm2079_vm8, %v2061_v47 }
 0x607   :  { %2242 = vrot.lane.b32.xlu1 %v1835_v62, %s4266_s19  ;;  %s4292_s19 = smov 115  }
 0x609   :  { %v5391_v18 = vpop.permute.xlu0 %2280  ;;  %v5393_v63 = vpop.permute.xlu1 %2278 }
 0x60a   :  { %2304 = vst.msk [vmem:[#allocation5 + $0x38] sm:$0xff] %vm2297_vm6, %v5391_v18  ;;  %2302 = vst.msk [vmem:[#allocation5 + $0x28] sm:$0xff] %vm2297_vm6, %v5393_v63 }
 0x60d   :  { %v2065_v61 = vpop.permute.xlu0 %2064  ;;  %v5399_v23 = vpop.permute.xlu1 %2282 }
 0x60e   :  { %2083 = vst.msk [vmem:[#allocation5 + $0x30] sm:$0xff] %vm2079_vm8, %v2065_v61 }
 0x60f   :  { %2306 = vst.msk [vmem:[#allocation5 + $0x48] sm:$0xff] %vm2297_vm6, %v5399_v23 }
 0x611   :  { %v5404_v21 = vpop.permute.xlu0 %2284  ;;  %v2067_v4 = vpop.permute.xlu1 %2066 }
 0x612   :  { %2308 = vst.msk [vmem:[#allocation5 + $0x58] sm:$0xff] %vm2297_vm6, %v5404_v21 }
 0x613   :  { %2084 = vst.msk [vmem:[#allocation5 + $0x40] sm:$0xff] %vm2079_vm8, %v2067_v4 }
 0x615   :  { %v2069_v27 = vpop.permute.xlu0 %2068  ;;  %v5409_v2 = vpop.permute.xlu1 %2286 }
 0x616   :  { %2085 = vst.msk [vmem:[#allocation5 + $0x50] sm:$0xff] %vm2079_vm8, %v2069_v27 }
 0x617   :  { %2310 = vst.msk [vmem:[#allocation5 + $0x68] sm:$0xff] %vm2297_vm6, %v5409_v2  ;;  %vm2742_vm6 = vcmask 932864  }
 0x619   :  { %v2319_v5 = vpop.permute.xlu0 %2318  ;;  %v2071_v31 = vpop.permute.xlu1 %2070 }
 0x61a   :  { %2340 = vst.msk [vmem:[#allocation5 + $0x8] sm:$0xff] %vm2339_vm10, %v2319_v5 }
 0x61b   :  { %2086 = vst.msk [vmem:[#allocation5 + $0x60] sm:$0xff] %vm2079_vm8, %v2071_v31  ;;  %vm2834_vm8 = vcmask 924672  }
 0x61d   :  { %v2095_v13 = vpop.permute.xlu0 %2094  ;;  %v2097_v45 = vpop.permute.xlu1 %2096 }
 0x61e   :  { %2116 = vst.msk [vmem:[#allocation5] sm:$0xff] %vm2115_vm11, %v2095_v13  ;;  %2117 = vst.msk [vmem:[#allocation5 + $0x10] sm:$0xff] %vm2115_vm11, %v2097_v45 }
 0x621   :  { %v2321_v35 = vpop.permute.xlu0 %2320  ;;  %v2323_v36 = vpop.permute.xlu1 %2322 }
 0x622   :  { %2341 = vst.msk [vmem:[#allocation5 + $0x18] sm:$0xff] %vm2339_vm10, %v2321_v35  ;;  %2342 = vst.msk [vmem:[#allocation5 + $0x28] sm:$0xff] %vm2339_vm10, %v2323_v36 }
 0x625   :  { %v2099_v54 = vpop.permute.xlu0 %2098 }
 0x626   :  { %2118 = vst.msk [vmem:[#allocation5 + $0x20] sm:$0xff] %vm2115_vm11, %v2099_v54 }
 0x629   :  { %v2325_v8 = vpop.permute.xlu0 %2324  ;;  %v2327_v50 = vpop.permute.xlu1 %2326 }
 0x62a   :  { %2343 = vst.msk [vmem:[#allocation5 + $0x38] sm:$0xff] %vm2339_vm10, %v2325_v8  ;;  %2344 = vst.msk [vmem:[#allocation5 + $0x48] sm:$0xff] %vm2339_vm10, %v2327_v50 }
 0x62d   :  { %v2101_v37 = vpop.permute.xlu0 %2100  ;;  %v2103_v52 = vpop.permute.xlu1 %2102 }
 0x62e   :  { %2119 = vst.msk [vmem:[#allocation5 + $0x30] sm:$0xff] %vm2115_vm11, %v2101_v37  ;;  %2120 = vst.msk [vmem:[#allocation5 + $0x40] sm:$0xff] %vm2115_vm11, %v2103_v52 }
 0x631   :  { %v2329_v39 = vpop.permute.xlu0 %2328  ;;  %v2331_v57 = vpop.permute.xlu1 %2330 }
 0x632   :  { %2345 = vst.msk [vmem:[#allocation5 + $0x58] sm:$0xff] %vm2339_vm10, %v2329_v39  ;;  %2346 = vst.msk [vmem:[#allocation5 + $0x68] sm:$0xff] %vm2339_vm10, %v2331_v57 }
 0x635   :  { %v2105_v12 = vpop.permute.xlu0 %2104  ;;  %v2107_v14 = vpop.permute.xlu1 %2106 }
 0x636   :  { %2121 = vst.msk [vmem:[#allocation5 + $0x50] sm:$0xff] %vm2115_vm11, %v2105_v12  ;;  %2122 = vst.msk [vmem:[#allocation5 + $0x60] sm:$0xff] %vm2115_vm11, %v2107_v14  ;;  %vm3578_vm11 = vcmask 293888  }
 0x639   :  { %v2357_v40 = vpop.permute.xlu0 %2356  ;;  %v2355_v41 = vpop.permute.xlu1 %2354 }
 0x63a   :  { %2377 = vst.msk [vmem:[#allocation5 + $0x18] sm:$0xff] %vm2375_vm12, %v2357_v40  ;;  %2376 = vst.msk [vmem:[#allocation5 + $0x8] sm:$0xff] %vm2375_vm12, %v2355_v41 }
 0x63d   :  { %v2135_v1 = vpop.permute.xlu0 %2134  ;;  %v2131_v29 = vpop.permute.xlu1 %2130 }
 0x63e   :  { %2154 = vst.msk [vmem:[#allocation5 + $0x20] sm:$0xff] %vm2151_vm13, %v2135_v1  ;;  %2152 = vst.msk [vmem:[#allocation5] sm:$0xff] %vm2151_vm13, %v2131_v29 }
 0x641   :  { %v5433_v43 = vld [vmem:[#allocation5 + $0x18] sm:$0xff]  ;;  %v5435_v46 = vld [vmem:[#allocation5 + $0x8] sm:$0xff]  ;;  %v2361_v48 = vpop.permute.xlu0 %2360  ;;  %v2133_v16 = vpop.permute.xlu1 %2132 }
 0x642   :  { %2401 = vst.msk [vmem:[#allocation6 + $0x18] sm:$0xff] %vm2398_vm14, %v5433_v43  ;;  %2399 = vst.msk [vmem:[#allocation6 + $0x8] sm:$0xff] %vm2398_vm14, %v5435_v46  ;;  %2442 = vrot.lane.b32.xlu1 %v5435_v46, %s4264_s0 }
 0x643   :  { %2379 = vst.msk [vmem:[#allocation5 + $0x38] sm:$0xff] %vm2375_vm12, %v2361_v48 }
 0x644   :  { %2153 = vst.msk [vmem:[#allocation5 + $0x10] sm:$0xff] %vm2151_vm13, %v2133_v16 }
 0x645   :  { %v2137_v17 = vpop.permute.xlu0 %2136  ;;  %v2359_v49 = vpop.permute.xlu1 %2358 }
 0x646   :  { %2155 = vst.msk [vmem:[#allocation5 + $0x30] sm:$0xff] %vm2151_vm13, %v2137_v17  ;;  %2533 = vrot.lane.b32.xlu1 %v5435_v46, %s4265_s18 }
 0x647   :  { %2378 = vst.msk [vmem:[#allocation5 + $0x28] sm:$0xff] %vm2375_vm12, %v2359_v49 }
 0x649   :  { %v2365_v55 = vpop.permute.xlu0 %2364  ;;  %v2363_v19 = vpop.permute.xlu1 %2362  ;;  %v3146_v56 = vld [vmem:[#allocation6 + $0x8] sm:$0xff]  ;;  %v3148_v11 = vld [vmem:[#allocation6 + $0x18] sm:$0xff] }
 0x64a   :  { %v5449_v51 = vld [vmem:[#allocation5 + $0x38] sm:$0xff]  ;;  %2381 = vst.msk [vmem:[#allocation5 + $0x58] sm:$0xff] %vm2375_vm12, %v2365_v55  ;;  %2380 = vst.msk [vmem:[#allocation5 + $0x48] sm:$0xff] %vm2375_vm12, %v2363_v19  ;;  %2624 = vrot.lane.b32.xlu1 %v5435_v46, %s4292_s19  ;;  %v4043_v20 = vpack.c.bf16 %v3148_v11, %v3146_v56 }
 0x64b   :  { %2405 = vst.msk [vmem:[#allocation6 + $0x38] sm:$0xff] %vm2398_vm14, %v5449_v51 }
 0x64c   :  { %4044 = vmatprep.subr.bf16.mxu1 %v4043_v20 }
 0x64d   :  { %v2141_v60 = vpop.permute.xlu0 %2140  ;;  %v2139_v62 = vpop.permute.xlu1 %2138 }
 0x64e   :  { %v5457_v22 = vld [vmem:[#allocation5 + $0x28] sm:$0xff]  ;;  %2157 = vst.msk [vmem:[#allocation5 + $0x50] sm:$0xff] %vm2151_vm13, %v2141_v60  ;;  %2156 = vst.msk [vmem:[#allocation5 + $0x40] sm:$0xff] %vm2151_vm13, %v2139_v62  ;;  %2716 = vrot.lane.b32.xlu1 %v5435_v46, %s4293_s29 }
 0x64f   :  { %2403 = vst.msk [vmem:[#allocation6 + $0x28] sm:$0xff] %vm2398_vm14, %v5457_v22 }
 0x651   :  { %v5465_v53 = vld [vmem:[#allocation5 + $0x58] sm:$0xff]  ;;  %v5467_v0 = vld [vmem:[#allocation5 + $0x48] sm:$0xff]  ;;  %v2167_v10 = vpop.permute.xlu0 %2166  ;;  %v2367_v9 = vpop.permute.xlu1 %2366 }
 0x652   :  { %2409 = vst.msk [vmem:[#allocation6 + $0x58] sm:$0xff] %vm2398_vm14, %v5465_v53  ;;  %2407 = vst.msk [vmem:[#allocation6 + $0x48] sm:$0xff] %vm2398_vm14, %v5467_v0  ;;  %2808 = vrot.lane.b32.xlu1 %v5435_v46, %s4294_s15  ;;  %v3152_v45 = vld [vmem:[#allocation6 + $0x38] sm:$0xff] }
 0x653   :  { %2188 = vst.msk [vmem:[#allocation5] sm:$0xff] %vm2187_vm15, %v2167_v10 }
 0x654   :  { %2382 = vst.msk [vmem:[#allocation5 + $0x68] sm:$0xff] %vm2375_vm12, %v2367_v9  ;;  %vm3582_vm12 = vcmask 289792  }
 0x655   :  { %v2169_v59 = vpop.permute.xlu0 %2168  ;;  %v2143_v24 = vpop.permute.xlu1 %2142 }
 0x656   :  { %2189 = vst.msk [vmem:[#allocation5 + $0x10] sm:$0xff] %vm2187_vm15, %v2169_v59  ;;  %2446 = vrot.lane.b32.xlu1 %v5433_v43, %s4264_s0 }
 0x657   :  { %2158 = vst.msk [vmem:[#allocation5 + $0x60] sm:$0xff] %vm2151_vm13, %v2143_v24 }
 0x659   :  { %v2173_v28 = vpop.permute.xlu0 %2172  ;;  %v2171_v15 = vpop.permute.xlu1 %2170  ;;  %v3154_v36 = vld [vmem:[#allocation6 + $0x48] sm:$0xff] }
 0x65a   :  { %2191 = vst.msk [vmem:[#allocation5 + $0x30] sm:$0xff] %vm2187_vm15, %v2173_v28  ;;  %2190 = vst.msk [vmem:[#allocation5 + $0x20] sm:$0xff] %vm2187_vm15, %v2171_v15  ;;  %2537 = vrot.lane.b32.xlu1 %v5433_v43, %s4265_s18 }
 0x65b   :  { %v5481_v3 = vld [vmem:[#allocation5 + $0x68] sm:$0xff] }
 0x65c   :  { %2411 = vst.msk [vmem:[#allocation6 + $0x68] sm:$0xff] %vm2398_vm14, %v5481_v3 }
 0x65d   :  { %v2177_v25 = vpop.permute.xlu0 %2176  ;;  %v2175_v33 = vpop.permute.xlu1 %2174 }
 0x65e   :  { %2193 = vst.msk [vmem:[#allocation5 + $0x50] sm:$0xff] %vm2187_vm15, %v2177_v25  ;;  %2192 = vst.msk [vmem:[#allocation5 + $0x40] sm:$0xff] %vm2187_vm15, %v2175_v33  ;;  %2628 = vrot.lane.b32.xlu1 %v5433_v43, %s4292_s19 }
 0x661   :  { %v2205_v26 = vpop.permute.xlu0 %2204  ;;  %v2179_v7 = vpop.permute.xlu1 %2178 }
 0x662   :  { %2225 = vst.msk [vmem:[#allocation5 + $0x10] sm:$0xff] %vm2223_vm2, %v2205_v26  ;;  %2720 = vrot.lane.b32.xlu1 %v5433_v43, %s4293_s29 }
 0x663   :  { %2194 = vst.msk [vmem:[#allocation5 + $0x60] sm:$0xff] %vm2187_vm15, %v2179_v7  ;;  %v3158_v12 = vld [vmem:[#allocation6 + $0x68] sm:$0xff] }
 0x665   :  { %v2209_v44 = vpop.permute.xlu0 %2208  ;;  %v2203_v58 = vpop.permute.xlu1 %2202 }
 0x666   :  { %2227 = vst.msk [vmem:[#allocation5 + $0x30] sm:$0xff] %vm2223_vm2, %v2209_v44  ;;  %2224 = vst.msk [vmem:[#allocation5] sm:$0xff] %vm2223_vm2, %v2203_v58  ;;  %2812 = vrot.lane.b32.xlu1 %v5433_v43, %s4294_s15 }
 0x669   :  { %v2213_v47 = vpop.permute.xlu0 %2212  ;;  %v2207_v61 = vpop.permute.xlu1 %2206 }
 0x66a   :  { %2229 = vst.msk [vmem:[#allocation5 + $0x50] sm:$0xff] %vm2223_vm2, %v2213_v47  ;;  %2226 = vst.msk [vmem:[#allocation5 + $0x20] sm:$0xff] %vm2223_vm2, %v2207_v61  ;;  %2450 = vrot.lane.b32.xlu1 %v5457_v22, %s4264_s0 }
 0x66b   :  { %2265 = vst.msk [vmem:[#allocation5 + $0x50] sm:$0xff] %vm2259_vm3, %v5365_v32 }
 0x66c   :  { %2307 = vst.msk [vmem:[#allocation5 + $0x50] sm:$0xff] %vm2295_vm4, %v5404_v21 }
 0x66d   :  { %v2241_v4 = vpop.permute.xlu0 %2240  ;;  %v2211_v27 = vpop.permute.xlu1 %2210 }
 0x66e   :  { %2261 = vst.msk [vmem:[#allocation5 + $0x10] sm:$0xff] %vm2259_vm3, %v2241_v4  ;;  %2541 = vrot.lane.b32.xlu1 %v5457_v22, %s4265_s18 }
 0x66f   :  { %2228 = vst.msk [vmem:[#allocation5 + $0x40] sm:$0xff] %vm2223_vm2, %v2211_v27 }
 0x670   :  { %2299 = vst.msk [vmem:[#allocation5 + $0x10] sm:$0xff] %vm2295_vm4, %v5381_v42 }
 0x671   :  { %2264 = vst.msk [vmem:[#allocation5 + $0x40] sm:$0xff] %vm2259_vm3, %v5361_v30  ;;  %v2245_v32 = vpop.permute.xlu0 %2244  ;;  %v2215_v21 = vpop.permute.xlu1 %2214 }
 0x672   :  { %2305 = vst.msk [vmem:[#allocation5 + $0x40] sm:$0xff] %vm2295_vm4, %v5399_v23  ;;  %2632 = vrot.lane.b32.xlu1 %v5457_v22, %s4292_s19 }
 0x673   :  { %2263 = vst.msk [vmem:[#allocation5 + $0x30] sm:$0xff] %vm2259_vm3, %v2245_v32  ;;  %v5523_v5 = vld [vmem:[#allocation5 + $0x50] sm:$0xff] }
 0x674   :  { %2230 = vst.msk [vmem:[#allocation5 + $0x60] sm:$0xff] %vm2223_vm2, %v2215_v21  ;;  %v44_v21 = vld [vmem:[%s6309_s2 + $0x8] sm:$0xff] }
 0x675   :  { %2303 = vst.msk [vmem:[#allocation5 + $0x30] sm:$0xff] %vm2295_vm4, %v5391_v18  ;;  %v2239_v30 = vpop.permute.xlu1 %2238  ;;  %3363 = vmatprep.mubr.f32.mxu1 %v44_v21 }
 0x676   :  { %2266 = vst.msk [vmem:[#allocation5 + $0x60] sm:$0xff] %vm2259_vm3, %v5369_v34  ;;  %2260 = vst.msk [vmem:[#allocation5] sm:$0xff] %vm2259_vm3, %v2239_v30  ;;  %2724 = vrot.lane.b32.xlu1 %v5457_v22, %s4293_s29 }
 0x677   :  { %2309 = vst.msk [vmem:[#allocation5 + $0x60] sm:$0xff] %vm2295_vm4, %v5409_v2  ;;  %v5531_v42 = vld [vmem:[#allocation5 + $0x10] sm:$0xff]  ;;  %2296 = vst.msk [vmem:[#allocation5] sm:$0xff] %vm2295_vm4, %v5374_v38  ;;  %v3150_v38 = vld [vmem:[#allocation6 + $0x28] sm:$0xff] }
 0x678   :  { %v4047_v35 = vpack.c.bf16 %v3152_v45, %v3150_v38 }
 0x679   :  { %v5536_v23 = vld [vmem:[#allocation5 + $0x40] sm:$0xff]  ;;  %v2243_v34 = vpop.permute.xlu1 %2242 }
 0x67a   :  { %2456 = vrot.lane.b32.xlu0 %v5536_v23, %s4264_s0  ;;  %2262 = vst.msk [vmem:[#allocation5 + $0x20] sm:$0xff] %vm2259_vm3, %v2243_v34  ;;  %2816 = vrot.lane.b32.xlu1 %v5457_v22, %s4294_s15  ;;  %v4053_v37 = vpack.c.bf16 %v5523_v5, %v5536_v23 }
 0x67b   :  { %2301 = vst.msk [vmem:[#allocation5 + $0x20] sm:$0xff] %vm2295_vm4, %v5393_v63  ;;  %v3156_v63 = vld [vmem:[#allocation6 + $0x58] sm:$0xff] }
 0x67c   :  { %v5542_v18 = vld [vmem:[#allocation5 + $0x30] sm:$0xff]  ;;  %v4051_v50 = vpack.c.bf16 %v3156_v63, %v3154_v36 }
 0x67e   :  { %v5547_v2 = vld [vmem:[#allocation5 + $0x60] sm:$0xff]  ;;  %2547 = vrot.lane.b32.xlu0 %v5536_v23, %s4265_s18  ;;  %2454 = vrot.lane.b32.xlu1 %v5449_v51, %s4264_s0 }
 0x67f   :  { %v5553_v31 = vld [vmem:[#allocation5] sm:$0xff] }
 0x680   :  { %v4045_v13 = vpack.c.bf16 %v5531_v42, %v5553_v31 }
 0x682   :  { %2638 = vrot.lane.b32.xlu0 %v5536_v23, %s4292_s19  ;;  %4046 = vmatpush1.bf16.msra.mxu1 %v4045_v13  ;;  %v5561_v54 = vld [vmem:[#allocation5 + $0x20] sm:$0xff] }
 0x683   :  { %2545 = vrot.lane.b32.xlu1 %v5449_v51, %s4265_s18  ;;  %4048 = vmatprep.subr.bf16.mxu1 %v4047_v35  ;;  %v4049_v8 = vpack.c.bf16 %v5542_v18, %v5561_v54 }
 0x686   :  { %2730 = vrot.lane.b32.xlu0 %v5536_v23, %s4293_s29  ;;  %4050 = vmatpush1.bf16.msra.mxu1 %v4049_v8 }
 0x687   :  { %2636 = vrot.lane.b32.xlu1 %v5449_v51, %s4292_s19  ;;  %4052 = vmatprep.subr.bf16.mxu1 %v4051_v50 }
 0x68a   :  { %2822 = vrot.lane.b32.xlu0 %v5536_v23, %s4294_s15  ;;  %4054 = vmatpush1.bf16.msra.mxu1 %v4053_v37 }
 0x68b   :  { %2728 = vrot.lane.b32.xlu1 %v5449_v51, %s4293_s29 }
 0x68e   :  { %2460 = vrot.lane.b32.xlu0 %v5523_v5, %s4264_s0 }
 0x68f   :  { %2820 = vrot.lane.b32.xlu1 %v5449_v51, %s4294_s15 }
 0x692   :  { %2551 = vrot.lane.b32.xlu0 %v5523_v5, %s4265_s18 }
 0x693   :  { %2458 = vrot.lane.b32.xlu1 %v5467_v0, %s4264_s0 }
 0x696   :  { %2642 = vrot.lane.b32.xlu0 %v5523_v5, %s4292_s19 }
 0x697   :  { %2549 = vrot.lane.b32.xlu1 %v5467_v0, %s4265_s18 }
 0x69a   :  { %2734 = vrot.lane.b32.xlu0 %v5523_v5, %s4293_s29 }
 0x69b   :  { %2640 = vrot.lane.b32.xlu1 %v5467_v0, %s4292_s19 }
 0x69e   :  { %2826 = vrot.lane.b32.xlu0 %v5523_v5, %s4294_s15 }
 0x69f   :  { %2732 = vrot.lane.b32.xlu1 %v5467_v0, %s4293_s29 }
 0x6a2   :  { %2464 = vrot.lane.b32.xlu0 %v5547_v2, %s4264_s0 }
 0x6a3   :  { %2824 = vrot.lane.b32.xlu1 %v5467_v0, %s4294_s15 }
 0x6a6   :  { %2555 = vrot.lane.b32.xlu0 %v5547_v2, %s4265_s18 }
 0x6a7   :  { %2462 = vrot.lane.b32.xlu1 %v5465_v53, %s4264_s0 }
 0x6aa   :  { %2646 = vrot.lane.b32.xlu0 %v5547_v2, %s4292_s19 }
 0x6ab   :  { %2553 = vrot.lane.b32.xlu1 %v5465_v53, %s4265_s18 }
 0x6ae   :  { %2738 = vrot.lane.b32.xlu0 %v5547_v2, %s4293_s29 }
 0x6af   :  { %2644 = vrot.lane.b32.xlu1 %v5465_v53, %s4292_s19 }
 0x6b2   :  { %2440 = vrot.lane.b32.xlu0 %v5553_v31, %s4264_s0 }
 0x6b3   :  { %2736 = vrot.lane.b32.xlu1 %v5465_v53, %s4293_s29 }
 0x6b4   :  { %v5619_v52 = vpop.permute.xlu1 %2442 }
 0x6b5   :  { %2490 = vst.msk [vmem:[#allocation6 + $0x78] sm:$0xff] %vm2398_vm14, %v5619_v52 }
 0x6b6   :  { %2531 = vrot.lane.b32.xlu0 %v5553_v31, %s4265_s18 }
 0x6b7   :  { %2828 = vrot.lane.b32.xlu1 %v5465_v53, %s4294_s15 }
 0x6b8   :  { %v5627_v39 = vpop.permute.xlu1 %2533 }
 0x6b9   :  { %2581 = vst.msk [vmem:[#allocation6 + $0xe8] sm:$0xff] %vm2398_vm14, %v5627_v39 }
 0x6ba   :  { %2622 = vrot.lane.b32.xlu0 %v5553_v31, %s4292_s19 }
 0x6bb   :  { %2466 = vrot.lane.b32.xlu1 %v5481_v3, %s4264_s0 }
 0x6bc   :  { %v5635_v57 = vpop.permute.xlu1 %2624  ;;  %v3160_v14 = vld [vmem:[#allocation6 + $0x78] sm:$0xff] }
 0x6bd   :  { %2673 = vst.msk [vmem:[#allocation6 + $0x158] sm:$0xff] %vm2398_vm14, %v5635_v57  ;;  %v4055_v40 = vpack.c.bf16 %v3160_v14, %v3158_v12 }
 0x6be   :  { %2714 = vrot.lane.b32.xlu0 %v5553_v31, %s4293_s29 }
 0x6bf   :  { %2557 = vrot.lane.b32.xlu1 %v5481_v3, %s4265_s18  ;;  %4056 = vmatprep.subr.bf16.mxu1 %v4055_v40 }
 0x6c0   :  { %v5643_v41 = vpop.permute.xlu1 %2716 }
 0x6c1   :  { %2765 = vst.msk [vmem:[#allocation6 + $0x1c8] sm:$0xff] %vm2398_vm14, %v5643_v41 }
 0x6c2   :  { %2806 = vrot.lane.b32.xlu0 %v5553_v31, %s4294_s15 }
 0x6c3   :  { %2648 = vrot.lane.b32.xlu1 %v5481_v3, %s4292_s19 }
 0x6c4   :  { %v5651_v1 = vpop.permute.xlu1 %2808 }
 0x6c5   :  { %2857 = vst.msk [vmem:[#allocation6 + $0x238] sm:$0xff] %vm2398_vm14, %v5651_v1 }
 0x6c6   :  { %2444 = vrot.lane.b32.xlu0 %v5531_v42, %s4264_s0 }
 0x6c7   :  { %2740 = vrot.lane.b32.xlu1 %v5481_v3, %s4293_s29 }
 0x6c8   :  { %v5659_v29 = vpop.permute.xlu1 %2446 }
 0x6c9   :  { %2492 = vst.msk [vmem:[#allocation6 + $0x88] sm:$0xff] %vm2398_vm14, %v5659_v29 }
 0x6ca   :  { %2535 = vrot.lane.b32.xlu0 %v5531_v42, %s4265_s18 }
 0x6cb   :  { %2832 = vrot.lane.b32.xlu1 %v5481_v3, %s4294_s15 }
 0x6cc   :  { %v5667_v48 = vpop.permute.xlu1 %2537 }
 0x6cd   :  { %2583 = vst.msk [vmem:[#allocation6 + $0xf8] sm:$0xff] %vm2398_vm14, %v5667_v48 }
 0x6ce   :  { %2626 = vrot.lane.b32.xlu0 %v5531_v42, %s4292_s19 }
 0x6cf   :  { %2900 = vrot.lane.b32.xlu1 %v5435_v46, %s4270_s26 }
 0x6d0   :  { %v5675_v16 = vpop.permute.xlu1 %2628 }
 0x6d1   :  { %2675 = vst.msk [vmem:[#allocation6 + $0x168] sm:$0xff] %vm2398_vm14, %v5675_v16 }
 0x6d2   :  { %2718 = vrot.lane.b32.xlu0 %v5531_v42, %s4293_s29 }
 0x6d3   :  { %2904 = vrot.lane.b32.xlu1 %v5433_v43, %s4270_s26 }
 0x6d4   :  { %v5683_v17 = vpop.permute.xlu1 %2720 }
 0x6d5   :  { %2767 = vst.msk [vmem:[#allocation6 + $0x1d8] sm:$0xff] %vm2398_vm14, %v5683_v17 }
 0x6d6   :  { %2810 = vrot.lane.b32.xlu0 %v5531_v42, %s4294_s15 }
 0x6d7   :  { %2908 = vrot.lane.b32.xlu1 %v5457_v22, %s4270_s26 }
 0x6d8   :  { %v5691_v49 = vpop.permute.xlu1 %2812 }
 0x6d9   :  { %2859 = vst.msk [vmem:[#allocation6 + $0x248] sm:$0xff] %vm2398_vm14, %v5691_v49 }
 0x6da   :  { %2448 = vrot.lane.b32.xlu0 %v5561_v54, %s4264_s0 }
 0x6db   :  { %2912 = vrot.lane.b32.xlu1 %v5449_v51, %s4270_s26 }
 0x6dc   :  { %v5699_v55 = vpop.permute.xlu1 %2450 }
 0x6dd   :  { %2494 = vst.msk [vmem:[#allocation6 + $0x98] sm:$0xff] %vm2398_vm14, %v5699_v55 }
 0x6de   :  { %2539 = vrot.lane.b32.xlu0 %v5561_v54, %s4265_s18 }
 0x6df   :  { %2916 = vrot.lane.b32.xlu1 %v5467_v0, %s4270_s26 }
 0x6e0   :  { %v5707_v19 = vpop.permute.xlu1 %2541 }
 0x6e1   :  { %2585 = vst.msk [vmem:[#allocation6 + $0x108] sm:$0xff] %vm2398_vm14, %v5707_v19 }
 0x6e2   :  { %2630 = vrot.lane.b32.xlu0 %v5561_v54, %s4292_s19 }
 0x6e3   :  { %2920 = vrot.lane.b32.xlu1 %v5465_v53, %s4270_s26 }
 0x6e4   :  { %v5715_v56 = vpop.permute.xlu1 %2632  ;;  %v3164_v14 = vld [vmem:[#allocation6 + $0x98] sm:$0xff] }
 0x6e5   :  { %2677 = vst.msk [vmem:[#allocation6 + $0x178] sm:$0xff] %vm2398_vm14, %v5715_v56 }
 0x6e6   :  { %2722 = vrot.lane.b32.xlu0 %v5561_v54, %s4293_s29 }
 0x6e7   :  { %2924 = vrot.lane.b32.xlu1 %v5481_v3, %s4270_s26 }
 0x6e8   :  { %v5723_v11 = vpop.permute.xlu1 %2724 }
 0x6e9   :  { %2769 = vst.msk [vmem:[#allocation6 + $0x1e8] sm:$0xff] %vm2398_vm14, %v5723_v11 }
 0x6ea   :  { %2814 = vrot.lane.b32.xlu0 %v5561_v54, %s4294_s15 }
 0x6eb   :  { %2991 = vrot.lane.b32.xlu1 %v5435_v46, %s4295_s16 }
 0x6ec   :  { %v2457_v20 = vpop.permute.xlu0 %2456  ;;  %v5731_v60 = vpop.permute.xlu1 %2816 }
 0x6ed   :  { %2861 = vst.msk [vmem:[#allocation6 + $0x258] sm:$0xff] %vm2398_vm14, %v5731_v60 }
 0x6ee   :  { %2452 = vrot.lane.b32.xlu0 %v5542_v18, %s4264_s0  ;;  %s4296_s0 = smov 100  }
 0x6ef   :  { %2995 = vrot.lane.b32.xlu1 %v5433_v43, %s4295_s16 }
 0x6f0   :  { %v2548_v62 = vpop.permute.xlu0 %2547  ;;  %v5739_v10 = vpop.permute.xlu1 %2454 }
 0x6f1   :  { %2496 = vst.msk [vmem:[#allocation6 + $0xa8] sm:$0xff] %vm2398_vm14, %v5739_v10 }
 0x6f2   :  { %2830 = vrot.lane.b32.xlu0 %v5547_v2, %s4294_s15 }
 0x6f3   :  { %2999 = vrot.lane.b32.xlu1 %v5457_v22, %s4295_s16 }
 0x6f4   :  { %v2639_v9 = vpop.permute.xlu0 %2638 }
 0x6f5   :  { %v5747_v59 = vpop.permute.xlu1 %2545 }
 0x6f6   :  { %2898 = vrot.lane.b32.xlu0 %v5553_v31, %s4270_s26  ;;  %2587 = vst.msk [vmem:[#allocation6 + $0x118] sm:$0xff] %vm2398_vm14, %v5747_v59 }
 0x6f7   :  { %3003 = vrot.lane.b32.xlu1 %v5449_v51, %s4295_s16 }
 0x6f8   :  { %v2731_v24 = vpop.permute.xlu0 %2730 }
 0x6f9   :  { %v5755_v28 = vpop.permute.xlu1 %2636 }
 0x6fa   :  { %2543 = vrot.lane.b32.xlu0 %v5542_v18, %s4265_s18  ;;  %2679 = vst.msk [vmem:[#allocation6 + $0x188] sm:$0xff] %vm2398_vm14, %v5755_v28 }
 0x6fb   :  { %3007 = vrot.lane.b32.xlu1 %v5467_v0, %s4295_s16 }
 0x6fc   :  { %v2823_v15 = vpop.permute.xlu0 %2822 }
 0x6fd   :  { %v5763_v25 = vpop.permute.xlu1 %2728 }
 0x6fe   :  { %2902 = vrot.lane.b32.xlu0 %v5531_v42, %s4270_s26  ;;  %2771 = vst.msk [vmem:[#allocation6 + $0x1f8] sm:$0xff] %vm2398_vm14, %v5763_v25 }
 0x6ff   :  { %3011 = vrot.lane.b32.xlu1 %v5465_v53, %s4295_s16 }
 0x700   :  { %v2461_v33 = vpop.permute.xlu0 %2460 }
 0x701   :  { %v5771_v26 = vpop.permute.xlu1 %2820 }
 0x702   :  { %2906 = vrot.lane.b32.xlu0 %v5561_v54, %s4270_s26  ;;  %2863 = vst.msk [vmem:[#allocation6 + $0x268] sm:$0xff] %vm2398_vm14, %v5771_v26 }
 0x703   :  { %3015 = vrot.lane.b32.xlu1 %v5481_v3, %s4295_s16 }
 0x704   :  { %v2552_v7 = vpop.permute.xlu0 %2551 }
 0x705   :  { %v2459_v44 = vpop.permute.xlu1 %2458 }
 0x706   :  { %2914 = vrot.lane.b32.xlu0 %v5536_v23, %s4270_s26  ;;  %v5780_v58 = vsel %vm166_vm0, %v2457_v20, %v2459_v44  ;;  %2498 = vst.msk [vmem:[#allocation6 + $0xb8] sm:$0xff] %vm2398_vm14, %v2459_v44 }
 0x707   :  { %3083 = vrot.lane.b32.xlu1 %v5435_v46, %s4296_s0 }
 0x708   :  { %v2643_v47 = vpop.permute.xlu0 %2642 }
 0x709   :  { %v2550_v61 = vpop.permute.xlu1 %2549 }
 0x70a   :  { %2634 = vrot.lane.b32.xlu0 %v5542_v18, %s4292_s19  ;;  %v5788_v4 = vsel %vm191_vm1, %v2548_v62, %v2550_v61  ;;  %2589 = vst.msk [vmem:[#allocation6 + $0x128] sm:$0xff] %vm2398_vm14, %v2550_v61  ;;  %v3162_v62 = vld [vmem:[#allocation6 + $0x88] sm:$0xff] }
 0x70b   :  { %3087 = vrot.lane.b32.xlu1 %v5433_v43, %s4296_s0 }
 0x70c   :  { %v2735_v27 = vpop.permute.xlu0 %2734 }
 0x70d   :  { %v2641_v32 = vpop.permute.xlu1 %2640 }
 0x70e   :  { %2918 = vrot.lane.b32.xlu0 %v5523_v5, %s4270_s26  ;;  %v5796_v46 = vsel %vm2650_vm5, %v2639_v9, %v2641_v32  ;;  %2681 = vst.msk [vmem:[#allocation6 + $0x198] sm:$0xff] %vm2398_vm14, %v2641_v32 }
 0x70f   :  { %3091 = vrot.lane.b32.xlu1 %v5457_v22, %s4296_s0 }
 0x710   :  { %v2827_v30 = vpop.permute.xlu0 %2826 }
 0x711   :  { %v2733_v43 = vpop.permute.xlu1 %2732 }
 0x712   :  { %2922 = vrot.lane.b32.xlu0 %v5547_v2, %s4270_s26  ;;  %v5807_v34 = vsel %vm2742_vm6, %v2731_v24, %v2733_v43  ;;  %2773 = vst.msk [vmem:[#allocation6 + $0x208] sm:$0xff] %vm2398_vm14, %v2733_v43  ;;  %v4059_v24 = vpack.c.bf16 %v3164_v14, %v3162_v62 }
 0x713   :  { %3095 = vrot.lane.b32.xlu1 %v5449_v51, %s4296_s0 }
 0x714   :  { %v2465_v38 = vpop.permute.xlu0 %2464 }
 0x715   :  { %v2825_v22 = vpop.permute.xlu1 %2824 }
 0x716   :  { %2726 = vrot.lane.b32.xlu0 %v5542_v18, %s4293_s29  ;;  %v5815_v13 = vsel %vm2834_vm8, %v2823_v15, %v2825_v22  ;;  %2865 = vst.msk [vmem:[#allocation6 + $0x278] sm:$0xff] %vm2398_vm14, %v2825_v22 }
 0x717   :  { %3099 = vrot.lane.b32.xlu1 %v5467_v0, %s4296_s0 }
 0x718   :  { %v2556_v45 = vpop.permute.xlu0 %2555 }
 0x719   :  { %v2463_v35 = vpop.permute.xlu1 %2462 }
 0x71a   :  { %2989 = vrot.lane.b32.xlu0 %v5553_v31, %s4295_s16  ;;  %v5823_v51 = vsel %vm166_vm0, %v2461_v33, %v2463_v35  ;;  %2500 = vst.msk [vmem:[#allocation6 + $0xc8] sm:$0xff] %vm2398_vm14, %v2463_v35 }
 0x71b   :  { %3103 = vrot.lane.b32.xlu1 %v5465_v53, %s4296_s0 }
 0x71c   :  { %v2647_v36 = vpop.permute.xlu0 %2646 }
 0x71d   :  { %v2554_v63 = vpop.permute.xlu1 %2553 }
 0x71e   :  { %2993 = vrot.lane.b32.xlu0 %v5531_v42, %s4295_s16  ;;  %v5831_v8 = vsel %vm191_vm1, %v2552_v7, %v2554_v63  ;;  %2591 = vst.msk [vmem:[#allocation6 + $0x138] sm:$0xff] %vm2398_vm14, %v2554_v63 }
 0x71f   :  { %3107 = vrot.lane.b32.xlu1 %v5481_v3, %s4296_s0  ;;  %v4081_v50 = vpack.c.bf16 %v5831_v8, %v5788_v4  ;;  %v3196_v4 = vld [vmem:[#allocation6 + $0x198] sm:$0xff] }
 0x720   :  { %v2739_v0 = vpop.permute.xlu0 %2738 }
 0x721   :  { %v2645_v53 = vpop.permute.xlu1 %2644 }
 0x722   :  { %2997 = vrot.lane.b32.xlu0 %v5561_v54, %s4295_s16  ;;  %v5841_v37 = vsel %vm2650_vm5, %v2643_v47, %v2645_v53  ;;  %2683 = vst.msk [vmem:[#allocation6 + $0x1a8] sm:$0xff] %vm2398_vm14, %v2645_v53 }
 0x724   :  { %v2441_v12 = vpop.permute.xlu0 %2440 }
 0x725   :  { %v2468_v40 = vsel %vm166_vm0, %v2441_v12, %v5619_v52  ;;  %v2737_v3 = vpop.permute.xlu1 %2736 }
 0x726   :  { %2818 = vrot.lane.b32.xlu0 %v5542_v18, %s4294_s15  ;;  %v4057_v20 = vpack.c.bf16 %v2468_v40, %v5547_v2  ;;  %v5850_v9 = vsel %vm2742_vm6, %v2735_v27, %v2737_v3  ;;  %2775 = vst.msk [vmem:[#allocation6 + $0x218] sm:$0xff] %vm2398_vm14, %v2737_v3 }
 0x727   :  { %v4109_v33 = vpack.c.bf16 %v5850_v9, %v5807_v34 }
 0x728   :  { %v2532_v15 = vpop.permute.xlu0 %2531  ;;  %4058 = vmatpush1.bf16.msra.mxu1 %v4057_v20 }
 0x729   :  { %v5857_v52 = vsel %vm191_vm1, %v2532_v15, %v5627_v39  ;;  %4060 = vmatprep.subr.bf16.mxu1 %v4059_v24  ;;  %v2829_v7 = vpop.permute.xlu1 %2828  ;;  %v3168_v15 = vld [vmem:[#allocation6 + $0xb8] sm:$0xff] }
 0x72a   :  { %3005 = vrot.lane.b32.xlu0 %v5536_v23, %s4295_s16  ;;  %v5862_v44 = vsel %vm2834_vm8, %v2827_v30, %v2829_v7  ;;  %2867 = vst.msk [vmem:[#allocation6 + $0x288] sm:$0xff] %vm2398_vm14, %v2829_v7 }
 0x72c   :  { %v2623_v47 = vpop.permute.xlu0 %2622 }
 0x72d   :  { %v5867_v61 = vsel %vm2650_vm5, %v2623_v47, %v5635_v57  ;;  %v2467_v39 = vpop.permute.xlu1 %2466 }
 0x72e   :  { %3009 = vrot.lane.b32.xlu0 %v5523_v5, %s4295_s16  ;;  %v5872_v27 = vsel %vm166_vm0, %v2465_v38, %v2467_v39  ;;  %2502 = vst.msk [vmem:[#allocation6 + $0xd8] sm:$0xff] %vm2398_vm14, %v2467_v39  ;;  %v3166_v39 = vld [vmem:[#allocation6 + $0xa8] sm:$0xff] }
 0x730   :  { %v2715_v32 = vpop.permute.xlu0 %2714 }
 0x731   :  { %v5877_v21 = vsel %vm2742_vm6, %v2715_v32, %v5643_v41  ;;  %v2558_v30 = vpop.permute.xlu1 %2557 }
 0x732   :  { %2910 = vrot.lane.b32.xlu0 %v5542_v18, %s4270_s26  ;;  %v5882_v57 = vsel %vm191_vm1, %v2556_v45, %v2558_v30  ;;  %2593 = vst.msk [vmem:[#allocation6 + $0x148] sm:$0xff] %vm2398_vm14, %v2558_v30 }
 0x733   :  { %v4085_v38 = vpack.c.bf16 %v5867_v61, %v5882_v57 }
 0x734   :  { %v2807_v43 = vpop.permute.xlu0 %2806 }
 0x735   :  { %v5889_v22 = vsel %vm2834_vm8, %v2807_v43, %v5651_v1  ;;  %v2649_v41 = vpop.permute.xlu1 %2648 }
 0x736   :  { %3013 = vrot.lane.b32.xlu0 %v5547_v2, %s4295_s16  ;;  %v5894_v35 = vsel %vm2650_vm5, %v2647_v36, %v2649_v41  ;;  %2685 = vst.msk [vmem:[#allocation6 + $0x1b8] sm:$0xff] %vm2398_vm14, %v2649_v41 }
 0x737   :  { %v4097_v63 = vpack.c.bf16 %v5894_v35, %v5841_v37  ;;  %v3212_v37 = vld [vmem:[#allocation6 + $0x218] sm:$0xff] }
 0x738   :  { %v2445_v45 = vpop.permute.xlu0 %2444 }
 0x739   :  { %v2469_v53 = vsel %vm166_vm0, %v2445_v45, %v5659_v29  ;;  %v2741_v1 = vpop.permute.xlu1 %2740 }
 0x73a   :  { %3081 = vrot.lane.b32.xlu0 %v5553_v31, %s4296_s0  ;;  %v5904_v12 = vsel %vm2742_vm6, %v2739_v0, %v2741_v1  ;;  %2777 = vst.msk [vmem:[#allocation6 + $0x228] sm:$0xff] %vm2398_vm14, %v2741_v1 }
 0x73b   :  { %v4113_v14 = vpack.c.bf16 %v5889_v22, %v5904_v12  ;;  %v3222_v22 = vld [vmem:[#allocation6 + $0x268] sm:$0xff] }
 0x73c   :  { %v2536_v36 = vpop.permute.xlu0 %2535 }
 0x73d   :  { %v5911_v40 = vsel %vm191_vm1, %v2536_v36, %v5667_v48  ;;  %v5915_v29 = vpop.permute.xlu1 %2832  ;;  %v3200_v61 = vld [vmem:[#allocation6 + $0x1b8] sm:$0xff] }
 0x73e   :  { %3085 = vrot.lane.b32.xlu0 %v5531_v42, %s4296_s0  ;;  %2869 = vst.msk [vmem:[#allocation6 + $0x298] sm:$0xff] %vm2398_vm14, %v5915_v29 }
 0x740   :  { %v2627_v31 = vpop.permute.xlu0 %2626 }
 0x741   :  { %v5921_v0 = vsel %vm2650_vm5, %v2627_v31, %v5675_v16  ;;  %v5925_v3 = vpop.permute.xlu1 %2900  ;;  %v6008_v31 = vld [vmem:[%s6309_s2 + $0x68] sm:$0xff] }
 0x742   :  { %3001 = vrot.lane.b32.xlu0 %v5542_v18, %s4295_s16  ;;  %2948 = vst.msk [vmem:[#allocation6 + $0x2a8] sm:$0xff] %vm2398_vm14, %v5925_v3 }
 0x744   :  { %v2719_v48 = vpop.permute.xlu0 %2718 }
 0x745   :  { %v5931_v42 = vsel %vm2742_vm6, %v2719_v48, %v5683_v17  ;;  %v5935_v20 = vpop.permute.xlu1 %2904  ;;  %v6013_v48 = vld [vmem:[%s6309_s2 + $0x90] sm:$0xf] }
 0x746   :  { %3089 = vrot.lane.b32.xlu0 %v5561_v54, %s4296_s0  ;;  %v4101_v16 = vpack.c.bf16 %v5931_v42, %v5877_v21  ;;  %2950 = vst.msk [vmem:[#allocation6 + $0x2b8] sm:$0xff] %vm2398_vm14, %v5935_v20  ;;  %v43_v21 = vld [vmem:[%s6309_s2] sm:$0xff]  ;;  %v3214_v42 = vld [vmem:[#allocation6 + $0x228] sm:$0xff] }
 0x748   :  { %v2811_v62 = vpop.permute.xlu0 %2810 }
 0x749   :  { %v5943_v24 = vsel %vm2834_vm8, %v2811_v62, %v5691_v49  ;;  %v5947_v17 = vpop.permute.xlu1 %2908  ;;  %v3172_v62 = vld [vmem:[#allocation6 + $0xd8] sm:$0xff] }
 0x74a   :  { %3097 = vrot.lane.b32.xlu0 %v5536_v23, %s4296_s0  ;;  %2952 = vst.msk [vmem:[#allocation6 + $0x2c8] sm:$0xff] %vm2398_vm14, %v5947_v17  ;;  %v4063_v23 = vpack.c.bf16 %v3168_v15, %v3166_v39 }
 0x74c   :  { %v2449_v54 = vpop.permute.xlu0 %2448 }
 0x74d   :  { %v2470_v7 = vsel %vm166_vm0, %v2449_v54, %v5699_v55  ;;  %v5955_v47 = vpop.permute.xlu1 %2912 }
 0x74e   :  { %3093 = vrot.lane.b32.xlu0 %v5542_v18, %s4296_s0  ;;  %v4061_v49 = vpack.c.bf16 %v2470_v7, %v2469_v53  ;;  %2954 = vst.msk [vmem:[#allocation6 + $0x2d8] sm:$0xff] %vm2398_vm14, %v5955_v47  ;;  %v4297_v53 = vmov 120  }
 0x74f   :  { %4258 = vset.pattern.permute.xlu0 %v4297_v53  ;;  %4259 = vset.pattern.permute.xlu1 %v4297_v53  ;;  %v3174_v53 = vld [vmem:[#allocation6 + $0xe8] sm:$0xff] }
 0x750   :  { %v2540_v32 = vpop.permute.xlu0 %2539  ;;  %4062 = vmatpush1.bf16.msra.mxu1 %v4061_v49  ;;  %v3170_v49 = vld [vmem:[#allocation6 + $0xc8] sm:$0xff] }
 0x751   :  { %v5961_v30 = vsel %vm191_vm1, %v2540_v32, %v5707_v19  ;;  %4064 = vmatprep.subr.bf16.mxu1 %v4063_v23  ;;  %v5965_v55 = vpop.permute.xlu1 %2916  ;;  %v4067_v39 = vpack.c.bf16 %v3172_v62, %v3170_v49  ;;  %v3176_v32 = vld [vmem:[#allocation6 + $0xf8] sm:$0xff] }
 0x752   :  { %3101 = vrot.lane.b32.xlu0 %v5523_v5, %s4296_s0  ;;  %2956 = vst.msk [vmem:[#allocation6 + $0x2e8] sm:$0xff] %vm2398_vm14, %v5965_v55  ;;  %v3184_v49 = vld [vmem:[#allocation6 + $0x138] sm:$0xff] }
 0x754   :  { %v2631_v18 = vpop.permute.xlu0 %2630 }
 0x755   :  { %v5971_v43 = vsel %vm2650_vm5, %v2631_v18, %v5715_v56  ;;  %v5975_v41 = vpop.permute.xlu1 %2920  ;;  %v5988_v56 = vld [vmem:[%s6309_s2 + $0x18] sm:$0xff] }
 0x756   :  { %3105 = vrot.lane.b32.xlu0 %v5547_v2, %s4296_s0  ;;  %2958 = vst.msk [vmem:[#allocation6 + $0x2f8] sm:$0xff] %vm2398_vm14, %v5975_v41  ;;  %v5993_v2 = vld [vmem:[%s6309_s2 + $0x40] sm:$0xff] }
 0x757   :  { %3278 = vperm.xlu1 %4259, %v5993_v2  }
 0x758   :  { %v2723_v19 = vpop.permute.xlu0 %2722 }
 0x759   :  { %v5981_v5 = vsel %vm2742_vm6, %v2723_v19, %v5723_v11  ;;  %v5983_v45 = vpop.permute.xlu1 %2924 }
 0x75a   :  { %2960 = vst.msk [vmem:[#allocation6 + $0x308] sm:$0xff] %vm2398_vm14, %v5983_v45  ;;  %3273 = vperm.xlu0 %4258, %v5988_v56  }
 0x75b   :  { %3283 = vperm.xlu1 %4259, %v6008_v31  }
 0x75c   :  { %v2815_v11 = vpop.permute.xlu0 %2814 }
 0x75d   :  { %v6001_v1 = vsel %vm2834_vm8, %v2815_v11, %v5731_v60  ;;  %v6003_v36 = vpop.permute.xlu1 %2991 }
 0x75e   :  { %3040 = vst.msk [vmem:[#allocation6 + $0x318] sm:$0xff] %vm2398_vm14, %v6003_v36  ;;  %3288 = vperm.xlu0 %4258, %v6013_v48  }
 0x760   :  { %v2453_v60 = vpop.permute.xlu0 %2452 }
 0x761   :  { %v2471_v54 = vsel %vm166_vm0, %v2453_v60, %v5739_v10  ;;  %v6021_v15 = vpop.permute.xlu1 %2995  ;;  %v4069_v10 = vpack.c.bf16 %v5872_v27, %v5823_v51  ;;  %v3180_v60 = vld [vmem:[#allocation6 + $0x118] sm:$0xff]  ;;  %vm3017_vm0 = vcmask 826368  }
 0x762   :  { %v4065_v7 = vpack.c.bf16 %v5780_v58, %v2471_v54  ;;  %3042 = vst.msk [vmem:[#allocation6 + $0x328] sm:$0xff] %vm2398_vm14, %v6021_v15  ;;  %v4071_v58 = vpack.c.bf16 %v3176_v32, %v3174_v53  ;;  %v4073_v54 = vpack.c.bf16 %v5911_v40, %v5857_v52  ;;  %v3182_v32 = vld [vmem:[#allocation6 + $0x128] sm:$0xff] }
 0x763   :  { %v4079_v52 = vpack.c.bf16 %v3184_v49, %v3182_v32  ;;  %v3194_v49 = vld [vmem:[#allocation6 + $0x188] sm:$0xff] }
 0x764   :  { %v2831_v23 = vpop.permute.xlu0 %2830  ;;  %4066 = vmatpush1.bf16.msra.mxu1 %v4065_v7  ;;  %v3178_v7 = vld [vmem:[#allocation6 + $0x108] sm:$0xff] }
 0x765   :  { %v6028_v18 = vsel %vm2834_vm8, %v2831_v23, %v5915_v29  ;;  %4068 = vmatprep.subr.bf16.mxu1 %v4067_v39  ;;  %v6030_v19 = vpop.permute.xlu1 %2999  ;;  %v4075_v51 = vpack.c.bf16 %v3180_v60, %v3178_v7  ;;  %v3192_v60 = vld [vmem:[#allocation6 + $0x178] sm:$0xff]  ;;  %v3190_v7 = vld [vmem:[#allocation6 + $0x168] sm:$0xff] }
 0x766   :  { %3044 = vst.msk [vmem:[#allocation6 + $0x338] sm:$0xff] %vm2398_vm14, %v6030_v19  ;;  %v3198_v32 = vld [vmem:[#allocation6 + $0x1a8] sm:$0xff] }
 0x768   :  { %v2899_v11 = vpop.permute.xlu0 %2898  ;;  %4070 = vmatpush1.bf16.msra.mxu1 %v4069_v10  ;;  %v3186_v10 = vld [vmem:[#allocation6 + $0x148] sm:$0xff] }
 0x769   :  { %v6038_v62 = vsel %vm478_vm9, %v2899_v11, %v5925_v3  ;;  %4072 = vmatprep.subr.bf16.mxu1 %v4071_v58  ;;  %v6040_v29 = vpop.permute.xlu1 %3003 }
 0x76a   :  { %3046 = vst.msk [vmem:[#allocation6 + $0x348] sm:$0xff] %vm2398_vm14, %v6040_v29 }
 0x76c   :  { %v2544_v27 = vpop.permute.xlu0 %2543  ;;  %4074 = vmatpush1.bf16.msra.mxu1 %v4073_v54 }
 0x76d   :  { %v2562_v39 = vsel %vm191_vm1, %v2544_v27, %v5747_v59  ;;  %4076 = vmatprep.subr.bf16.mxu1 %v4075_v51  ;;  %v6048_v3 = vpop.permute.xlu1 %3007  ;;  %v3188_v59 = vld [vmem:[#allocation6 + $0x158] sm:$0xff]  ;;  %v4087_v51 = vpack.c.bf16 %v3192_v60, %v3190_v7  ;;  %v3206_v60 = vld [vmem:[#allocation6 + $0x1e8] sm:$0xff]  ;;  %vm3109_vm1 = vcmask 818176  }
 0x76e   :  { %v4077_v23 = vpack.c.bf16 %v2562_v39, %v5961_v30  ;;  %3048 = vst.msk [vmem:[#allocation6 + $0x358] sm:$0xff] %vm2398_vm14, %v6048_v3  ;;  %v4083_v30 = vpack.c.bf16 %v3188_v59, %v3186_v10  ;;  %v4091_v39 = vpack.c.bf16 %v3196_v4, %v3194_v49  ;;  %v3216_v49 = vld [vmem:[#allocation6 + $0x238] sm:$0xff] }
 0x770   :  { %v2903_v40 = vpop.permute.xlu0 %2902  ;;  %4078 = vmatpush1.bf16.msra.mxu1 %v4077_v23 }
 0x771   :  { %v6055_v53 = vsel %vm478_vm9, %v2903_v40, %v5935_v20  ;;  %4080 = vmatprep.subr.bf16.mxu1 %v4079_v52  ;;  %v6057_v58 = vpop.permute.xlu1 %3011  ;;  %v3204_v52 = vld [vmem:[#allocation6 + $0x1d8] sm:$0xff] }
 0x772   :  { %3050 = vst.msk [vmem:[#allocation6 + $0x368] sm:$0xff] %vm2398_vm14, %v6057_v58 }
 0x774   :  { %v2907_v11 = vpop.permute.xlu0 %2906  ;;  %4082 = vmatpush1.bf16.msra.mxu1 %v4081_v50 }
 0x775   :  { %v6066_v54 = vsel %vm478_vm9, %v2907_v11, %v5947_v17  ;;  %4084 = vmatprep.subr.bf16.mxu1 %v4083_v30  ;;  %v6068_v20 = vpop.permute.xlu1 %3015  ;;  %v4089_v17 = vpack.c.bf16 %v5971_v43, %v5921_v0  ;;  %v4095_v0 = vpack.c.bf16 %v3200_v61, %v3198_v32  ;;  %v3208_v30 = vld [vmem:[#allocation6 + $0x1f8] sm:$0xff]  ;;  %v47_v61 = vld [vmem:[%s6309_s2 + $0x28] sm:$0xff] }
 0x776   :  { %3052 = vst.msk [vmem:[#allocation6 + $0x378] sm:$0xff] %vm2398_vm14, %v6068_v20  ;;  %v4103_v7 = vpack.c.bf16 %v3208_v30, %v3206_v60  ;;  %v3226_v60 = vld [vmem:[#allocation6 + $0x288] sm:$0xff] }
 0x778   :  { %v2915_v27 = vpop.permute.xlu0 %2914  ;;  %4086 = vmatpush1.bf16.msra.mxu1 %v4085_v38 }
 0x779   :  { %v6077_v8 = vsel %vm478_vm9, %v2915_v27, %v5965_v55  ;;  %4088 = vmatprep.subr.bf16.mxu1 %v4087_v51  ;;  %v6079_v50 = vpop.permute.xlu1 %3083  ;;  %v3210_v27 = vld [vmem:[#allocation6 + $0x208] sm:$0xff] }
 0x77a   :  { %3132 = vst.msk [vmem:[#allocation6 + $0x388] sm:$0xff] %vm2398_vm14, %v6079_v50  ;;  %v4107_v4 = vpack.c.bf16 %v3212_v37, %v3210_v27  ;;  %v4125_v37 = vpack.c.bf16 %v6028_v18, %v5862_v44 }
 0x77c   :  { %v2635_v23 = vpop.permute.xlu0 %2634  ;;  %4090 = vmatpush1.bf16.msra.mxu1 %v4089_v17 }
 0x77d   :  { %v2654_v57 = vsel %vm2650_vm5, %v2635_v23, %v5755_v28  ;;  %4092 = vmatprep.subr.bf16.mxu1 %v4091_v39  ;;  %v6087_v38 = vpop.permute.xlu1 %3087  ;;  %v3202_v28 = vld [vmem:[#allocation6 + $0x1c8] sm:$0xff]  ;;  %v4111_v39 = vpack.c.bf16 %v3216_v49, %v3214_v42 }
 0x77e   :  { %v4093_v55 = vpack.c.bf16 %v5796_v46, %v2654_v57  ;;  %3134 = vst.msk [vmem:[#allocation6 + $0x398] sm:$0xff] %vm2398_vm14, %v6087_v38  ;;  %v4099_v46 = vpack.c.bf16 %v3204_v52, %v3202_v28  ;;  %v56_v52 = vld [vmem:[%s6309_s2 + $0x80] sm:$0xf]  ;;  %v4117_v28 = vpack.c.bf16 %v6001_v1, %v5943_v24  ;;  %v3232_v1 = vld [vmem:[#allocation6 + $0x2b8] sm:$0xff]  ;;  %v3238_v42 = vld [vmem:[#allocation6 + $0x2e8] sm:$0xff] }
 0x780   :  { %v2919_v43 = vpop.permute.xlu0 %2918  ;;  %4094 = vmatpush1.bf16.msra.mxu1 %v4093_v55  ;;  %v52_v55 = vld [vmem:[%s6309_s2 + $0x58] sm:$0xff] }
 0x781   :  { %v6094_v40 = vsel %vm478_vm9, %v2919_v43, %v5975_v41  ;;  %4096 = vmatprep.subr.bf16.mxu1 %v4095_v0  ;;  %v6096_v10 = vpop.permute.xlu1 %3091  ;;  %v3218_v0 = vld [vmem:[#allocation6 + $0x248] sm:$0xff] }
 0x782   :  { %3136 = vst.msk [vmem:[#allocation6 + $0x3a8] sm:$0xff] %vm2398_vm14, %v6096_v10 }
 0x784   :  { %v2923_v59 = vpop.permute.xlu0 %2922  ;;  %4098 = vmatpush1.bf16.msra.mxu1 %v4097_v63 }
 0x785   :  { %v6105_v11 = vsel %vm478_vm9, %v2923_v59, %v5983_v45  ;;  %4100 = vmatprep.subr.bf16.mxu1 %v4099_v46  ;;  %v6107_v41 = vpop.permute.xlu1 %3095  ;;  %v3228_v46 = vld [vmem:[#allocation6 + $0x298] sm:$0xff] }
 0x786   :  { %3138 = vst.msk [vmem:[#allocation6 + $0x3b8] sm:$0xff] %vm2398_vm14, %v6107_v41 }
 0x788   :  { %v2727_v51 = vpop.permute.xlu0 %2726  ;;  %4102 = vmatpush1.bf16.msra.mxu1 %v4101_v16  ;;  %v48_v16 = vld [vmem:[%s6309_s2 + $0x30] sm:$0xff] }
 0x789   :  { %v2746_v35 = vsel %vm2742_vm6, %v2727_v51, %v5763_v25  ;;  %4104 = vmatprep.subr.bf16.mxu1 %v4103_v7  ;;  %v6116_v63 = vpop.permute.xlu1 %3099  ;;  %v4123_v7 = vpack.c.bf16 %v3228_v46, %v3226_v60 }
 0x78a   :  { %v4105_v45 = vpack.c.bf16 %v2746_v35, %v5981_v5  ;;  %3140 = vst.msk [vmem:[#allocation6 + $0x3c8] sm:$0xff] %vm2398_vm14, %v6116_v63 }
 0x78c   :  { %v2990_v17 = vpop.permute.xlu0 %2989  ;;  %4106 = vmatpush1.bf16.msra.mxu1 %v4105_v45 }
 0x78d   :  { %v6126_v25 = vsel %vm3017_vm0, %v2990_v17, %v6003_v36  ;;  %4108 = vmatprep.subr.bf16.mxu1 %v4107_v4  ;;  %v6131_v5 = vpop.permute.xlu1 %3103  ;;  %v3220_v36 = vld [vmem:[#allocation6 + $0x258] sm:$0xff]  ;;  %v4129_v4 = vpack.c.bf16 %v6055_v53, %v6038_v62  ;;  %v4137_v62 = vpack.c.bf16 %v6094_v40, %v6077_v8  ;;  %v3242_v53 = vld [vmem:[#allocation6 + $0x308] sm:$0xff] }
 0x78e   :  { %3142 = vst.msk [vmem:[#allocation6 + $0x3d8] sm:$0xff] %vm2398_vm14, %v6131_v5  ;;  %v4115_v34 = vpack.c.bf16 %v3220_v36, %v3218_v0 }
 0x78f   :  { %3364 = vmatmul.mubr.f32.vlgmr.msra.gmra.mrb[62].mxu1 %v43_v21 }
 0x790   :  { %v2994_v23 = vpop.permute.xlu0 %2993  ;;  %4110 = vmatpush1.bf16.msra.mxu1 %v4109_v33  ;;  %3369 = vmatprep.mubr.f32.mxu1 %v48_v16  ;;  %v3224_v33 = vld [vmem:[#allocation6 + $0x278] sm:$0xff] }
 0x791   :  { %v6143_v57 = vsel %vm3017_vm0, %v2994_v23, %v6021_v15  ;;  %4112 = vmatprep.subr.bf16.mxu1 %v4111_v39  ;;  %v6148_v32 = vpop.permute.xlu1 %3107  ;;  %v51_v15 = vld [vmem:[%s6309_s2 + $0x50] sm:$0xff]  ;;  %v4119_v12 = vpack.c.bf16 %v3224_v33, %v3222_v22 }
 0x792   :  { %3144 = vst.msk [vmem:[#allocation6 + $0x3e8] sm:$0xff] %vm2398_vm14, %v6148_v32 }
 0x793   :  { %3370 = vmatmul.mubr.f32.gmra.mrb[64].mxu1 %v47_v61  ;;  %v4141_v61 = vpack.c.bf16 %v6126_v25, %v6105_v11 }
 0x794   :  { %v2998_v9 = vpop.permute.xlu0 %2997  ;;  %4114 = vmatpush1.bf16.msra.mxu1 %v4113_v14  ;;  %3375 = vmatprep.mubr.f32.mxu1 %v52_v55  ;;  %v3246_v55 = vld [vmem:[#allocation6 + $0x328] sm:$0xff] }
 0x795   :  { %v6160_v43 = vsel %vm3017_vm0, %v2998_v9, %v6030_v19  ;;  %4116 = vmatprep.subr.bf16.mxu1 %v4115_v34  ;;  %v55_v19 = vld [vmem:[%s6309_s2 + $0x78] sm:$0xf]  ;;  %v3250_v9 = vld [vmem:[#allocation6 + $0x348] sm:$0xff] }
 0x796   :  { %v3252_v34 = vld [vmem:[#allocation6 + $0x358] sm:$0xff]  ;;  %v4145_v40 = vpack.c.bf16 %v6160_v43, %v6143_v57  ;;  %v3258_v43 = vld [vmem:[#allocation6 + $0x388] sm:$0xff] }
 0x797   :  { %3376 = vmatmul.mubr.f32.gmra.mrb[66].mxu1 %v51_v15  ;;  %v4147_v33 = vpack.c.bf16 %v3252_v34, %v3250_v9  ;;  %v41_v34 = vld [vmem:[%s6307_s1 + $0xd8] sm:$0xff] }
 0x798   :  { %v2819_v14 = vpop.permute.xlu0 %2818  ;;  %4118 = vmatpush1.bf16.msra.mxu1 %v4117_v28  ;;  %3381 = vmatprep.mubr.f32.mxu1 %v56_v52  ;;  %v3254_v52 = vld [vmem:[#allocation6 + $0x368] sm:$0xff] }
 0x799   :  { %v2838_v59 = vsel %vm2834_vm8, %v2819_v14, %v5771_v26  ;;  %4120 = vmatprep.subr.bf16.mxu1 %v4119_v12  ;;  %v3230_v26 = vld [vmem:[#allocation6 + $0x2a8] sm:$0xff]  ;;  %v3260_v12 = vld [vmem:[#allocation6 + $0x398] sm:$0xff] }
 0x79a   :  { %v4121_v30 = vpack.c.bf16 %v5815_v13, %v2838_v59  ;;  %v4127_v35 = vpack.c.bf16 %v3232_v1, %v3230_v26  ;;  %v3236_v13 = vld [vmem:[#allocation6 + $0x2d8] sm:$0xff]  ;;  %v4155_v14 = vpack.c.bf16 %v3260_v12, %v3258_v43 }
 0x79b   :  { %3382 = vmatmul.mubr.f32.gmra.mrb[68].mxu1 %v55_v19  ;;  %v3264_v19 = vld [vmem:[#allocation6 + $0x3b8] sm:$0xff] }
 0x79c   :  { %v3006_v24 = vpop.permute.xlu0 %3005  ;;  %4122 = vmatpush1.bf16.msra.mxu1 %v4121_v30  ;;  %3682 = vmatprep.mubr.msk.f32.mxu1 %vm337_vm7, %v5988_v56  ;;  %v3234_v56 = vld [vmem:[#allocation6 + $0x2c8] sm:$0xff] }
 0x79d   :  { %v3022_v51 = vsel %vm3017_vm0, %v3006_v24, %v6048_v3  ;;  %4124 = vmatprep.subr.bf16.mxu1 %v4123_v7  ;;  %v4131_v17 = vpack.c.bf16 %v3236_v13, %v3234_v56  ;;  %v3240_v3 = vld [vmem:[#allocation6 + $0x2f8] sm:$0xff]  ;;  %v3262_v30 = vld [vmem:[#allocation6 + $0x3a8] sm:$0xff]  ;;  %v26_v13 = vld [vmem:[%s6307_s1 + $0x60] sm:$0xff] }
 0x79e   :  { %v4135_v16 = vpack.c.bf16 %v3240_v3, %v3238_v42  ;;  %v4159_v60 = vpack.c.bf16 %v3264_v19, %v3262_v30  ;;  %v3268_v24 = vld [vmem:[#allocation6 + $0x3d8] sm:$0xff] }
 0x7a0   :  { %v3010_v45 = vpop.permute.xlu0 %3009  ;;  %4126 = vmatpush1.bf16.msra.mxu1 %v4125_v37 }
 0x7a1   :  { %v3023_v27 = vsel %vm3017_vm0, %v3010_v45, %v6057_v58  ;;  %4128 = vmatprep.subr.bf16.mxu1 %v4127_v35  ;;  %v3244_v58 = vld [vmem:[#allocation6 + $0x318] sm:$0xff] }
 0x7a2   :  { %v4139_v23 = vpack.c.bf16 %v3244_v58, %v3242_v53  ;;  %v25_v45 = vld [vmem:[%s6307_s1 + $0x58] sm:$0xff] }
 0x7a3   :  { %v4168_v56 = vpack.c.bf16 %v26_v13, %v25_v45 }
 0x7a4   :  { %v2911_v21 = vpop.permute.xlu0 %2910  ;;  %4130 = vmatpush1.bf16.msra.mxu1 %v4129_v4 }
 0x7a5   :  { %v2929_v44 = vsel %vm478_vm9, %v2911_v21, %v5955_v47  ;;  %4132 = vmatprep.subr.bf16.mxu1 %v4131_v17  ;;  %v3248_v47 = vld [vmem:[#allocation6 + $0x338] sm:$0xff]  ;;  %v27_v17 = vld [vmem:[%s6307_s1 + $0x68] sm:$0xff]  ;;  %v28_v21 = vld [vmem:[%s6307_s1 + $0x70] sm:$0xff]  ;;  %vm4298_vm9 = vmmov 1  }
 0x7a6   :  { %v4133_v18 = vpack.c.bf16 %v2929_v44, %v6066_v54  ;;  %v4143_v0 = vpack.c.bf16 %v3248_v47, %v3246_v55  ;;  %v4171_v3 = vpack.c.bf16 %v28_v21, %v27_v17  ;;  %v29_v44 = vld [vmem:[%s6307_s1 + $0x78] sm:$0xff]  ;;  %v39_v55 = vld [vmem:[%s6307_s1 + $0xc8] sm:$0xff] }
 0x7a7   :  { %v37_v47 = vld [vmem:[%s6307_s1 + $0xb8] sm:$0xff] }
 0x7a8   :  { %v3014_v49 = vpop.permute.xlu0 %3013  ;;  %4134 = vmatpush1.bf16.msra.mxu1 %v4133_v18  ;;  %v30_v18 = vld [vmem:[%s6307_s1 + $0x80] sm:$0xff] }
 0x7a9   :  { %v3024_v39 = vsel %vm3017_vm0, %v3014_v49, %v6068_v20  ;;  %4136 = vmatprep.subr.bf16.mxu1 %v4135_v16  ;;  %v4174_v42 = vpack.c.bf16 %v30_v18, %v29_v44  ;;  %v31_v16 = vld [vmem:[%s6307_s1 + $0x88] sm:$0xff]  ;;  %v32_v49 = vld [vmem:[%s6307_s1 + $0x90] sm:$0xff] }
 0x7aa   :  { %v4153_v57 = vpack.c.bf16 %v3024_v39, %v3023_v27  ;;  %v3270_v27 = vld [vmem:[#allocation6 + $0x3e8] sm:$0xff]  ;;  %v4177_v58 = vpack.c.bf16 %v32_v49, %v31_v16  ;;  %v33_v39 = vld [vmem:[%s6307_s1 + $0x98] sm:$0xff] }
 0x7ac   :  { %v3082_v36 = vpop.permute.xlu0 %3081  ;;  %4138 = vmatpush1.bf16.msra.mxu1 %v4137_v62  ;;  %v34_v62 = vld [vmem:[%s6307_s1 + $0xa0] sm:$0xff] }
 0x7ad   :  { %v3110_v54 = vsel %vm3109_vm1, %v3082_v36, %v6079_v50  ;;  %4140 = vmatprep.subr.bf16.mxu1 %v4139_v23  ;;  %v3256_v50 = vld [vmem:[#allocation6 + $0x378] sm:$0xff]  ;;  %v4180_v53 = vpack.c.bf16 %v34_v62, %v33_v39  ;;  %v36_v23 = vld [vmem:[%s6307_s1 + $0xb0] sm:$0xff] }
 0x7ae   :  { %v4151_v28 = vpack.c.bf16 %v3256_v50, %v3254_v52 }
 0x7b0   :  { %v3086_v20 = vpop.permute.xlu0 %3085  ;;  %4142 = vmatpush1.bf16.msra.mxu1 %v4141_v61 }
 0x7b1   :  { %v3111_v8 = vsel %vm3109_vm1, %v3086_v20, %v6087_v38  ;;  %4144 = vmatprep.subr.bf16.mxu1 %v4143_v0  ;;  %v40_v0 = vld [vmem:[%s6307_s1 + $0xd0] sm:$0xff] }
 0x7b2   :  { %v4157_v59 = vpack.c.bf16 %v3111_v8, %v3110_v54  ;;  %v38_v54 = vld [vmem:[%s6307_s1 + $0xc0] sm:$0xff]  ;;  %v4189_v20 = vpack.c.bf16 %v40_v0, %v39_v55 }
 0x7b3   :  { %v4186_v61 = vpack.c.bf16 %v38_v54, %v37_v47  ;;  %v42_v8 = vld [vmem:[%s6307_s1 + $0xe0] sm:$0x1f] }
 0x7b4   :  { %v3002_v15 = vpop.permute.xlu0 %3001  ;;  %4146 = vmatpush1.bf16.msra.mxu1 %v4145_v40  ;;  %v4192_v40 = vpack.c.bf16 %v42_v8, %v41_v34 }
 0x7b5   :  { %v3021_v11 = vsel %vm3017_vm0, %v3002_v15, %v6040_v29  ;;  %4148 = vmatprep.subr.bf16.mxu1 %v4147_v33 }
 0x7b6   :  { %v4149_v25 = vpack.c.bf16 %v3022_v51, %v3021_v11  ;;  %v3266_v51 = vld [vmem:[#allocation6 + $0x3c8] sm:$0xff] }
 0x7b7   :  { %v4163_v37 = vpack.c.bf16 %v3268_v24, %v3266_v51 }
 0x7b8   :  { %v3090_v22 = vpop.permute.xlu0 %3089  ;;  %4150 = vmatpush1.bf16.msra.mxu1 %v4149_v25 }
 0x7b9   :  { %v3112_v38 = vsel %vm3109_vm1, %v3090_v22, %v6096_v10  ;;  %4152 = vmatprep.subr.bf16.mxu1 %v4151_v28 }
 0x7bc   :  { %v3098_v46 = vpop.permute.xlu0 %3097  ;;  %4154 = vmatpush1.bf16.msra.mxu1 %v4153_v57 }
 0x7bd   :  { %v3114_v29 = vsel %vm3109_vm1, %v3098_v46, %v6116_v63  ;;  %4156 = vmatprep.subr.bf16.mxu1 %v4155_v14 }
 0x7c0   :  { %v3094_v7 = vpop.permute.xlu0 %3093  ;;  %4158 = vmatpush1.bf16.msra.mxu1 %v4157_v59 }
 0x7c1   :  { %v3113_v10 = vsel %vm3109_vm1, %v3094_v7, %v6107_v41  ;;  %4160 = vmatprep.subr.bf16.mxu1 %v4159_v60 }
 0x7c2   :  { %v4161_v1 = vpack.c.bf16 %v3113_v10, %v3112_v38 }
 0x7c4   :  { %v3102_v26 = vpop.permute.xlu0 %3101  ;;  %4162 = vmatpush1.bf16.msra.mxu1 %v4161_v1 }
 0x7c5   :  { %v3115_v35 = vsel %vm3109_vm1, %v3102_v26, %v6131_v5  ;;  %4164 = vmatprep.subr.bf16.mxu1 %v4163_v37  ;;  %v45_v5 = vld [vmem:[%s6309_s2 + $0x10] sm:$0xff] }
 0x7c6   :  { %v4165_v63 = vpack.c.bf16 %v3115_v35, %v3114_v29 }
 0x7c8   :  { %v3106_v41 = vpop.permute.xlu0 %3105  ;;  %4166 = vmatpush1.bf16.msra.mxu1 %v4165_v63 }
 0x7c9   :  { %v3116_v4 = vsel %vm3109_vm1, %v3106_v41, %v6148_v32  ;;  %3448 = vmatprep.subr.mxu1 %v3270_v27  ;;  %v49_v32 = vld [vmem:[%s6309_s2 + $0x38] sm:$0xff] }
 0x7cc   :  { %3449 = vmatpush1.msra.mxu1 %v3116_v4 }
 0x7cd   :  { %3453 = vmatmul.mubr.f32.vlgmr.msra.gmra.mrb[62].mxu1 %v45_v5  ;;  %4167 = vmatprep.subr.bf16.mxu1 %v4275_v6 }
 0x7ce   :  { %3683 = vmatprep.mubr.msk.f32.mxu1 %vm337_vm7, %v5993_v2  ;;  %4169 = vmatpush1.bf16.msra.mxu1 %v4168_v56  ;;  %v53_v2 = vld [vmem:[%s6309_s2 + $0x60] sm:$0xff] }
 0x7cf   :  { %4170 = vmatprep.subr.bf16.mxu1 %v4275_v6 }
 0x7d1   :  { %3459 = vmatmul.mubr.f32.gmra.mrb[64].mxu1 %v49_v32 }
 0x7d2   :  { %3684 = vmatprep.mubr.msk.f32.mxu1 %vm337_vm7, %v6008_v31  ;;  %4172 = vmatpush1.bf16.msra.mxu1 %v4171_v3  ;;  %v57_v31 = vld [vmem:[%s6309_s2 + $0x88] sm:$0xf] }
 0x7d3   :  { %4173 = vmatprep.subr.bf16.mxu1 %v4275_v6 }
 0x7d5   :  { %3465 = vmatmul.mubr.f32.gmra.mrb[66].mxu1 %v53_v2 }
 0x7d6   :  { %3685 = vmatprep.mubr.msk.f32.mxu1 %vm337_vm7, %v6013_v48  ;;  %4175 = vmatpush1.bf16.msra.mxu1 %v4174_v42  ;;  %v35_v48 = vld [vmem:[%s6307_s1 + $0xa8] sm:$0xff]  ;;  %vm3489_vm7 = vcmask 1044480   ;;  %v3279_v25 = vpop.permute.xlu1 %3278 }
 0x7d7   :  { %4176 = vmatprep.subr.bf16.mxu1 %v4275_v6  ;;  %v4183_v36 = vpack.c.bf16 %v36_v23, %v35_v48  ;;  %vm4193_vm10 = vmpackc.low %vm3489_vm7, %vm4298_vm9 }
 0x7d9   :  { %3471 = vmatmul.mubr.f32.gmra.mrb[68].mxu1 %v57_v31  ;;  %v3274_v33 = vpop.permute.xlu0 %3273 }
 0x7da   :  { %4178 = vmatpush1.bf16.msra.mxu1 %v4177_v58  ;;  %v3284_v57 = vpop.permute.xlu1 %3283 }
 0x7db   :  { %4179 = vmatprep.subr.bf16.mxu1 %v4275_v6 }
 0x7dd   :  { %v3289_v19 = vpop.permute.xlu0 %3288 }
 0x7de   :  { %4181 = vmatpush1.bf16.msra.mxu1 %v4180_v53 }
 0x7df   :  { %4182 = vmatprep.subr.bf16.mxu1 %v4275_v6 }
 0x7e2   :  { %4184 = vmatpush1.bf16.msra.mxu1 %v4183_v36 }
 0x7e3   :  { %4185 = vmatprep.subr.bf16.mxu1 %v4275_v6 }
 0x7e6   :  { %4187 = vmatpush1.bf16.msra.mxu1 %v4186_v61 }
 0x7e7   :  { %4188 = vmatprep.subr.bf16.mxu1 %v4275_v6 }
 0x7ea   :  { %4190 = vmatpush1.bf16.msra.mxu1 %v4189_v20 }
 0x7eb   :  { %4191 = vmatprep.subr.bf16.mxu1 %v4275_v6 }
 0x7ee   :  { %4194 = vmatpush1.bf16.msk.msra.mxu1 %vm4193_vm10, %v4192_v40 }
 0x8a0   :  { %v3454_v9 = vpop.f32.mrb[62].mxu1 }
 0x8a1   :  { %v3456_v15 = vpop.f32.mrb[63].mxu1  ;;  %v4199_v11 = vadd.f32 %v3454_v9, %v3274_v33 }
 0x8a2   :  { %v4200_v50 = vadd.f32 %v3456_v15, %v3274_v33 }
 0x8a4   :  { %3687 = vmatprep.mubr.msk.f32.mxu1 %vm2398_vm14, %v4200_v50  ;;  %v3460_v6 = vpop.f32.mrb[64].mxu1 }
 0x8a5   :  { %3558 = vmatmul.mubr.f32.vlgmr.msra.gmra.mrb[70].mxu1 %v4199_v11  ;;  %v3462_v52 = vpop.f32.mrb[65].mxu1  ;;  %v4201_v22 = vadd.f32 %v3460_v6, %v3279_v25 }
 0x8a6   :  { %v4202_v28 = vadd.f32 %v3462_v52, %v3279_v25 }
 0x8a8   :  { %v3466_v12 = vpop.f32.mrb[66].mxu1  ;;  %3688 = vmatprep.mubr.msk.f32.mxu1 %vm2398_vm14, %v4202_v28 }
 0x8a9   :  { %v3468_v38 = vpop.f32.mrb[67].mxu1  ;;  %3563 = vmatmul.mubr.f32.gmra.mrb[72].mxu1 %v4201_v22  ;;  %v4203_v14 = vadd.f32 %v3466_v12, %v3284_v57 }
 0x8aa   :  { %v4204_v43 = vadd.f32 %v3468_v38, %v3284_v57 }
 0x8ac   :  { %v3472_v46 = vpop.f32.mrb[68].mxu1  ;;  %3689 = vmatprep.mubr.msk.f32.mxu1 %vm2398_vm14, %v4204_v43 }
 0x8ad   :  { %v3474_v29 = vpop.f32.mrb[69].mxu1  ;;  %3568 = vmatmul.mubr.f32.gmra.mrb[74].mxu1 %v4203_v14  ;;  %v4205_v30 = vadd.f32 %v3472_v46, %v3289_v19 }
 0x8ae   :  { %v4206_v59 = vadd.f32 %v3474_v29, %v3289_v19 }
 0x8b0   :  { %3690 = vmatprep.mubr.msk.f32.mxu1 %vm2398_vm14, %v4206_v59 }
 0x8b1   :  { %3573 = vmatmul.mubr.f32.gmra.mrb[76].mxu1 %v4205_v30 }
 0x978   :  { %v3559_v60 = vpop.f32.mrb[70].mxu1 }
 0x979   :  { %3579 = vst.msk [vmem:[%s6310_s3] sm:$0xff] %vm3578_vm11, %v3559_v60  ;;  %v3561_v7 = vpop.f32.mrb[71].mxu1 }
 0x97c   :  { %v3564_v24 = vpop.f32.mrb[72].mxu1 }
 0x97d   :  { %3580 = vst.msk [vmem:[%s6310_s3 + $0x8] sm:$0xff] %vm3578_vm11, %v3564_v24  ;;  %v3566_v10 = vpop.f32.mrb[73].mxu1 }
 0x980   :  { %v3569_v1 = vpop.f32.mrb[74].mxu1 }
 0x981   :  { %3581 = vst.msk [vmem:[%s6310_s3 + $0x10] sm:$0xff] %vm3578_vm11, %v3569_v1  ;;  %v3571_v51 = vpop.f32.mrb[75].mxu1 }
 0x984   :  { %v3574_v37 = vpop.f32.mrb[76].mxu1 }
 0x985   :  { %3583 = vst.msk [vmem:[%s6310_s3 + $0x18] sm:$0xf] %vm3582_vm12, %v3574_v37  ;;  %v3576_v26 = vpop.f32.mrb[77].mxu1 }

</bundles_post_ra>
